<compile_context>
chip_gen: v7x
topology: tpu7x:2x2x1
jax: 0.10.0
libtpu: 0.0.40
codegen_flags: <defaults>
</compile_context>

<pallas_src>
import functools

import numpy as np
import jax
import jax.numpy as jnp
from jax.experimental import pallas as pl
from jax.experimental.pallas import tpu as pltpu


def _round_up(x, m):
    return (x + m - 1) // m * m


# ---------------------------------------------------------------------------
# Pure-JAX positional encoding (reference path; mirrors the PyTorch helper)
# ---------------------------------------------------------------------------
def positional_encoding(positions, freqs):
    freq_bands = 2.0 ** jnp.arange(freqs, dtype=jnp.float32)
    pts = (positions[..., None] * freq_bands).reshape(
        positions.shape[:-1] + (freqs * positions.shape[-1],))
    return jnp.concatenate([jnp.sin(pts), jnp.cos(pts)], axis=-1)


# ---------------------------------------------------------------------------
# Pallas kernel: fused (MXU-based) PE + 3-layer MLP + sigmoid
# ---------------------------------------------------------------------------
def _render_mlp_kernel(x_ref, s_ref, phase_ref, w1r_ref, w1p_ref, b1_ref,
                       w2_ref, b2_ref, w3_ref, b3_ref, o_ref, *, matmul_dtype):
    tn, raw_dim = x_ref.shape
    k_raw = s_ref.shape[0]
    out_cols = o_ref.shape[1]

    raw = x_ref[...]                                          # [T, raw_dim] f32
    if k_raw > raw_dim:                                       # pad K to 128-mult
        raw = jnp.concatenate(
            [raw, jnp.zeros((tn, k_raw - raw_dim), jnp.float32)], axis=-1)

    # Positional encoding on the MXU: one scale/scatter matmul + phase offset;
    # a single sin() yields both the sin and the cos blocks.  Kept in f32:
    # arguments reach |x|*2^(pe-1); bf16 rounding there would wreck sin/cos.
    args = jnp.dot(raw, s_ref[...],
                   preferred_element_type=jnp.float32) + phase_ref[...]
    pe = jnp.sin(args)                                        # [T, pe_pad] f32

    md = matmul_dtype

    def mm(a, w_ref):
        # Optional reduced-precision matmul (bf16 default); f32 accumulation.
        return jnp.dot(a.astype(md), w_ref[...],
                       preferred_element_type=jnp.float32)

    # Layer 1 with W1 split into raw-rows / PE-rows (re-packed at init).
    h1 = jnp.maximum(mm(raw, w1r_ref) + mm(pe, w1p_ref) + b1_ref[...], 0.0)
    h2 = jnp.maximum(mm(h1, w2_ref) + b2_ref[...], 0.0)
    out = mm(h2, w3_ref)                                      # [T, 128]
    out = out[:, :out_cols] + b3_ref[...]                     # narrow epilogue
    o_ref[...] = jax.nn.sigmoid(out)                          # [T, out_cols]


# ---------------------------------------------------------------------------
# Wrapper: tiling, grid, pallas_call
# ---------------------------------------------------------------------------
def _fused_render_mlp(packed, params, *, matmul_dtype, tile_n=1024):
    s, phase, w1r, w1p, b1, w2, b2, w3, b3 = params
    n, raw_dim = packed.shape
    k_raw, pe_pad = s.shape
    feat_pad = w2.shape[0]
    out_mm = w3.shape[1]
    out_store = b3.shape[1]

    # Large tile (amortizes per-step overhead) but never more than ceil(n/2)
    # so the grid always has >= 2 steps (both v7x TensorCores get work).
    tile = max(8, min(tile_n, _round_up(pl.cdiv(n, 2), 8)))
    grid_n = pl.cdiv(n, tile)        # ragged last block handled by Pallas

    kernel = functools.partial(_render_mlp_kernel, matmul_dtype=matmul_dtype)

    n_eff = grid_n * tile
    flops = 2 * n_eff * (k_raw * pe_pad + k_raw * feat_pad
                         + pe_pad * feat_pad + feat_pad * feat_pad
                         + feat_pad * out_mm)
    transcendentals = n_eff * (pe_pad + out_store)
    w_bytes = sum(int(a.size) * a.dtype.itemsize for a in params)
    bytes_accessed = 4 * n * (raw_dim + out_store) + w_bytes

    return pl.pallas_call(
        kernel,
        out_shape=jax.ShapeDtypeStruct((n, out_store), jnp.float32),
        grid_spec=pltpu.PrefetchScalarGridSpec(
            num_scalar_prefetch=0,
            grid=(grid_n,),
            in_specs=[
                pl.BlockSpec((tile, raw_dim), lambda i: (i, 0)),      # packed raw
                pl.BlockSpec((k_raw, pe_pad), lambda i: (0, 0)),      # S
                pl.BlockSpec((1, pe_pad), lambda i: (0, 0)),          # phase
                pl.BlockSpec((k_raw, feat_pad), lambda i: (0, 0)),    # W1_raw
                pl.BlockSpec((pe_pad, feat_pad), lambda i: (0, 0)),   # W1_pe
                pl.BlockSpec((1, feat_pad), lambda i: (0, 0)),        # b1
                pl.BlockSpec((feat_pad, feat_pad), lambda i: (0, 0)), # W2
                pl.BlockSpec((1, feat_pad), lambda i: (0, 0)),        # b2
                pl.BlockSpec((feat_pad, out_mm), lambda i: (0, 0)),   # W3
                pl.BlockSpec((1, out_store), lambda i: (0, 0)),       # b3
            ],
            out_specs=pl.BlockSpec((tile, out_store), lambda i: (i, 0)),
        ),
        compiler_params=pltpu.CompilerParams(
            dimension_semantics=("parallel",),
            vmem_limit_bytes=32 * 1024 * 1024),
        cost_estimate=pl.CostEstimate(
            flops=int(flops), transcendentals=int(transcendentals),
            bytes_accessed=int(bytes_accessed)),
    )(packed, s, phase, w1r, w1p, b1, w2, b2, w3, b3)


# ---------------------------------------------------------------------------
# Render_MLP module (JAX)
# ---------------------------------------------------------------------------
class RenderMLP:
    def __init__(self, inChannel, outChannel, t_pe=6, fea_pe=6, pos_pe=6,
                 view_pe=6, featureC=128, key=None,
                 matmul_dtype=jnp.bfloat16, tile_n=1024):
        self.inChannel = inChannel
        self.outChannel = outChannel
        self.use_t = t_pe >= 0
        self.use_fea = fea_pe >= 0
        self.use_pos = pos_pe >= 0
        self.use_view = view_pe >= 0
        self.t_pe, self.fea_pe, self.pos_pe, self.view_pe = (
            t_pe, fea_pe, pos_pe, view_pe)
        self.matmul_dtype = matmul_dtype
        self.tile_n = tile_n

        # ---- raw-input packing order: [features, t, pts, viewdirs] ----
        raw_index = {}
        r = 0
        for c in range(inChannel):
            raw_index[("fea", c)] = r; r += 1
        if self.use_t:
            raw_index[("t", 0)] = r; r += 1
        if self.use_pos:
            for c in range(3):
                raw_index[("pos", c)] = r; r += 1
        if self.use_view:
            for c in range(3):
                raw_index[("view", c)] = r; r += 1
        self.raw_dim = r

        # ---- walk mlp_in columns in the exact PyTorch concat order ----
        raw_rows, pe_rows = [], []
        m = 0

        def add_raw(src, n):
            nonlocal m
            for c in range(n):
                raw_rows.append((m, raw_index[(src, c)])); m += 1

        def add_pe(src, n, freqs):
            nonlocal m
            for ph in (0.0, np.pi / 2.0):          # sin block, then cos block
                for c in range(n):                 # channel-major
                    for f in range(freqs):         # freq-minor
                        pe_rows.append((m, raw_index[(src, c)], 2.0 ** f, ph))
                        m += 1

        add_raw("fea", inChannel)
        if self.use_t:
            add_raw("t", 1)
            if t_pe > 0:
                add_pe("t", 1, t_pe)
        if self.use_fea and fea_pe > 0:
            add_pe("fea", inChannel, fea_pe)
        if self.use_pos:
            add_raw("pos", 3)
            if pos_pe > 0:
                add_pe("pos", 3, pos_pe)
        if self.use_view:
            add_raw("view", 3)
            if view_pe > 0:
                add_pe("view", 3, view_pe)
        self.in_mlpC = m

        # ---- padded dims: aligned MXU passes, narrow lane-dense-ish store ----
        self.k_raw = _round_up(max(self.raw_dim, 128), 128)
        self.pe_dim = len(pe_rows)
        self.pe_pad = _round_up(max(self.pe_dim, 1), 128)
        self.feat_pad = _round_up(max(featureC, 128), 128)
        self.out_mm = _round_up(max(outChannel, 128), 128)
        self.out_store = _round_up(max(outChannel, 1), 8)

        # ---- parameter init (mimics torch.nn.Linear uniform init) ----
        key = key if key is not None else jax.random.PRNGKey(42)
        ks = jax.random.split(key, 6)

        def linear_init(kw, kb, fan_in, fan_out):
            bound = 1.0 / (fan_in ** 0.5)
            w = jax.random.uniform(kw, (fan_in, fan_out), jnp.float32,
                                   -bound, bound)
            b = jax.random.uniform(kb, (1, fan_out), jnp.float32,
                                   -bound, bound)
            return w, b

        w1, b1 = linear_init(ks[0], ks[1], self.in_mlpC, featureC)
        w2, b2 = linear_init(ks[2], ks[3], featureC, featureC)
        w3, _ = linear_init(ks[4], ks[5], featureC, outChannel)
        b3 = jnp.zeros((1, outChannel), jnp.float32)   # constant_(bias, 0)
        self.params_raw = (w1, b1, w2, b2, w3, b3)

        # ---- repack: scale/phase matrix + split / padded weight blocks ----
        w1_np = np.asarray(w1)
        S = np.zeros((self.k_raw, self.pe_pad), np.float32)
        phase = np.zeros((1, self.pe_pad), np.float32)
        w1_raw = np.zeros((self.k_raw, self.feat_pad), np.float32)
        w1_pe = np.zeros((self.pe_pad, self.feat_pad), np.float32)
        for mlp_row, rc in raw_rows:
            w1_raw[rc, :featureC] = w1_np[mlp_row]
        for j, (mlp_row, rc, scale, ph) in enumerate(pe_rows):
            S[rc, j] = scale
            phase[0, j] = ph
            w1_pe[j, :featureC] = w1_np[mlp_row]

        w2_p = np.zeros((self.feat_pad, self.feat_pad), np.float32)
        w2_p[:featureC, :featureC] = np.asarray(w2)
        w3_p = np.zeros((self.feat_pad, self.out_mm), np.float32)
        w3_p[:featureC, :outChannel] = np.asarray(w3)
        b1_p = np.zeros((1, self.feat_pad), np.float32)
        b1_p[0, :featureC] = np.asarray(b1)[0]
        b2_p = np.zeros((1, self.feat_pad), np.float32)
        b2_p[0, :featureC] = np.asarray(b2)[0]
        b3_p = np.zeros((1, self.out_store), np.float32)
        b3_p[0, :outChannel] = np.asarray(b3)[0]

        self.params = (
            jnp.asarray(S), jnp.asarray(phase),
            jnp.asarray(w1_raw).astype(matmul_dtype),
            jnp.asarray(w1_pe).astype(matmul_dtype),
            jnp.asarray(b1_p),
            jnp.asarray(w2_p).astype(matmul_dtype),
            jnp.asarray(b2_p),
            jnp.asarray(w3_p).astype(matmul_dtype),
            jnp.asarray(b3_p),
        )

    def __call__(self, pts, viewdirs, features, frame_time):
        lead = pts.shape[:-1]

        def flat(x):
            return x.reshape((-1, x.shape[-1])).astype(jnp.float32)

        pieces = [flat(features)]                 # packing order == raw_index
        if self.use_t:
            pieces.append(flat(frame_time))
        if self.use_pos:
            pieces.append(flat(pts))
        if self.use_view:
            pieces.append(flat(viewdirs))
        packed = jnp.concatenate(pieces, axis=-1)            # [N, raw_dim]

        out = _fused_render_mlp(packed, self.params,
                                matmul_dtype=self.matmul_dtype,
                                tile_n=self.tile_n)
        out = out[:, :self.outChannel]
        return out.reshape(lead + (self.outChannel,))


# ---------------------------------------------------------------------------
# Pure-JAX reference (no Pallas), high-precision matmuls, for sanity checks
# ---------------------------------------------------------------------------
def _ref_forward(model, pts, viewdirs, features, frame_time):
    indata = [features]
    if model.use_t:
        indata.append(frame_time)
        if model.t_pe > 0:
            indata.append(positional_encoding(frame_time, model.t_pe))
    if model.use_fea and model.fea_pe > 0:
        indata.append(positional_encoding(features, model.fea_pe))
    if model.use_pos:
        indata.append(pts)
        if model.pos_pe > 0:
            indata.append(positional_encoding(pts, model.pos_pe))
    if model.use_view:
        indata.append(viewdirs)
        if model.view_pe > 0:
            indata.append(positional_encoding(viewdirs, model.view_pe))
    x = jnp.concatenate(indata, axis=-1)
    w1, b1, w2, b2, w3, b3 = model.params_raw
    hp = jax.lax.Precision.HIGHEST
    h1 = jnp.maximum(jnp.dot(x, w1, precision=hp) + b1, 0.0)
    h2 = jnp.maximum(jnp.dot(h1, w2, precision=hp) + b2, 0.0)
    return jax.nn.sigmoid(jnp.dot(h2, w3, precision=hp) + b3)


if __name__ == "__main__":
    # Small shapes.  N deliberately NOT a tile multiple so the ragged last
    # block path is exercised.
    N = 200
    inChannel = 4
    outChannel = 3
    featureC = 32

    key = jax.random.PRNGKey(0)
    k1, k2, k3, k4 = jax.random.split(key, 4)
    pts = jax.random.uniform(k1, (N, 3), jnp.float32, -1.0, 1.0)
    viewdirs = jax.random.uniform(k2, (N, 3), jnp.float32, -1.0, 1.0)
    features = jax.random.uniform(k3, (N, inChannel), jnp.float32, -1.0, 1.0)
    frame_time = jax.random.uniform(k4, (N, 1), jnp.float32)

    # f32 matmul path (strict-ish check).
    model_f32 = RenderMLP(inChannel, outChannel, t_pe=6, fea_pe=6, pos_pe=6,
                          view_pe=6, featureC=featureC,
                          key=jax.random.PRNGKey(42),
                          matmul_dtype=jnp.float32)
    out_f32 = jax.block_until_ready(model_f32(pts, viewdirs, features,
                                              frame_time))
    ref_f32 = jax.block_until_ready(
        _ref_forward(model_f32, pts, viewdirs, features, frame_time))
    assert out_f32.shape == (N, outChannel), out_f32.shape
    assert bool(jnp.all(jnp.isfinite(out_f32)))
    err_f32 = float(jnp.max(jnp.abs(out_f32 - ref_f32)))
    assert err_f32 < 1e-2, err_f32

    # Default path: bf16 matmuls (MXU-native on v5e/v6e/v7x), looser tolerance.
    model_bf16 = RenderMLP(inChannel, outChannel, t_pe=6, fea_pe=6, pos_pe=6,
                           view_pe=6, featureC=featureC,
                           key=jax.random.PRNGKey(42))
    out_bf16 = jax.block_until_ready(model_bf16(pts, viewdirs, features,
                                                frame_time))
    ref_bf16 = jax.block_until_ready(
        _ref_forward(model_bf16, pts, viewdirs, features, frame_time))
    assert out_bf16.shape == (N, outChannel), out_bf16.shape
    assert bool(jnp.all(jnp.isfinite(out_bf16)))
    err_bf16 = float(jnp.max(jnp.abs(out_bf16 - ref_bf16)))
    assert err_bf16 < 5e-2, err_bf16

    print("KERNEL_OK")
</pallas_src>

<mosaic_0001>
module attributes {stable_mosaic.version = 11 : i64} {
  func.func @_render_mlp_kernel(%arg0: i32, %arg1: memref<104x11xf32, #tpu.memory_space<vmem>>, %arg2: memref<128x256xf32, #tpu.memory_space<vmem>>, %arg3: memref<1x256xf32, #tpu.memory_space<vmem>>, %arg4: memref<128x128xf32, #tpu.memory_space<vmem>>, %arg5: memref<256x128xf32, #tpu.memory_space<vmem>>, %arg6: memref<1x128xf32, #tpu.memory_space<vmem>>, %arg7: memref<128x128xf32, #tpu.memory_space<vmem>>, %arg8: memref<1x128xf32, #tpu.memory_space<vmem>>, %arg9: memref<128x128xf32, #tpu.memory_space<vmem>>, %arg10: memref<1x8xf32, #tpu.memory_space<vmem>>, %arg11: memref<104x8xf32, #tpu.memory_space<vmem>>) attributes {dimension_semantics = [#tpu.dimension_semantics<parallel>], iteration_bounds = array<i64: 2>, scalar_prefetch = 0 : i64, scratch_operands = 0 : i64, tpu.core_type = #tpu.core_type<tc>, window_params = [{transform_indices = @transform_0, window_bounds = array<i64: 104, 11>}, {pipeline_mode = #tpu.pipeline_mode<synchronous>, transform_indices = @transform_1, window_bounds = array<i64: 128, 256>}, {pipeline_mode = #tpu.pipeline_mode<synchronous>, transform_indices = @transform_2, window_bounds = array<i64: 1, 256>}, {pipeline_mode = #tpu.pipeline_mode<synchronous>, transform_indices = @transform_3, window_bounds = array<i64: 128, 128>}, {pipeline_mode = #tpu.pipeline_mode<synchronous>, transform_indices = @transform_4, window_bounds = array<i64: 256, 128>}, {pipeline_mode = #tpu.pipeline_mode<synchronous>, transform_indices = @transform_5, window_bounds = array<i64: 1, 128>}, {pipeline_mode = #tpu.pipeline_mode<synchronous>, transform_indices = @transform_6, window_bounds = array<i64: 128, 128>}, {pipeline_mode = #tpu.pipeline_mode<synchronous>, transform_indices = @transform_7, window_bounds = array<i64: 1, 128>}, {pipeline_mode = #tpu.pipeline_mode<synchronous>, transform_indices = @transform_8, window_bounds = array<i64: 128, 128>}, {pipeline_mode = #tpu.pipeline_mode<synchronous>, transform_indices = @transform_9, window_bounds = array<i64: 1, 8>}, {transform_indices = @transform_10, window_bounds = array<i64: 104, 8>}]} {
    %c0 = arith.constant 0 : index
    %c0_0 = arith.constant 0 : index
    %0 = vector.load %arg1[%c0, %c0_0] : memref<104x11xf32, #tpu.memory_space<vmem>>, vector<104x11xf32>
    %cst = arith.constant 0.000000e+00 : f32
    %1 = vector.broadcast %cst : f32 to vector<104x117xf32>
    %2 = tpu.concatenate %0, %1 in 1 : vector<104x11xf32>, vector<104x117xf32> -> vector<104x128xf32>
    %c0_1 = arith.constant 0 : index
    %c0_2 = arith.constant 0 : index
    %3 = vector.load %arg2[%c0_1, %c0_2] : memref<128x256xf32, #tpu.memory_space<vmem>>, vector<128x256xf32>
    %cst_3 = arith.constant dense<0.000000e+00> : vector<104x256xf32>
    %4 = tpu.matmul %2, %3, %cst_3 {dimension_numbers = #tpu.dot_dimension_numbers<[1], [0], [0], [1], [0, 0, 1, 1], [], []>} : vector<104x128xf32>, vector<128x256xf32>, vector<104x256xf32> -> vector<104x256xf32>
    %c0_4 = arith.constant 0 : index
    %c0_5 = arith.constant 0 : index
    %5 = vector.load %arg3[%c0_4, %c0_5] : memref<1x256xf32, #tpu.memory_space<vmem>>, vector<1x256xf32>
    %6 = vector.broadcast %5 : vector<1x256xf32> to vector<104x256xf32>
    %7 = arith.addf %4, %6 : vector<104x256xf32>
    %8 = math.sin %7 : vector<104x256xf32>
    %c0_6 = arith.constant 0 : index
    %c0_7 = arith.constant 0 : index
    %9 = vector.load %arg4[%c0_6, %c0_7] : memref<128x128xf32, #tpu.memory_space<vmem>>, vector<128x128xf32>
    %cst_8 = arith.constant dense<0.000000e+00> : vector<104x128xf32>
    %10 = tpu.matmul %2, %9, %cst_8 {dimension_numbers = #tpu.dot_dimension_numbers<[1], [0], [0], [1], [0, 0, 1, 1], [], []>} : vector<104x128xf32>, vector<128x128xf32>, vector<104x128xf32> -> vector<104x128xf32>
    %c0_9 = arith.constant 0 : index
    %c0_10 = arith.constant 0 : index
    %11 = vector.load %arg5[%c0_9, %c0_10] : memref<256x128xf32, #tpu.memory_space<vmem>>, vector<256x128xf32>
    %cst_11 = arith.constant dense<0.000000e+00> : vector<104x128xf32>
    %12 = tpu.matmul %8, %11, %cst_11 {dimension_numbers = #tpu.dot_dimension_numbers<[1], [0], [0], [1], [0, 0, 1, 1], [], []>} : vector<104x256xf32>, vector<256x128xf32>, vector<104x128xf32> -> vector<104x128xf32>
    %13 = arith.addf %10, %12 : vector<104x128xf32>
    %c0_12 = arith.constant 0 : index
    %c0_13 = arith.constant 0 : index
    %14 = vector.load %arg6[%c0_12, %c0_13] : memref<1x128xf32, #tpu.memory_space<vmem>>, vector<1x128xf32>
    %15 = vector.broadcast %14 : vector<1x128xf32> to vector<104x128xf32>
    %16 = arith.addf %13, %15 : vector<104x128xf32>
    %cst_14 = arith.constant 0.000000e+00 : f32
    %17 = vector.broadcast %cst_14 : f32 to vector<104x128xf32>
    %18 = arith.maximumf %16, %17 : vector<104x128xf32>
    %c0_15 = arith.constant 0 : index
    %c0_16 = arith.constant 0 : index
    %19 = vector.load %arg7[%c0_15, %c0_16] : memref<128x128xf32, #tpu.memory_space<vmem>>, vector<128x128xf32>
    %cst_17 = arith.constant dense<0.000000e+00> : vector<104x128xf32>
    %20 = tpu.matmul %18, %19, %cst_17 {dimension_numbers = #tpu.dot_dimension_numbers<[1], [0], [0], [1], [0, 0, 1, 1], [], []>} : vector<104x128xf32>, vector<128x128xf32>, vector<104x128xf32> -> vector<104x128xf32>
    %c0_18 = arith.constant 0 : index
    %c0_19 = arith.constant 0 : index
    %21 = vector.load %arg8[%c0_18, %c0_19] : memref<1x128xf32, #tpu.memory_space<vmem>>, vector<1x128xf32>
    %22 = vector.broadcast %21 : vector<1x128xf32> to vector<104x128xf32>
    %23 = arith.addf %20, %22 : vector<104x128xf32>
    %cst_20 = arith.constant 0.000000e+00 : f32
    %24 = vector.broadcast %cst_20 : f32 to vector<104x128xf32>
    %25 = arith.maximumf %23, %24 : vector<104x128xf32>
    %c0_21 = arith.constant 0 : index
    %c0_22 = arith.constant 0 : index
    %26 = vector.load %arg9[%c0_21, %c0_22] : memref<128x128xf32, #tpu.memory_space<vmem>>, vector<128x128xf32>
    %cst_23 = arith.constant dense<0.000000e+00> : vector<104x128xf32>
    %27 = tpu.matmul %25, %26, %cst_23 {dimension_numbers = #tpu.dot_dimension_numbers<[1], [0], [0], [1], [0, 0, 1, 1], [], []>} : vector<104x128xf32>, vector<128x128xf32>, vector<104x128xf32> -> vector<104x128xf32>
    %28 = vector.extract_strided_slice %27 {offsets = [0, 0], sizes = [104, 8], strides = [1, 1]} : vector<104x128xf32> to vector<104x8xf32>
    %c0_24 = arith.constant 0 : index
    %c0_25 = arith.constant 0 : index
    %29 = vector.load %arg10[%c0_24, %c0_25] : memref<1x8xf32, #tpu.memory_space<vmem>>, vector<1x8xf32>
    %30 = vector.broadcast %29 : vector<1x8xf32> to vector<104x8xf32>
    %31 = arith.addf %28, %30 : vector<104x8xf32>
    %32 = arith.negf %31 : vector<104x8xf32>
    %33 = math.exp %32 : vector<104x8xf32>
    %cst_26 = arith.constant 1.000000e+00 : f32
    %34 = vector.broadcast %cst_26 : f32 to vector<104x8xf32>
    %35 = arith.addf %34, %33 : vector<104x8xf32>
    %36 = arith.divf %34, %35 : vector<104x8xf32>
    %c0_27 = arith.constant 0 : index
    %c0_28 = arith.constant 0 : index
    %37 = vector.load %arg11[%c0_27, %c0_28] : memref<104x8xf32, #tpu.memory_space<vmem>>, vector<104x8xf32>
    tpu.vector_store %arg11[%c0_27, %c0_28], %36 {strides = array<i32>} : memref<104x8xf32, #tpu.memory_space<vmem>>, vector<104x8xf32>,
    return
  }
  func.func @transform_0(%arg0: i32) -> (i32, i32) {
    %c0_i32 = arith.constant 0 : i32
    %c0_i32_0 = arith.constant 0 : i32
    return %arg0, %c0_i32 : i32, i32
  }
  func.func @transform_1(%arg0: i32) -> (i32, i32) {
    %c0_i32 = arith.constant 0 : i32
    %c0_i32_0 = arith.constant 0 : i32
    %c0_i32_1 = arith.constant 0 : i32
    return %c0_i32, %c0_i32_0 : i32, i32
  }
  func.func @transform_2(%arg0: i32) -> (i32, i32) {
    %c0_i32 = arith.constant 0 : i32
    %c0_i32_0 = arith.constant 0 : i32
    %c0_i32_1 = arith.constant 0 : i32
    return %c0_i32, %c0_i32_0 : i32, i32
  }
  func.func @transform_3(%arg0: i32) -> (i32, i32) {
    %c0_i32 = arith.constant 0 : i32
    %c0_i32_0 = arith.constant 0 : i32
    %c0_i32_1 = arith.constant 0 : i32
    return %c0_i32, %c0_i32_0 : i32, i32
  }
  func.func @transform_4(%arg0: i32) -> (i32, i32) {
    %c0_i32 = arith.constant 0 : i32
    %c0_i32_0 = arith.constant 0 : i32
    %c0_i32_1 = arith.constant 0 : i32
    return %c0_i32, %c0_i32_0 : i32, i32
  }
  func.func @transform_5(%arg0: i32) -> (i32, i32) {
    %c0_i32 = arith.constant 0 : i32
    %c0_i32_0 = arith.constant 0 : i32
    %c0_i32_1 = arith.constant 0 : i32
    return %c0_i32, %c0_i32_0 : i32, i32
  }
  func.func @transform_6(%arg0: i32) -> (i32, i32) {
    %c0_i32 = arith.constant 0 : i32
    %c0_i32_0 = arith.constant 0 : i32
    %c0_i32_1 = arith.constant 0 : i32
    return %c0_i32, %c0_i32_0 : i32, i32
  }
  func.func @transform_7(%arg0: i32) -> (i32, i32) {
    %c0_i32 = arith.constant 0 : i32
    %c0_i32_0 = arith.constant 0 : i32
    %c0_i32_1 = arith.constant 0 : i32
    return %c0_i32, %c0_i32_0 : i32, i32
  }
  func.func @transform_8(%arg0: i32) -> (i32, i32) {
    %c0_i32 = arith.constant 0 : i32
    %c0_i32_0 = arith.constant 0 : i32
    %c0_i32_1 = arith.constant 0 : i32
    return %c0_i32, %c0_i32_0 : i32, i32
  }
  func.func @transform_9(%arg0: i32) -> (i32, i32) {
    %c0_i32 = arith.constant 0 : i32
    %c0_i32_0 = arith.constant 0 : i32
    %c0_i32_1 = arith.constant 0 : i32
    return %c0_i32, %c0_i32_0 : i32, i32
  }
  func.func @transform_10(%arg0: i32) -> (i32, i32) {
    %c0_i32 = arith.constant 0 : i32
    %c0_i32_0 = arith.constant 0 : i32
    return %arg0, %c0_i32 : i32, i32
  }
}

</mosaic_0001>

<bundles_post_ra>
// kernel: tpu_custom_call.1
= control target key start
LH: loop header
LB: loop body
LE: loop exit
PB: predicated region body
PF: predicated region fallthrough
CT: control target
= control target key end

     0   :  { %s8992_s0 = inlined_call_operand.vmem [shape: f32[200,11], index: 0, kind: input, shape index: {}]   ;;  %s8993_s1 = inlined_call_operand.hbm [shape: f32[128,256], index: 1, kind: input, shape index: {}]   ;;  %s8994_s2 = inlined_call_operand.vmem [shape: f32[1,256], index: 2, kind: input, shape index: {}]   ;;  %s8995_s3 = inlined_call_operand.vmem [shape: f32[128,128], index: 3, kind: input, shape index: {}]   ;;  %s8996_s4 = inlined_call_operand.hbm [shape: f32[256,128], index: 4, kind: input, shape index: {}]   ;;  %s8997_s5 = inlined_call_operand.hbm [shape: f32[1,128], index: 5, kind: input, shape index: {}]   ;;  %s8998_s6 = inlined_call_operand.hbm [shape: f32[128,128], index: 6, kind: input, shape index: {}]   ;;  %s8999_s7 = inlined_call_operand.hbm [shape: f32[1,128], index: 7, kind: input, shape index: {}]   ;;  %s9000_s8 = inlined_call_operand.vmem [shape: f32[128,128], index: 8, kind: input, shape index: {}]   ;;  %s9001_s9 = inlined_call_operand.vmem [shape: f32[1,8], index: 9, kind: input, shape index: {}]   ;;  %s9002_s10 = inlined_call_operand.vmem [shape: f32[200,8], index: 10, kind: output, shape index: {}]  }
   0x1   :  { %9151 = sst [smem:[#allocation80_spill]] %s8996_s4 }
   0x2   :  { %9152 = sst [smem:[#allocation81_spill]] %s8998_s6 }
   0x3   :  { %15 = vsyncpa [#allocation3], 0 }
   0x4   :  { %16 = vsyncpa [#allocation5], 0 }
   0x5   :  { %17 = vsyncpa [#allocation8], 0  ;;  %s5889_s13 = smov 0   ;;  %s5891_s14 = smov 0  }
   0x6   :  { %s5893_s15 = smov 0  }
   0x7 LB: > { %9153 = sst [smem:[#allocation14_spill]] %s5778_s14  ;;  %s5902_s16 = sadd.s32 4294967295, %s5782_s15   ;;  %s5782_s15 = sphi %s5893_s15, %s9439_s15   ;;  %s5778_s14 = sphi %s5891_s14, %s9441_s14   ;;  %s5774_s13 = sphi %s5889_s13, %s9440_s13  }
   0x8   : > { %s5904_s17 = sadd.s32 1, %s5782_s15   ;;  %s245_s19 = sadd.s32 1, %s5778_s14 }
   0x9   : > { %9154 = sst [smem:[#allocation15_spill]] %s5904_s17  ;;  %s242_s18 = ssub.s32 %s5782_s15, %s5904_s17 }
   0xa   : > { %p243_p0 = scmp.eq.s32.totalorder %s242_s18, 0  ;;  %p255_p1 = scmp.ne.s32.totalorder %s5778_s14, %s5774_s13 }
   0xb   : > { %p256_p2 = scmp.eq.s32.totalorder %s5902_s16, 1  ;;  %p4449_p3 = scmp.ge.s32.totalorder %s5782_s15, 1 }
   0xc   : > { %s5912_s20 = scalar_select %p243_p0, %s5778_s14, %s245_s19  }
   0xd   : > { %p5914_p4 = por %p256_p2, %p255_p1  ;;  %p269_p5 = scmp.lt.s32.totalorder %s5782_s15, 3 }
   0xe   : > { %9155 = sst [smem:[#allocation16_spill]] %s5912_s20  ;;  %p9003_p6 = scmp.eq.s32.totalorder %s5902_s16, 0 }
   0xf   : > { %s9156_s21 = scalar_select %p5914_p4, 1, 0 }
  0x10   : > { %p5919_p7 = pnand %p4449_p3, %p269_p5  ;;  %s5816_s23 = smov [#allocation4]  }
  0x11   : > { %s300_s24 = sshll.u32 %s5816_s23, 4  ;;  %s5817_s26 = smov [#allocation7]   ;;  %s5925_s24 = int_to_ptr.vmem [resolvable:$true] %s300_s24 }
  0x12   : > { %s9157_s22 = scalar_select %p5919_p7, 1, 0 }
  0x13   : > { %p5270_p8 = pneg %p5919_p7  ;;  %s324_s27 = sshll.u32 %s5817_s26, 4  ;;  %s5933_s27 = int_to_ptr.vmem [resolvable:$true] %s324_s27 }
  0x14   : > { %s5818_s28 = smov [#allocation2]   ;;  %s9159_s4 = sld [smem:[#allocation80_spill]] }
  0x15   : > { %p5929_p9 = pnand %p9003_p6, %p5270_p8  ;;  %s5935_s29 = sshll.u32 %s5818_s28, 4  ;;  %s282_s29 = int_to_ptr.vmem [resolvable:$true] %s5935_s29 }
  0x17   : > { %p5945_p11 = pneg %p5929_p9 }
  0x1a   : > { %s5576_s12 = scalar_lea.hbm %s9159_s4, 4096 }
  0x1b   : > { %p5577_p10 = scmp.ne.s32.totalorder %s9159_s4, %s5576_s12  ;;  %p5583_p0 = scmp.lt.u32.totalorder %s5576_s12, %s9159_s4 }
  0x1d   : > { %p5579_p12 = pnand %p5945_p11, %p5577_p10 }
  0x1f   : > { %p5580_p13 = pneg %p5579_p12 }
  0x21   : > { %p5585_p1 = pnand %p5583_p0, %p5580_p13 }
  0x23   : > { %5588 = shalt.err (!%p5585_p1)
}
  0x24   : > { %s5589_s28 = scalar_lea.vmem %s5925_s24, 4096  ;;  %p5597_p8 = scmp.lt.s32.totalorder %s5925_s24, %s5925_s24 }
  0x25   : > { %p5590_p2 = scmp.ne.s32.totalorder %s5925_s24, %s5589_s28  ;;  %p5598_p6 = scmp.lt.s32.totalorder %s5589_s28, %s5589_s28 }
  0x27   : > { %p5592_p3 = pnand %p5590_p2, %p5945_p11  ;;  %p5599_p10 = por %p5598_p6, %p5597_p8 }
  0x29   : > { %p5593_p5 = pneg %p5592_p3 }
  0x2b   : > { %p5600_p12 = pnand %p5599_p10, %p5593_p5 }
  0x2d   : > { %5603 = shalt.err (!%p5600_p12)
}
  0x2e   : > { %s5819_s30 = smov 128   ;;  %s5820_s11 = smov 8  }
  0x2f   : > { %5276 = dma.hbm_to_vmem [thread:$0]  (!%p5929_p9), %s9159_s4, 4096, %s5925_s24, [#allocation5], %s5819_s30, %s5819_s30, %s5820_s11  }
  0x30   : > { %s9161_s6 = sld [smem:[#allocation81_spill]] }
  0x36   : > { %s5604_s26 = scalar_lea.hbm %s9161_s6, 2048 }
  0x37   : > { %p5605_p6 = scmp.ne.s32.totalorder %s9161_s6, %s5604_s26  ;;  %p5611_p1 = scmp.lt.u32.totalorder %s5604_s26, %s9161_s6 }
  0x39   : > { %p5607_p13 = pnand %p5605_p6, %p5945_p11 }
  0x3b   : > { %p5608_p0 = pneg %p5607_p13 }
  0x3d   : > { %p5613_p2 = pnand %p5611_p1, %p5608_p0 }
  0x3f   : > { %5616 = shalt.err (!%p5613_p2)
}
  0x40   : > { %s5617_s24 = scalar_lea.vmem %s5933_s27, 2048  ;;  %p5625_p10 = scmp.lt.s32.totalorder %s5933_s27, %s5933_s27 }
  0x41   : > { %p5618_p3 = scmp.ne.s32.totalorder %s5933_s27, %s5617_s24  ;;  %p5626_p12 = scmp.lt.s32.totalorder %s5617_s24, %s5617_s24 }
  0x43   : > { %p5620_p5 = pnand %p5618_p3, %p5945_p11  ;;  %p5627_p6 = por %p5626_p12, %p5625_p10 }
  0x45   : > { %p5621_p8 = pneg %p5620_p5 }
  0x47   : > { %p5628_p13 = pnand %p5627_p6, %p5621_p8 }
  0x49   : > { %5631 = shalt.err (!%p5628_p13)
}
  0x4a   : > { %5282 = dma.hbm_to_vmem [thread:$0]  (!%p5929_p9), %s9161_s6, 2048, %s5933_s27, [#allocation8], %s5819_s30, %s5819_s30, %s5820_s11  }
  0x4b   : > { %s5632_s15 = scalar_lea.hbm %s8993_s1, 4096 }
  0x4c   : > { %p5633_p0 = scmp.ne.s32.totalorder %s8993_s1, %s5632_s15  ;;  %p5639_p3 = scmp.lt.u32.totalorder %s5632_s15, %s8993_s1 }
  0x4e   : > { %p5635_p1 = pnand %p5633_p0, %p5945_p11 }
  0x50   : > { %p5636_p2 = pneg %p5635_p1 }
  0x52   : > { %p5641_p5 = pnand %p5639_p3, %p5636_p2 }
  0x54   : > { %5644 = shalt.err (!%p5641_p5)
}
  0x55   : > { %s5645_s24 = scalar_lea.vmem %s282_s29, 4096  ;;  %p5653_p6 = scmp.lt.s32.totalorder %s282_s29, %s282_s29 }
  0x56   : > { %p5646_p8 = scmp.ne.s32.totalorder %s282_s29, %s5645_s24  ;;  %p5654_p13 = scmp.lt.s32.totalorder %s5645_s24, %s5645_s24 }
  0x58   : > { %p5648_p10 = pnand %p5646_p8, %p5945_p11  ;;  %p5655_p4 = por %p5654_p13, %p5653_p6 }
  0x5a   : > { %p5649_p12 = pneg %p5648_p10 }
  0x5c   : > { %p5656_p7 = pnand %p5655_p4, %p5649_p12 }
  0x5e   : > { %5659 = shalt.err (!%p5656_p7)
}
  0x5f   : > { %s5821_s27 = smov 256   ;;  %s5822_s30 = smov 16  }
  0x60   : > { %5273 = dma.hbm_to_vmem [thread:$0]  (!%p5929_p9), %s8993_s1, 4096, %s282_s29, [#allocation3], %s5821_s27, %s5821_s27, %s5822_s30  }
  0x61   : > { %s5823_s17 = smov [#allocation6]   ;;  %s5824_s12 = smov [#allocation9]  }
  0x62   : > { %s314_s20 = sshll.u32 %s5823_s17, 4  ;;  %s338_s15 = sshll.u32 %s5824_s12, 4  ;;  %s315_s20 = int_to_ptr.vmem [resolvable:$true] %s314_s20  ;;  %s339_s15 = int_to_ptr.vmem [resolvable:$true] %s338_s15 }
  0x63   : > { %s5660_s26 = scalar_lea.hbm %s8997_s5, 16 }
  0x64   : > { %p5661_p4 = scmp.ne.s32.totalorder %s8997_s5, %s5660_s26  ;;  %p5667_p1 = scmp.lt.u32.totalorder %s5660_s26, %s8997_s5 }
  0x66   : > { %p5663_p7 = pnand %p5661_p4, %p5945_p11 }
  0x68   : > { %p5664_p0 = pneg %p5663_p7 }
  0x6a   : > { %p5669_p2 = pnand %p5667_p1, %p5664_p0 }
  0x6c   : > { %5672 = shalt.err (!%p5669_p2)
}
  0x6d   : > { %s5673_s29 = scalar_lea.vmem %s315_s20, 16  ;;  %s5680_s27 = scalar_lea.vmem %s315_s20, 32 }
  0x6e   : > { %p5674_p3 = scmp.ne.s32.totalorder %s315_s20, %s5673_s29  ;;  %p5681_p10 = scmp.lt.s32.totalorder %s315_s20, %s315_s20 }
  0x6f   : > { %p5682_p12 = scmp.lt.s32.totalorder %s5680_s27, %s5673_s29 }
  0x70   : > { %p5676_p5 = pnand %p5674_p3, %p5945_p11 }
  0x71   : > { %p5683_p6 = por %p5682_p12, %p5681_p10 }
  0x72   : > { %p5677_p8 = pneg %p5676_p5 }
  0x74   : > { %p5684_p13 = pnand %p5683_p6, %p5677_p8 }
  0x76   : > { %5687 = shalt.err (!%p5684_p13)
}
  0x77   : > { %5279 = dma.hbm_to_vmem [thread:$0]  (!%p5929_p9), %s8997_s5, 16, %s315_s20, [#allocation5]  }
  0x78   : > { %s5688_s14 = scalar_lea.hbm %s8999_s7, 16 }
  0x79   : > { %p5689_p4 = scmp.ne.s32.totalorder %s8999_s7, %s5688_s14  ;;  %p5695_p1 = scmp.lt.u32.totalorder %s5688_s14, %s8999_s7 }
  0x7b   : > { %p5691_p7 = pnand %p5689_p4, %p5945_p11 }
  0x7d   : > { %p5692_p0 = pneg %p5691_p7 }
  0x7f   : > { %p5697_p2 = pnand %p5695_p1, %p5692_p0 }
  0x81   : > { %5700 = shalt.err (!%p5697_p2)
}
  0x82   : > { %s5701_s26 = scalar_lea.vmem %s339_s15, 16  ;;  %s5708_s20 = scalar_lea.vmem %s339_s15, 32 }
  0x83   : > { %p5702_p3 = scmp.ne.s32.totalorder %s339_s15, %s5701_s26  ;;  %p5709_p10 = scmp.lt.s32.totalorder %s339_s15, %s339_s15 }
  0x84   : > { %p5710_p12 = scmp.lt.s32.totalorder %s5708_s20, %s5701_s26 }
  0x85   : > { %p5704_p5 = pnand %p5702_p3, %p5945_p11 }
  0x86   : > { %p5711_p6 = por %p5710_p12, %p5709_p10 }
  0x87   : > { %p5705_p8 = pneg %p5704_p5 }
  0x89   : > { %p5712_p13 = pnand %p5711_p6, %p5705_p8 }
  0x8b   : > { %5715 = shalt.err (!%p5712_p13)
}
  0x8c   : > { %5285 = dma.hbm_to_vmem [thread:$0]  (!%p5929_p9), %s8999_s7, 16, %s339_s15, [#allocation8]  }
  0x8d   : > { %p9162_p4 = scmp.ne.s32.totalorder %s9157_s22, 0 }
  0x8f   : > { %374 = sbr.rel (%p9162_p4) target bundleno = 1823 (0x71f), region = 60 }
  0x96   : > { %p9163_p7 = scmp.eq.s32.totalorder %s5902_s16, 0 }
  0x98   : > { %5761 = dma.done.wait (%p9163_p7), [#allocation3], 4096   ;;  %p9164_p11 = pmov %p9163_p7 }
  0x99   : > { %p9165_p0 = pmov %p9163_p7 }
  0x9a   : > { %5763 = vsyncadd (%p9164_p11), [#allocation3], 4294963200 }
  0x9b   : > { %5765 = dma.done.wait (%p9165_p0), [#allocation5], 4112   ;;  %p9166_p1 = pmov %p9165_p0 }
  0x9c   : > { %p9167_p2 = pmov %p9165_p0 }
  0x9d   : > { %5767 = vsyncadd (%p9166_p1), [#allocation5], 4294963184 }
  0x9e   : > { %5769 = dma.done.wait (%p9167_p2), [#allocation8], 2064   ;;  %p9168_p9 = pmov %p9165_p0 }
  0x9f   : > { %v9011_v0 = vmov 0.0   ;;  %v478_v1 = vld [vmem:[#allocation2 + $0x8] sm:$0xff]  ;;  %v480_v2 = vld [vmem:[#allocation2 + $0x18] sm:$0xff]  ;;  %v477_v3 = vld [vmem:[#allocation2] sm:$0xff]  ;;  %s6060_s22 = smul.u32 13, %s5902_s16  ;;  %vm463_vm0 = vcmask 89088   ;;  %v511_v62 = vlaneseq }
  0xa0   : > { %5771 = vsyncadd (%p9168_p9), [#allocation8], 4294965232  ;;  %585 = vmatprep.mubr.f32.mxu0 %v9011_v0  ;;  %v4993_v4 = vpack.c.bf16 %v480_v2, %v478_v1  ;;  %v479_v5 = vld [vmem:[#allocation2 + $0x10] sm:$0xff]  ;;  %v482_v6 = vld [vmem:[#allocation2 + $0x28] sm:$0xff]  ;;  %s428_s15 = sand.u32 1, %s5774_s13   ;;  %p9435_p5 = scmp.ne.s32.totalorder %s9156_s21, 0 }
  0xa1   : > { %v484_v7 = vld [vmem:[#allocation2 + $0x38] sm:$0xff]  ;;  %v4995_v8 = vpack.c.bf16 %v479_v5, %v477_v3  ;;  %v481_v10 = vld [vmem:[#allocation2 + $0x20] sm:$0xff]  ;;  %v483_v11 = vld [vmem:[#allocation2 + $0x30] sm:$0xff]  ;;  %p436_p3 = scmp.lt.s32.totalorder %s6060_s22, 24  ;;  %v512_v63 = vshrl.u32 %v511_v62, 7  ;;  %s5145_s29 = smul.u32 104, %s428_s15 }
  0xa2   : > { %v4997_v9 = vpack.c.bf16 %v484_v7, %v482_v6  ;;  %v486_v12 = vld [vmem:[#allocation2 + $0x48] sm:$0xff]  ;;  %4994 = vmatprep.subr.bf16.mxu0 %v4993_v4  ;;  %v488_v13 = vld [vmem:[#allocation2 + $0x58] sm:$0xff]  ;;  %v4999_v14 = vpack.c.bf16 %v483_v11, %v481_v10  ;;  %v485_v16 = vld [vmem:[#allocation2 + $0x40] sm:$0xff]  ;;  %s4621_s30 = smul.u32 (%p9435_p5), 104, %s5902_s16 }
  0xa3   : > { %4996 = vmatpush1.bf16.msra.mxu0 %v4995_v8  ;;  %v5001_v15 = vpack.c.bf16 %v488_v13, %v486_v12  ;;  %v487_v17 = vld [vmem:[#allocation2 + $0x50] sm:$0xff]  ;;  %v490_v18 = vld [vmem:[#allocation2 + $0x68] sm:$0xff]  ;;  %v492_v19 = vld [vmem:[#allocation2 + $0x78] sm:$0xff]  ;;  %s437_s25 = scalar_select %p436_p3, %s6060_s22, 24  ;;  %v513_v1 = vsub.s32 0, %v512_v63  ;;  %v517_v7 = vsub.s32 1, %v512_v63 }
  0xa4   : > { %4998 = vmatprep.subr.bf16.mxu0 %v4997_v9  ;;  %v5003_v20 = vpack.c.bf16 %v487_v17, %v485_v16  ;;  %v5005_v21 = vpack.c.bf16 %v492_v19, %v490_v18  ;;  %v489_v22 = vld [vmem:[#allocation2 + $0x60] sm:$0xff]  ;;  %v491_v23 = vld [vmem:[#allocation2 + $0x70] sm:$0xff]  ;;  %v494_v24 = vld [vmem:[#allocation2 + $0x88] sm:$0xff]  ;;  %s8869_s13 = scalar_lea.vmem [#allocation10], %s5145_s29   ;;  %s8910_s6 = scalar_lea.vmem (%p9435_p5), %s9002_s10, %s4621_s30  }
  0xa5   : > { %v496_v25 = vld [vmem:[#allocation2 + $0x98] sm:$0xff]  ;;  %v5007_v26 = vpack.c.bf16 %v491_v23, %v489_v22  ;;  %v493_v28 = vld [vmem:[#allocation2 + $0x80] sm:$0xff]  ;;  %v495_v29 = vld [vmem:[#allocation2 + $0x90] sm:$0xff]  ;;  %s4462_s19 = sshll.u32 %s437_s25, 3 }
  0xa6   : > { %v5009_v27 = vpack.c.bf16 %v496_v25, %v494_v24  ;;  %v498_v30 = vld [vmem:[#allocation2 + $0xa8] sm:$0xff]  ;;  %v500_v31 = vld [vmem:[#allocation2 + $0xb8] sm:$0xff]  ;;  %v5011_v32 = vpack.c.bf16 %v495_v29, %v493_v28  ;;  %v497_v34 = vld [vmem:[#allocation2 + $0xa0] sm:$0xff]  ;;  %s6067_s27 = scalar_lea.vmem %s8992_s0, %s4462_s19 }
  0xa7   : > { %5000 = vmatpush1.bf16.msra.mxu0 %v4999_v14  ;;  %v5013_v33 = vpack.c.bf16 %v500_v31, %v498_v30  ;;  %v499_v35 = vld [vmem:[#allocation2 + $0xb0] sm:$0xff]  ;;  %v502_v36 = vld [vmem:[#allocation2 + $0xc8] sm:$0xff]  ;;  %v504_v37 = vld [vmem:[#allocation2 + $0xd8] sm:$0xff] }
  0xa8   : > { %5002 = vmatprep.subr.bf16.mxu0 %v5001_v15  ;;  %v5015_v38 = vpack.c.bf16 %v499_v35, %v497_v34  ;;  %v5017_v39 = vpack.c.bf16 %v504_v37, %v502_v36  ;;  %v501_v40 = vld [vmem:[#allocation2 + $0xc0] sm:$0xff]  ;;  %v503_v41 = vld [vmem:[#allocation2 + $0xd0] sm:$0xff]  ;;  %v506_v42 = vld [vmem:[#allocation2 + $0xe8] sm:$0xff]  ;;  %v9023_v35 = vmov 683565275  }
  0xa9   : > { %v508_v43 = vld [vmem:[#allocation2 + $0xf8] sm:$0xff]  ;;  %v5019_v44 = vpack.c.bf16 %v503_v41, %v501_v40  ;;  %v505_v46 = vld [vmem:[#allocation2 + $0xe0] sm:$0xff]  ;;  %v507_v47 = vld [vmem:[#allocation2 + $0xf0] sm:$0xff]  ;;  %v9020_v37 = vmov 2475754826  }
  0xaa   : > { %v5021_v45 = vpack.c.bf16 %v508_v43, %v506_v42  ;;  %v5023_v48 = vpack.c.bf16 %v507_v47, %v505_v46  ;;  %v450_v49 = vld [vmem:[%s6067_s27] sm:$0xff]  ;;  %v451_v50 = vld [vmem:[%s6067_s27 + $0x8] sm:$0xff]  ;;  %v452_v51 = vld [vmem:[%s6067_s27 + $0x10] sm:$0xff]  ;;  %v9018_v42 = vmov 2131351028  }
  0xab   : > { %5004 = vmatpush1.bf16.msra.mxu0 %v5003_v20  ;;  %v453_v52 = vld [vmem:[%s6067_s27 + $0x18] sm:$0xff]  ;;  %v454_v53 = vld [vmem:[%s6067_s27 + $0x20] sm:$0xff]  ;;  %v455_v54 = vld [vmem:[%s6067_s27 + $0x28] sm:$0xff] }
  0xac   : > { %5006 = vmatprep.subr.bf16.mxu0 %v5005_v21  ;;  %v456_v55 = vld [vmem:[%s6067_s27 + $0x30] sm:$0xff]  ;;  %v457_v56 = vld [vmem:[%s6067_s27 + $0x38] sm:$0xff]  ;;  %v458_v57 = vld [vmem:[%s6067_s27 + $0x40] sm:$0xff] }
  0xad   : > { %v459_v58 = vld [vmem:[%s6067_s27 + $0x48] sm:$0xff]  ;;  %v460_v59 = vld [vmem:[%s6067_s27 + $0x50] sm:$0xff]  ;;  %v461_v60 = vld [vmem:[%s6067_s27 + $0x58] sm:$0xff] }
  0xae   : > { %v462_v61 = vld [vmem:[%s6067_s27 + $0x60] sm:$0xff] }
  0xaf   : > { %5008 = vmatpush1.bf16.msra.mxu0 %v5007_v26  ;;  %v509_v2 = vld [vmem:[%s8994_s2] sm:$0x3] }
  0xb0   : > { %5010 = vmatprep.subr.bf16.mxu0 %v5009_v27  ;;  %v6110_v3 = vrot.slane %v509_v2, %v513_v1  ;;  %v6122_v14 = vrot.slane %v509_v2, %v517_v7 }
  0xb3   : > { %5012 = vmatpush1.bf16.msra.mxu0 %v5011_v32 }
  0xb4   : > { %5014 = vmatprep.subr.bf16.mxu0 %v5013_v33 }
  0xb7   : > { %5016 = vmatpush1.bf16.msra.mxu0 %v5015_v38 }
  0xb8   : > { %5018 = vmatprep.subr.bf16.mxu0 %v5017_v39 }
  0xbb   : > { %5020 = vmatpush1.bf16.msra.mxu0 %v5019_v44 }
  0xbc   : > { %5022 = vmatprep.subr.bf16.mxu0 %v5021_v45  ;;  %v9027_v45 = vmov 2102212464  }
  0xbf   : > { %5024 = vmatpush1.bf16.msra.mxu0 %v5023_v48 }
  0xc2   : > { %4463 = vmatmul.mubr.msk.f32.vlgmr.msra.gmra.mrb[0].mxu0 %vm463_vm0, %v450_v49  ;;  %v9016_v49 = vmov 920167782  }
  0xc3   : > { %591 = vmatprep.mubr.f32.mxu0 %v9011_v0 }
  0xc6   : > { %4464 = vmatmul.mubr.msk.f32.gmra.mrb[2].mxu0 %vm463_vm0, %v451_v50 }
  0xc7   : > { %597 = vmatprep.mubr.f32.mxu0 %v9011_v0 }
  0xca   : > { %4465 = vmatmul.mubr.msk.f32.gmra.mrb[4].mxu0 %vm463_vm0, %v452_v51 }
  0xcb   : > { %603 = vmatprep.mubr.f32.mxu0 %v9011_v0 }
  0xce   : > { %4466 = vmatmul.mubr.msk.f32.gmra.mrb[6].mxu0 %vm463_vm0, %v453_v52  ;;  %v9014_v52 = vmov 1326507024  }
  0xcf   : > { %609 = vmatprep.mubr.f32.mxu0 %v9011_v0 }
  0xd2   : > { %4467 = vmatmul.mubr.msk.f32.gmra.mrb[8].mxu0 %vm463_vm0, %v454_v53 }
  0xd3   : > { %615 = vmatprep.mubr.f32.mxu0 %v9011_v0 }
  0xd6   : > { %4468 = vmatmul.mubr.msk.f32.gmra.mrb[10].mxu0 %vm463_vm0, %v455_v54 }
  0xd7   : > { %621 = vmatprep.mubr.f32.mxu0 %v9011_v0 }
  0xda   : > { %4469 = vmatmul.mubr.msk.f32.gmra.mrb[12].mxu0 %vm463_vm0, %v456_v55 }
  0xdb   : > { %627 = vmatprep.mubr.f32.mxu0 %v9011_v0 }
  0xde   : > { %4470 = vmatmul.mubr.msk.f32.gmra.mrb[14].mxu0 %vm463_vm0, %v457_v56 }
  0xdf   : > { %633 = vmatprep.mubr.f32.mxu0 %v9011_v0 }
  0xe2   : > { %4471 = vmatmul.mubr.msk.f32.gmra.mrb[16].mxu0 %vm463_vm0, %v458_v57 }
  0xe3   : > { %639 = vmatprep.mubr.f32.mxu0 %v9011_v0 }
  0xe6   : > { %4472 = vmatmul.mubr.msk.f32.gmra.mrb[18].mxu0 %vm463_vm0, %v459_v58 }
  0xe7   : > { %645 = vmatprep.mubr.f32.mxu0 %v9011_v0 }
  0xea   : > { %4473 = vmatmul.mubr.msk.f32.gmra.mrb[20].mxu0 %vm463_vm0, %v460_v59 }
  0xeb   : > { %651 = vmatprep.mubr.f32.mxu0 %v9011_v0 }
  0xee   : > { %4474 = vmatmul.mubr.msk.f32.gmra.mrb[22].mxu0 %vm463_vm0, %v461_v60 }
  0xef   : > { %657 = vmatprep.mubr.f32.mxu0 %v9011_v0 }
  0xf2   : > { %4475 = vmatmul.mubr.msk.f32.gmra.mrb[24].mxu0 %vm463_vm0, %v462_v61 }
 0x195   : > { %v587_v4 = vpop.f32.mrb[0].mxu0 }
 0x196   : > { %v6113_v5 = vadd.f32 %v587_v4, %v6110_v3  ;;  %v6115_v6 = vpop.f32.mrb[1].mxu0 }
 0x198   : > { %9169 = vst [vmem:[#allocation17_spill] sm:$0xff] %v6113_v5  ;;  %v9013_v8 = vand.u32 2147483647, %v6113_v5  ;;  %v667_v9 = vand.u32 2139095040, %v6113_v5 }
 0x199   : > { %v593_v10 = vpop.f32.mrb[2].mxu0 }
 0x19a   : > { %v668_v11 = vshrl.u32 %v667_v9, 23  ;;  %v6120_v12 = vadd.f32 %v593_v10, %v6110_v3  ;;  %v595_v13 = vpop.f32.mrb[3].mxu0  ;;  %v671_v16 = vand.u32 8388607, %v9013_v8 }
 0x19b   : > { %v6128_v18 = vadd.f32 %v595_v13, %v6122_v14 }
 0x19c   : > { %9170 = vst [vmem:[#allocation18_spill] sm:$0xff] %v6120_v12  ;;  %v4476_v15 = vadd.s32 4294967169, %v668_v11  ;;  %v875_v17 = vand.u32 2139095040, %v6120_v12  ;;  %v672_v22 = vor.u32 8388608, %v671_v16  ;;  %v9009_v23 = vand.u32 2147483647, %v6120_v12 }
 0x19d   : > { %9171 = vst [vmem:[#allocation19_spill] sm:$0xff] %v6128_v18  ;;  %v6130_v19 = vpop.f32.mrb[4].mxu0  ;;  %v979_v26 = vand.u32 2139095040, %v6128_v18 }
 0x19e   : > { %v674_v20 = vadd.s32 1, %v4476_v15  ;;  %v6132_v21 = vpop.f32.mrb[5].mxu0  ;;  %v876_v24 = vshrl.u32 %v875_v17, 23  ;;  %v6140_v31 = vshll.u32 %v672_v22, 8  ;;  %v879_v33 = vand.u32 8388607, %v9009_v23 }
 0x19f   : > { %v980_v39 = vshrl.u32 %v979_v26, 23 }
 0x1a0   : > { %vm675_vm1 = vcmp.gt.s32.totalorder %v674_v20, 0  ;;  %v4484_v32 = vadd.s32 4294967169, %v876_v24  ;;  %v880_v10 = vor.u32 8388608, %v879_v33 }
 0x1a1   : > { %v676_v25 = vsel %vm675_vm1, %v674_v20, 0  ;;  %v6136_v27 = vpop.f32.mrb[6].mxu0  ;;  %v4488_v63 = vadd.s32 4294967169, %v980_v39 }
 0x1a2   : > { %v678_v28 = vand.u32 31, %v676_v25  ;;  %v6138_v29 = vpop.f32.mrb[7].mxu0  ;;  %v677_v34 = vshrl.u32 %v676_v25, 5  ;;  %v882_v57 = vadd.s32 1, %v4484_v32  ;;  %v9010_v32 = vand.u32 2147483647, %v6128_v18 }
 0x1a3   : > { %v986_v25 = vadd.s32 1, %v4488_v63 }
 0x1a4   : > { %v679_v30 = vsub.s32 32, %v678_v28  ;;  %v681_v36 = vshll.u32 %v9023_v35, %v678_v28  ;;  %v684_v38 = vshll.u32 %v9020_v37, %v678_v28  ;;  %v687_v44 = vshll.u32 %v9018_v42, %v678_v28 }
 0x1a5   : > { %v6146_v40 = vpop.f32.mrb[8].mxu0  ;;  %v690_v48 = vshll.u32 %v9027_v45, %v678_v28  ;;  %v693_v51 = vshll.u32 %v9016_v49, %v678_v28  ;;  %vm696_vm2 = vcmp.lt.s32.totalorder %v677_v34, 1  ;;  %vm699_vm3 = vcmp.lt.s32.totalorder %v677_v34, 4 }
 0x1a6   : > { %v682_v41 = vshrl.u32 %v9020_v37, %v679_v30  ;;  %v685_v43 = vshrl.u32 %v9018_v42, %v679_v30  ;;  %v688_v46 = vshrl.u32 %v9027_v45, %v679_v30  ;;  %v6152_v47 = vpop.f32.mrb[9].mxu0  ;;  %v691_v50 = vshrl.u32 %v9016_v49, %v679_v30 }
 0x1a7   : > { %v694_v53 = vshrl.u32 %v9014_v52, %v679_v30  ;;  %v680_v1 = vshrl.u32 %v9023_v35, %v679_v30  ;;  %vm698_vm4 = vcmp.lt.s32.totalorder %v677_v34, 3  ;;  %vm697_vm5 = vcmp.lt.s32.totalorder %v677_v34, 2 }
 0x1a8   : > { %v683_v54 = vor.u32 %v682_v41, %v681_v36  ;;  %v686_v55 = vor.u32 %v685_v43, %v684_v38  ;;  %v689_v56 = vor.u32 %v688_v46, %v687_v44  ;;  %v692_v58 = vor.u32 %v691_v50, %v690_v48 }
 0x1a9   : > { %v695_v59 = vor.u32 %v694_v53, %v693_v51  ;;  %vm883_vm6 = vcmp.gt.s32.totalorder %v882_v57, 0  ;;  %vm987_vm7 = vcmp.gt.s32.totalorder %v986_v25, 0  ;;  %v6172_v36 = vshll.u32 %v880_v10, 8 }
 0x1aa   : > { %v701_v60 = vsel %vm699_vm3, %v689_v56, 2102212464  ;;  %v704_v61 = vsel %vm696_vm2, %v683_v54, %v686_v55  ;;  %v708_v62 = vsel %vm696_vm2, %v686_v55, %v689_v56  ;;  %v705_v2 = vsel %vm699_vm3, %v692_v58, 920167782 }
 0x1ab   : > { %v709_v4 = vsel %vm699_vm3, %v695_v59, 1326507024  ;;  %v706_v7 = vsel %vm698_vm4, %v689_v56, %v705_v2  ;;  %v700_v11 = vsel %vm696_vm2, %v680_v1, %v683_v54  ;;  %v702_v13 = vsel %vm698_vm4, %v686_v55, %v701_v60 }
 0x1ac   : > { %v710_v9 = vsel %vm698_vm4, %v692_v58, %v709_v4  ;;  %v707_v15 = vsel %vm697_vm5, %v704_v61, %v706_v7  ;;  %v703_v26 = vsel %vm697_vm5, %v700_v11, %v702_v13  ;;  %v884_v28 = vsel %vm883_vm6, %v882_v57, 0  ;;  %v6186_v58 = vpop.f32.mrb[10].mxu0 }
 0x1ad   : > { %v711_v16 = vsel %vm697_vm5, %v708_v62, %v710_v9  ;;  %v6164_v22 = vmul.u32.u64.low %v6140_v31, %v707_v15  ;;  %v6165_v24 = vmul.u32.u64.high %v6140_v31, %v707_v15, %v6164_v22  ;;  %v886_v30 = vand.u32 31, %v884_v28 }
 0x1ae   : > { %v6160_v17 = vmul.u32.u64.low %v6140_v31, %v711_v16  ;;  %v6161_v20 = vmul.u32.u64.high %v6140_v31, %v711_v16, %v6160_v17  ;;  %v885_v34 = vshrl.u32 %v884_v28, 5  ;;  %v719_v38 = vmul.u32 %v6140_v31, %v703_v26 }
 0x1af   : > { %v722_v33 = vadd.s32 1, %v6165_v24  ;;  %v887_v39 = vsub.s32 32, %v886_v30  ;;  %v889_v41 = vshll.u32 %v9023_v35, %v886_v30  ;;  %v988_v43 = vsel %vm987_vm7, %v986_v25, 0 }
 0x1b0   : > { %vm721_vm8 = vc.u32 %v6161_v20, %v6164_v22  ;;  %v892_v46 = vshll.u32 %v9020_v37, %v886_v30  ;;  %v895_v48 = vshll.u32 %v9018_v42, %v886_v30  ;;  %v898_v50 = vshll.u32 %v9027_v45, %v886_v30 }
 0x1b1   : > { %v723_v44 = vsel %vm721_vm8, %v722_v33, %v6165_v24  ;;  %v890_v53 = vshrl.u32 %v9020_v37, %v887_v39  ;;  %v893_v54 = vshrl.u32 %v9018_v42, %v887_v39  ;;  %v901_v55 = vshll.u32 %v9016_v49, %v886_v30 }
 0x1b2   : > { %v724_v51 = vadd.s32 %v723_v44, %v719_v38  ;;  %v896_v31 = vshrl.u32 %v9027_v45, %v887_v39  ;;  %v899_v56 = vshrl.u32 %v9016_v49, %v887_v39  ;;  %v902_v57 = vshrl.u32 %v9014_v52, %v887_v39 }
 0x1b3   : > { %vm904_vm9 = vcmp.lt.s32.totalorder %v885_v34, 1  ;;  %v888_v60 = vshrl.u32 %v9023_v35, %v887_v39  ;;  %v891_v61 = vor.u32 %v890_v53, %v889_v41  ;;  %v894_v62 = vor.u32 %v893_v54, %v892_v46 }
 0x1b4   : > { %v725_v59 = vadd.s32 536870912, %v724_v51  ;;  %v897_v63 = vor.u32 %v896_v31, %v895_v48  ;;  %v900_v1 = vor.u32 %v899_v56, %v898_v50  ;;  %v903_v2 = vor.u32 %v902_v57, %v901_v55 }
 0x1b5   : > { %vm905_vm10 = vcmp.lt.s32.totalorder %v885_v34, 2  ;;  %vm906_vm11 = vcmp.lt.s32.totalorder %v885_v34, 3  ;;  %vm907_vm12 = vcmp.lt.s32.totalorder %v885_v34, 4  ;;  %v912_v7 = vsel %vm904_vm9, %v891_v61, %v894_v62 }
 0x1b6   : > { %v6189_v4 = vshrl.u32 %v725_v59, 30  ;;  %v909_v9 = vsel %vm907_vm12, %v897_v63, 2102212464  ;;  %v913_v10 = vsel %vm907_vm12, %v900_v1, 920167782  ;;  %v916_v11 = vsel %vm904_vm9, %v894_v62, %v897_v63 }
 0x1b7   : > { %v917_v13 = vsel %vm907_vm12, %v903_v2, 1326507024  ;;  %v908_v16 = vsel %vm904_vm9, %v888_v60, %v891_v61  ;;  %v914_v17 = vsel %vm906_vm11, %v897_v63, %v913_v10  ;;  %v910_v25 = vsel %vm906_vm11, %v894_v62, %v909_v9 }
 0x1b8   : > { %9172 = vst [vmem:[#allocation20_spill] sm:$0xff] %v6189_v4  ;;  %v727_v15 = vshll.u32 %v6189_v4, 30  ;;  %v918_v24 = vsel %vm906_vm11, %v900_v1, %v917_v13  ;;  %v915_v26 = vsel %vm905_vm10, %v912_v7, %v914_v17  ;;  %v990_v30 = vand.u32 31, %v988_v43 }
 0x1b9   : > { %v919_v28 = vsel %vm905_vm10, %v916_v11, %v918_v24  ;;  %v6199_v33 = vadd.f32 %v6115_v6, %v6122_v14  ;;  %v6206_v41 = vmul.u32.u64.low %v6172_v36, %v915_v26  ;;  %v6207_v44 = vmul.u32.u64.high %v6172_v36, %v915_v26, %v6206_v41 }
 0x1ba   : > { %v6202_v38 = vmul.u32.u64.low %v6172_v36, %v919_v28  ;;  %v6203_v39 = vmul.u32.u64.high %v6172_v36, %v919_v28, %v6202_v38  ;;  %v983_v46 = vand.u32 8388607, %v9010_v32  ;;  %v991_v48 = vsub.s32 32, %v990_v30 }
 0x1bb   : > { %9173 = vst [vmem:[#allocation21_spill] sm:$0xff] %v6199_v33  ;;  %v6212_v50 = vsub.s32 %v724_v51, %v727_v15  ;;  %v911_v53 = vsel %vm905_vm10, %v908_v16, %v910_v25  ;;  %v989_v54 = vshrl.u32 %v988_v43, 5  ;;  %v993_v6 = vshll.u32 %v9023_v35, %v990_v30 }
 0x1bc   : > { %v994_v55 = vshrl.u32 %v9020_v37, %v991_v48  ;;  %v996_v31 = vshll.u32 %v9020_v37, %v990_v30  ;;  %v997_v56 = vshrl.u32 %v9018_v42, %v991_v48  ;;  %v1000_v57 = vshrl.u32 %v9027_v45, %v991_v48 }
 0x1bd   : > { %vm929_vm13 = vc.u32 %v6203_v39, %v6206_v41  ;;  %v999_v59 = vshll.u32 %v9018_v42, %v990_v30  ;;  %v1002_v51 = vshll.u32 %v9027_v45, %v990_v30  ;;  %v1003_v34 = vshrl.u32 %v9016_v49, %v991_v48 }
 0x1be   : > { %v771_v43 = vand.u32 2139095040, %v6199_v33  ;;  %v930_v60 = vadd.s32 1, %v6207_v44  ;;  %v995_v61 = vor.u32 %v994_v55, %v993_v6  ;;  %v998_v62 = vor.u32 %v997_v56, %v996_v31  ;;  %v6245_v55 = vpop.f32.mrb[11].mxu0 }
 0x1bf   : > { %v927_v63 = vmul.u32 %v6172_v36, %v911_v53  ;;  %v1001_v1 = vor.u32 %v1000_v57, %v999_v59  ;;  %v1004_v2 = vor.u32 %v1003_v34, %v1002_v51  ;;  %v1006_v7 = vshrl.u32 %v9014_v52, %v991_v48 }
 0x1c0   : > { %v931_v9 = vsel %vm929_vm13, %v930_v60, %v6207_v44  ;;  %v984_v10 = vor.u32 8388608, %v983_v46  ;;  %v1005_v11 = vshll.u32 %v9016_v49, %v990_v30  ;;  %v730_v13 = vsub.s32 0, %v6212_v50 }
 0x1c1   : > { %v932_v15 = vadd.s32 %v931_v9, %v927_v63  ;;  %vm1008_vm14 = vcmp.lt.s32.totalorder %v989_v54, 1  ;;  %vm1011_vm15 = vcmp.lt.s32.totalorder %v989_v54, 4  ;;  %vm1010_vm1 = vcmp.lt.s32.totalorder %v989_v54, 3 }
 0x1c2   : > { %v1007_v16 = vor.u32 %v1006_v7, %v1005_v11  ;;  %v1016_v17 = vsel %vm1008_vm14, %v995_v61, %v998_v62  ;;  %v1017_v36 = vsel %vm1011_vm15, %v1004_v2, 920167782  ;;  %v772_v24 = vshrl.u32 %v771_v43, 23 }
 0x1c3   : > { %v933_v25 = vadd.s32 536870912, %v932_v15  ;;  %vm1009_vm2 = vcmp.lt.s32.totalorder %v989_v54, 2  ;;  %v1018_v26 = vsel %vm1010_vm1, %v1001_v1, %v1017_v36  ;;  %v1024_v38 = vshll.u32 %v984_v10, 8 }
 0x1c4   : > { %v1019_v28 = vsel %vm1009_vm2, %v1016_v17, %v1018_v26  ;;  %v6238_v30 = vadd.f32 %v6130_v19, %v6110_v3  ;;  %v992_v46 = vshrl.u32 %v9023_v35, %v991_v48  ;;  %v1013_v53 = vsel %vm1011_vm15, %v1001_v1, 2102212464 }
 0x1c5   : > { %v6240_v44 = vshrl.u32 %v933_v25, 30  ;;  %v1020_v6 = vsel %vm1008_vm14, %v998_v62, %v1001_v1  ;;  %v4477_v31 = vmin.u32 %v730_v13, %v6212_v50  ;;  %v1021_v56 = vsel %vm1011_vm15, %v1007_v16, 1326507024 }
 0x1c6   : > { %9174 = vst [vmem:[#allocation22_spill] sm:$0xff] %v6238_v30  ;;  %v6249_v57 = vmul.u32.u64.low %v1024_v38, %v1019_v28  ;;  %v6250_v59 = vmul.u32.u64.high %v1024_v38, %v1019_v28, %v6249_v57  ;;  %v4480_v19 = vadd.s32 4294967169, %v772_v24  ;;  %v1022_v34 = vsel %vm1010_vm1, %v1004_v2, %v1021_v56 }
 0x1c7   : > { %9175 = vst [vmem:[#allocation23_spill] sm:$0xff] %v6240_v44  ;;  %v935_v51 = vshll.u32 %v6240_v44, 30  ;;  %v1012_v48 = vsel %vm1008_vm14, %v992_v46, %v995_v61  ;;  %v1014_v43 = vsel %vm1010_vm1, %v998_v62, %v1013_v53  ;;  %v1023_v60 = vsel %vm1009_vm2, %v1020_v6, %v1022_v34 }
 0x1c8   : > { %v1083_v63 = vand.u32 2139095040, %v6238_v30  ;;  %v732_v1 = vclz %v4477_v31  ;;  %v6259_v7 = vmul.u32.u64.low %v1024_v38, %v1023_v60  ;;  %v6260_v9 = vmul.u32.u64.high %v1024_v38, %v1023_v60, %v6259_v7 }
 0x1c9   : > { %v778_v11 = vadd.s32 1, %v4480_v19  ;;  %v6262_v13 = vsub.s32 %v932_v15, %v935_v51  ;;  %v1015_v16 = vsel %vm1009_vm2, %v1012_v48, %v1014_v43  ;;  %v1034_v2 = vadd.s32 1, %v6250_v59 }
 0x1ca   : > { %v1084_v10 = vshrl.u32 %v1083_v63, 23  ;;  %v6268_v61 = vadd.f32 %v6132_v21, %v6122_v14  ;;  %v9008_v62 = vand.u32 2147483647, %v6238_v30  ;;  %v4478_v36 = vadd.s32 4294967294, %v732_v1 }
 0x1cb   : > { %v1031_v24 = vmul.u32 %v1024_v38, %v1015_v16  ;;  %vm1033_vm3 = vc.u32 %v6260_v9, %v6249_v57  ;;  %vm779_vm4 = vcmp.gt.s32.totalorder %v778_v11, 0  ;;  %v938_v15 = vsub.s32 0, %v6262_v13 }
 0x1cc   : > { %v4492_v17 = vadd.s32 4294967169, %v1084_v10  ;;  %9176 = vst [vmem:[#allocation24_spill] sm:$0xff] %v6268_v61  ;;  %v1035_v54 = vsel %vm1033_vm3, %v1034_v2, %v6250_v59  ;;  %v1187_v28 = vand.u32 2139095040, %v6268_v61  ;;  %v1087_v21 = vand.u32 8388607, %v9008_v62 }
 0x1cd   : > { %v1036_v26 = vadd.s32 %v1035_v54, %v1031_v24  ;;  %vm4479_vm6 = vcmp.lt.s32.totalorder %v4478_v36, 0  ;;  %v780_v53 = vsel %vm779_vm4, %v778_v11, 0  ;;  %v4485_v31 = vmin.u32 %v938_v15, %v6262_v13 }
 0x1ce   : > { %v1090_v25 = vadd.s32 1, %v4492_v17  ;;  %v1188_v51 = vshrl.u32 %v1187_v28, 23  ;;  %v6281_v34 = vsel %vm4479_vm6, 0, %v4478_v36  ;;  %v6283_v59 = vshrl.u32 %v780_v53, 5 }
 0x1cf   : > { %v1037_v38 = vadd.s32 536870912, %v1036_v26  ;;  %v6285_v48 = vand.u32 31, %v780_v53  ;;  %v1088_v43 = vor.u32 8388608, %v1087_v21  ;;  %v940_v10 = vclz %v4485_v31 }
 0x1d0   : > { %vm1091_vm5 = vcmp.gt.s32.totalorder %v1090_v25, 0  ;;  %9178 = vst [vmem:[#allocation26_spill] sm:$0xff] %v6283_v59  ;;  %v736_v53 = vsub.s32 32, %v6281_v34 }
 0x1d1   : > { %v1092_v46 = vsel %vm1091_vm5, %v1090_v25, 0  ;;  %v6279_v56 = vshrl.u32 %v1037_v38, 30  ;;  %9179 = vst [vmem:[#allocation27_spill] sm:$0xff] %v6285_v48  ;;  %v4496_v25 = vadd.s32 4294967169, %v1188_v51  ;;  %v6300_v38 = vsub.s32 32, %v6285_v48 }
 0x1d2   : > { %v1094_v6 = vand.u32 31, %v1092_v46  ;;  %v1093_v36 = vshrl.u32 %v1092_v46, 5  ;;  %v740_v46 = vsub.s32 4294967266, %v6281_v34 }
 0x1d3   : > { %9177 = vst [vmem:[#allocation25_spill] sm:$0xff] %v6279_v56  ;;  %v1039_v60 = vshll.u32 %v6279_v56, 30  ;;  %9180 = vst [vmem:[#allocation28_spill] sm:$0xff] %v6300_v38  ;;  %v1194_v23 = vadd.s32 1, %v4496_v25 }
 0x1d4   : > { %v1095_v19 = vsub.s32 32, %v1094_v6  ;;  %v1097_v63 = vshll.u32 %v9023_v35, %v1094_v6  ;;  %v1100_v11 = vshll.u32 %v9020_v37, %v1094_v6  ;;  %v1103_v16 = vshll.u32 %v9018_v42, %v1094_v6 }
 0x1d5   : > { %v6294_v17 = vsub.s32 %v1036_v26, %v1039_v60  ;;  %v1106_v28 = vshll.u32 %v9027_v45, %v1094_v6  ;;  %v1109_v31 = vshll.u32 %v9016_v49, %v1094_v6  ;;  %v6304_v26 = vpop.f32.mrb[12].mxu0  ;;  %vm1112_vm7 = vcmp.lt.s32.totalorder %v1093_v36, 1 }
 0x1d6   : > { %v1098_v1 = vshrl.u32 %v9020_v37, %v1095_v19  ;;  %v1101_v7 = vshrl.u32 %v9018_v42, %v1095_v19  ;;  %v1104_v2 = vshrl.u32 %v9027_v45, %v1095_v19  ;;  %v1107_v21 = vshrl.u32 %v9016_v49, %v1095_v19  ;;  %v6361_v44 = vpop.f32.mrb[13].mxu0 }
 0x1d7   : > { %v1110_v62 = vshrl.u32 %v9014_v52, %v1095_v19  ;;  %v1042_v51 = vsub.s32 0, %v6294_v17  ;;  %vm1115_vm8 = vcmp.lt.s32.totalorder %v1093_v36, 4  ;;  %v1096_v6 = vshrl.u32 %v9023_v35, %v1095_v19  ;;  %9187 = vst [vmem:[#allocation31_spill] sm:$0xff] %v6361_v44 }
 0x1d8   : > { %v1099_v24 = vor.u32 %v1098_v1, %v1097_v63  ;;  %v1102_v15 = vor.u32 %v1101_v7, %v1100_v11  ;;  %v1105_v54 = vor.u32 %v1104_v2, %v1103_v16  ;;  %v1108_v60 = vor.u32 %v1107_v21, %v1106_v28 }
 0x1d9   : > { %v9022_v63 = vand.u32 2147483647, %v6268_v61  ;;  %v1111_v1 = vor.u32 %v1110_v62, %v1109_v31  ;;  %v1128_v7 = vshll.u32 %v1088_v43, 8  ;;  %v4486_v11 = vadd.s32 4294967294, %v940_v10 }
 0x1da   : > { %v1117_v16 = vsel %vm1115_vm8, %v1105_v54, 2102212464  ;;  %v1120_v2 = vsel %vm1112_vm7, %v1099_v24, %v1102_v15  ;;  %vm1114_vm9 = vcmp.lt.s32.totalorder %v1093_v36, 3  ;;  %v1121_v32 = vsel %vm1115_vm8, %v1108_v60, 920167782 }
 0x1db   : > { %v1124_v0 = vsel %vm1112_vm7, %v1102_v15, %v1105_v54  ;;  %v4489_v8 = vmin.u32 %v1042_v51, %v6294_v17  ;;  %vm1113_vm10 = vcmp.lt.s32.totalorder %v1093_v36, 2  ;;  %v1122_v52 = vsel %vm1114_vm9, %v1105_v54, %v1121_v32 }
 0x1dc   : > { %v1125_v28 = vsel %vm1115_vm8, %v1111_v1, 1326507024  ;;  %v1116_v21 = vsel %vm1112_vm7, %v1096_v6, %v1099_v24  ;;  %v1118_v49 = vsel %vm1114_vm9, %v1102_v15, %v1117_v16  ;;  %v1123_v62 = vsel %vm1113_vm10, %v1120_v2, %v1122_v52 }
 0x1dd   : > { %v1126_v31 = vsel %vm1114_vm9, %v1108_v60, %v1125_v28  ;;  %v6311_v42 = vadd.s32 127, %v740_v46  ;;  %v6313_v10 = vmul.u32.u64.low %v1128_v7, %v1123_v62  ;;  %v6314_v37 = vmul.u32.u64.high %v1128_v7, %v1123_v62, %v6313_v10 }
 0x1de   : > { %v1127_v43 = vsel %vm1113_vm10, %v1124_v0, %v1126_v31  ;;  %vm1195_vm11 = vcmp.gt.s32.totalorder %v1194_v23, 0  ;;  %v6322_v36 = vadd.f32 %v6136_v27, %v6110_v3  ;;  %v720_v32 = vadd.s32 %v6164_v22, %v6161_v20 }
 0x1df   : > { %v6317_v19 = vmul.u32.u64.low %v1128_v7, %v1127_v43  ;;  %v6318_v25 = vmul.u32.u64.high %v1128_v7, %v1127_v43, %v6317_v19  ;;  %v1119_v52 = vsel %vm1113_vm10, %v1116_v21, %v1118_v49  ;;  %v1191_v24 = vand.u32 8388607, %v9022_v63 }
 0x1e0   : > { %9181 = vst [vmem:[#allocation29_spill] sm:$0xff] %v6322_v36  ;;  %v1196_v0 = vsel %vm1195_vm11, %v1194_v23, 0  ;;  %v6330_v15 = vshll.u32 %v9027_v45, %v6285_v48  ;;  %v6334_v54 = vadd.s32 %v6206_v41, %v6203_v39  ;;  %vm4487_vm12 = vcmp.lt.s32.totalorder %v4486_v11, 0 }
 0x1e1   : > { %v1044_v46 = vclz %v4489_v8  ;;  %v6338_v51 = vshrl.u32 %v720_v32, %v736_v53  ;;  %v1138_v49 = vadd.s32 1, %v6314_v37  ;;  %v1198_v20 = vand.u32 31, %v1196_v0 }
 0x1e2   : > { %v1135_v22 = vmul.u32 %v1128_v7, %v1119_v52  ;;  %vm1137_vm13 = vc.u32 %v6318_v25, %v6313_v10  ;;  %v1291_v60 = vand.u32 2139095040, %v6322_v36  ;;  %v6345_v39 = vsel %vm4487_vm12, 0, %v4486_v11 }
 0x1e3   : > { %v1139_v8 = vsel %vm1137_vm13, %v1138_v49, %v6314_v37  ;;  %v1192_v41 = vor.u32 8388608, %v1191_v24  ;;  %v1199_v1 = vsub.s32 32, %v1198_v20  ;;  %v4490_v16 = vadd.s32 4294967294, %v1044_v46 }
 0x1e4   : > { %v1140_v53 = vadd.s32 %v1139_v8, %v1135_v22  ;;  %v1201_v2 = vshll.u32 %v9023_v35, %v1198_v20  ;;  %v9182_v6 = vmov 2475754826   ;;  %v9183_v7 = vmov 2131351028  }
 0x1e5   : > { %v1204_v28 = vshll.u32 %v9182_v6, %v1198_v20  ;;  %v1202_v21 = vshrl.u32 %v9182_v6, %v1199_v1  ;;  %v1205_v62 = vshrl.u32 %v9183_v7, %v1199_v1  ;;  %v1207_v31 = vshll.u32 %v9183_v7, %v1198_v20 }
 0x1e6   : > { %v1208_v43 = vshrl.u32 %v9027_v45, %v1199_v1  ;;  %v1141_v11 = vadd.s32 536870912, %v1140_v53  ;;  %v1197_v19 = vshrl.u32 %v1196_v0, 5  ;;  %v1210_v37 = vshll.u32 %v9027_v45, %v1198_v20 }
 0x1e7   : > { %v1292_v32 = vshrl.u32 %v1291_v60, 23  ;;  %v1203_v52 = vor.u32 %v1202_v21, %v1201_v2  ;;  %v1206_v24 = vor.u32 %v1205_v62, %v1204_v28  ;;  %v9184_v49 = vmov 920167782  }
 0x1e8   : > { %v1209_v46 = vor.u32 %v1208_v43, %v1207_v31  ;;  %v1211_v22 = vshrl.u32 %v9184_v49, %v1199_v1  ;;  %v6356_v8 = vshrl.u32 %v1141_v11, 30  ;;  %v1213_v63 = vshll.u32 %v9184_v49, %v1198_v20 }
 0x1e9   : > { %v9186_v23 = vmov 1326507024   ;;  %v948_v0 = vsub.s32 4294967266, %v6345_v39  ;;  %vm4491_vm14 = vcmp.lt.s32.totalorder %v4490_v16, 0  ;;  %v1232_v60 = vshll.u32 %v1192_v41, 8 }
 0x1ea   : > { %9185 = vst [vmem:[#allocation30_spill] sm:$0xff] %v6356_v8  ;;  %v1214_v27 = vshrl.u32 %v9186_v23, %v1199_v1  ;;  %v1212_v45 = vor.u32 %v1211_v22, %v1210_v37  ;;  %vm1216_vm15 = vcmp.lt.s32.totalorder %v1197_v19, 1  ;;  %vm1219_vm1 = vcmp.lt.s32.totalorder %v1197_v19, 4 }
 0x1eb   : > { %v4500_v28 = vadd.s32 4294967169, %v1292_v32  ;;  %vm1218_vm2 = vcmp.lt.s32.totalorder %v1197_v19, 3  ;;  %v1221_v21 = vsel %vm1219_vm1, %v1209_v46, 2102212464  ;;  %v1224_v62 = vsel %vm1216_vm15, %v1203_v52, %v1206_v24 }
 0x1ec   : > { %v1215_v2 = vor.u32 %v1214_v27, %v1213_v63  ;;  %v1225_v20 = vsel %vm1219_vm1, %v1212_v45, 920167782  ;;  %v1143_v31 = vshll.u32 %v6356_v8, 30  ;;  %v9188_v43 = vmov 683565275  }
 0x1ed   : > { %v1200_v11 = vshrl.u32 %v9188_v43, %v1199_v1  ;;  %vm1217_vm3 = vcmp.lt.s32.totalorder %v1197_v19, 2  ;;  %v1226_v35 = vsel %vm1218_vm2, %v1209_v46, %v1225_v20  ;;  %v944_v56 = vsub.s32 32, %v6345_v39 }
 0x1ee   : > { %v1227_v37 = vsel %vm1217_vm3, %v1224_v62, %v1226_v35  ;;  %v1228_v63 = vsel %vm1216_vm15, %v1206_v24, %v1209_v46  ;;  %v1229_v27 = vsel %vm1219_vm1, %v1215_v2, 1326507024  ;;  %v949_v41 = vadd.s32 127, %v948_v0 }
 0x1ef   : > { %v1220_v32 = vsel %vm1216_vm15, %v1200_v11, %v1203_v52  ;;  %v1222_v22 = vsel %vm1218_vm2, %v1206_v24, %v1221_v21  ;;  %v1230_v4 = vsel %vm1218_vm2, %v1212_v45, %v1229_v27  ;;  %v6372_v33 = vsel %vm4491_vm14, 0, %v4490_v16 }
 0x1f0   : > { %v1231_v8 = vsel %vm1217_vm3, %v1228_v63, %v1230_v4  ;;  %v6375_v1 = vmul.u32.u64.low %v1232_v60, %v1227_v37  ;;  %v6376_v44 = vmul.u32.u64.high %v1232_v60, %v1227_v37, %v6375_v1  ;;  %v6379_v20 = vsub.s32 %v1140_v53, %v1143_v31 }
 0x1f1   : > { %v6381_v35 = vmul.u32.u64.low %v1232_v60, %v1231_v8  ;;  %v6382_v62 = vmul.u32.u64.high %v1232_v60, %v1231_v8, %v6381_v35  ;;  %v1298_v46 = vadd.s32 1, %v4500_v28  ;;  %v795_v52 = vshrl.u32 %v9184_v49, %v6300_v38 }
 0x1f2   : > { %v6388_v45 = vshll.u32 %v9184_v49, %v6285_v48  ;;  %v6392_v4 = vshrl.u32 %v9186_v23, %v6300_v38  ;;  %v1223_v16 = vsel %vm1217_vm3, %v1220_v32, %v1222_v22  ;;  %v9189_v53 = vshll.u32 %v6212_v50, %v6281_v34 }
 0x1f3   : > { %v9190_v8 = vshll.u32 %v6311_v42, 23  ;;  %v946_v2 = vshrl.u32 %v6334_v54, %v944_v56  ;;  %vm1299_vm4 = vcmp.gt.s32.totalorder %v1298_v46, 0  ;;  %v950_v28 = vshll.u32 %v949_v41, 23 }
 0x1f4   : > { %v6399_v24 = vor.u32 %v6338_v51, %v9189_v53  ;;  %v1052_v21 = vsub.s32 4294967266, %v6372_v33  ;;  %v1242_v31 = vadd.s32 1, %v6376_v44  ;;  %v1300_v19 = vsel %vm1299_vm4, %v1298_v46, 0 }
 0x1f5   : > { %v6403_v0 = vor.u32 4788187, %v9190_v8  ;;  %v1146_v11 = vsub.s32 0, %v6379_v20  ;;  %v1239_v37 = vmul.u32 %v1232_v60, %v1223_v16  ;;  %vm1241_vm5 = vc.u32 %v6382_v62, %v6375_v1 }
 0x1f6   : > { %v9191_v50 = vand.u32 2147483647, %v6322_v36  ;;  %v6414_v34 = vor.u32 %v795_v52, %v6330_v15  ;;  %v945_v56 = vshll.u32 %v6262_v13, %v6345_v39  ;;  %v1243_v54 = vsel %vm1241_vm5, %v1242_v31, %v6376_v44 }
 0x1f7   : > { %v1302_v51 = vand.u32 31, %v1300_v19  ;;  %v744_v63 = vand.u32 2147483647, %v6403_v0  ;;  %v746_v27 = vcvt.s32.f32 %v6399_v24  ;;  %v1244_v41 = vadd.s32 %v1243_v54, %v1239_v37 }
 0x1f8   : > { %v1295_v42 = vand.u32 8388607, %v9191_v50  ;;  %9192 = vst [vmem:[#allocation32_spill] sm:$0xff] %v6414_v34  ;;  %v6423_v32 = vor.u32 %v946_v2, %v945_v56  ;;  %v6425_v22 = vor.u32 4788187, %v950_v28  ;;  %v1032_v15 = vadd.s32 %v6249_v57, %v6260_v9 }
 0x1f9   : > { %v1303_v35 = vsub.s32 32, %v1302_v51  ;;  %v1053_v13 = vadd.s32 127, %v1052_v21  ;;  %v4493_v44 = vmin.u32 %v1146_v11, %v6379_v20  ;;  %v1245_v39 = vadd.s32 536870912, %v1244_v41 }
 0x1fa   : > { %v1296_v46 = vor.u32 8388608, %v1295_v42  ;;  %v1305_v52 = vshll.u32 %v9188_v43, %v1302_v51  ;;  %v1308_v53 = vshll.u32 %v9182_v6, %v1302_v51  ;;  %v1301_v0 = vshrl.u32 %v1300_v19, 5 }
 0x1fb   : > { %v1306_v16 = vshrl.u32 %v9182_v6, %v1303_v35  ;;  %v1309_v24 = vshrl.u32 %v9183_v7, %v1303_v35  ;;  %v6434_v8 = vshrl.u32 %v1245_v39, 30  ;;  %v1311_v2 = vshll.u32 %v9183_v7, %v1302_v51 }
 0x1fc   : > { %v9194_v57 = vmov 2102212464   ;;  %v1315_v11 = vshrl.u32 %v9184_v49, %v1303_v35  ;;  %v1048_v37 = vsub.s32 32, %v6372_v33  ;;  %v6444_v56 = vadd.f32 %v6138_v29, %v6122_v14 }
 0x1fd   : > { %9193 = vst [vmem:[#allocation33_spill] sm:$0xff] %v6434_v8  ;;  %v1312_v9 = vshrl.u32 %v9194_v57, %v1303_v35  ;;  %v1307_v28 = vor.u32 %v1306_v16, %v1305_v52  ;;  %v1310_v21 = vor.u32 %v1309_v24, %v1308_v53  ;;  %v1314_v31 = vshll.u32 %v9194_v57, %v1302_v51  ;;  %v6448_v24 = vpop.f32.mrb[14].mxu0 }
 0x1fe   : > { %v1247_v50 = vshll.u32 %v6434_v8, 30  ;;  %9195 = vst [vmem:[#allocation34_spill] sm:$0xff] %v6444_v56  ;;  %v1054_v19 = vshll.u32 %v1053_v13, 23  ;;  %v1317_v39 = vshll.u32 %v9184_v49, %v1302_v51  ;;  %v1318_v52 = vshrl.u32 %v9186_v23, %v1303_v35  ;;  %9196 = vst [vmem:[#allocation35_spill] sm:$0xff] %v6448_v24 }
 0x1ff   : > { %v1313_v42 = vor.u32 %v1312_v9, %v1311_v2  ;;  %v1316_v54 = vor.u32 %v1315_v11, %v1314_v31  ;;  %v1148_v16 = vclz %v4493_v44  ;;  %vm1320_vm6 = vcmp.lt.s32.totalorder %v1301_v0, 1 }
 0x200   : > { %vm1323_vm7 = vcmp.lt.s32.totalorder %v1301_v0, 4  ;;  %v1336_v53 = vshll.u32 %v1296_v46, 8  ;;  %v6450_v60 = vsub.s32 %v1244_v41, %v1247_v50  ;;  %v1319_v8 = vor.u32 %v1318_v52, %v1317_v39 }
 0x201   : > { %v1325_v2 = vsel %vm1323_vm7, %v1313_v42, 2102212464  ;;  %v1328_v9 = vsel %vm1320_vm6, %v1307_v28, %v1310_v21  ;;  %v1304_v29 = vshrl.u32 %v9188_v43, %v1303_v35  ;;  %vm1322_vm8 = vcmp.lt.s32.totalorder %v1301_v0, 3 }
 0x202   : > { %v1329_v13 = vsel %vm1323_vm7, %v1316_v54, 920167782  ;;  %v1395_v51 = vand.u32 2139095040, %v6444_v56  ;;  %vm803_vm9 = vcmp.lt.s32.totalorder %v6283_v59, 4  ;;  %vm1321_vm10 = vcmp.lt.s32.totalorder %v1301_v0, 2 }
 0x203   : > { %v1330_v44 = vsel %vm1322_vm8, %v1313_v42, %v1329_v13  ;;  %v1332_v46 = vsel %vm1320_vm6, %v1310_v21, %v1313_v42  ;;  %v1333_v31 = vsel %vm1323_vm7, %v1319_v8, 1326507024  ;;  %v1324_v41 = vsel %vm1320_vm6, %v1304_v29, %v1307_v28 }
 0x204   : > { %v1326_v11 = vsel %vm1322_vm8, %v1310_v21, %v1325_v2  ;;  %v1331_v50 = vsel %vm1321_vm10, %v1328_v9, %v1330_v44  ;;  %v1334_v39 = vsel %vm1322_vm8, %v1316_v54, %v1333_v31  ;;  %v1250_v52 = vsub.s32 0, %v6450_v60 }
 0x205   : > { %v1335_v35 = vsel %vm1321_vm10, %v1332_v46, %v1334_v39  ;;  %v6461_v38 = vmul.u32.u64.low %v1336_v53, %v1331_v50  ;;  %v6462_v48 = vmul.u32.u64.high %v1336_v53, %v1331_v50, %v6461_v38  ;;  %v1050_v24 = vshrl.u32 %v1032_v15, %v1048_v37 }
 0x206   : > { %v6465_v36 = vmul.u32.u64.low %v1336_v53, %v1335_v35  ;;  %v6466_v13 = vmul.u32.u64.high %v1336_v53, %v1335_v35, %v6465_v36  ;;  %v6470_v8 = vadd.f32 %v6146_v40, %v6110_v3  ;;  %v747_v28 = vmul.f32 %v746_v27, %v744_v63 }
 0x207   : > { %v952_v21 = vand.u32 2147483647, %v6425_v22  ;;  %v1327_v42 = vsel %vm1321_vm10, %v1324_v41, %v1326_v11  ;;  %v1396_v54 = vshrl.u32 %v1395_v51, 23  ;;  %v954_v2 = vcvt.s32.f32 %v6423_v32 }
 0x208   : > { %9197 = vst [vmem:[#allocation36_spill] sm:$0xff] %v6470_v8  ;;  %v1049_v9 = vshll.u32 %v6294_v17, %v6372_v33  ;;  %v1055_v29 = vor.u32 4788187, %v1054_v19  ;;  %v9045_v15 = vand.u32 2147483647, %v6444_v56  ;;  %v4494_v37 = vadd.s32 4294967294, %v1148_v16 }
 0x209   : > { %v4497_v36 = vmin.u32 %v1250_v52, %v6450_v60  ;;  %v1346_v40 = vadd.s32 1, %v6462_v48  ;;  %v4504_v44 = vadd.s32 4294967169, %v1396_v54  ;;  %v1343_v27 = vmul.u32 %v1336_v53, %v1327_v42 }
 0x20a   : > { %v1051_v63 = vor.u32 %v1050_v24, %v1049_v9  ;;  %vm1345_vm11 = vc.u32 %v6466_v13, %v6461_v38  ;;  %v1499_v22 = vand.u32 2139095040, %v6470_v8  ;;  %v748_v32 = vxor.u32 2147483648, %v747_v28 }
 0x20b   : > { %v6483_v0 = vmul.f32 %v954_v2, %v952_v21  ;;  %v1347_v33 = vsel %vm1345_vm11, %v1346_v40, %v6462_v48  ;;  %v1402_v17 = vadd.s32 1, %v4504_v44  ;;  %vm666_vm12 = vcmp.lt.s32.totalorder %v6113_v5, 0  ;;  %v6524_v40 = vpop.f32.mrb[15].mxu0 }
 0x20c   : > { %v6490_v19 = vsel %vm803_vm9, %v6414_v34, 920167782  ;;  %v1056_v16 = vand.u32 2147483647, %v1055_v29  ;;  %v6492_v53 = vadd.s32 %v1347_v33, %v1343_v27  ;;  %vm4495_vm13 = vcmp.lt.s32.totalorder %v4494_v37, 0 }
 0x20d   : > { %9198 = vst [vmem:[#allocation37_spill] sm:$0xff] %v6490_v19  ;;  %v1252_v24 = vclz %v4497_v36  ;;  %v1399_v51 = vand.u32 8388607, %v9045_v15  ;;  %vm1403_vm14 = vcmp.gt.s32.totalorder %v1402_v17, 0  ;;  %v9199_v48 = vor.u32 %v6392_v4, %v6388_v45 }
 0x20e   : > { %v1058_v31 = vcvt.s32.f32 %v1051_v63  ;;  %v1404_v41 = vsel %vm1403_vm14, %v1402_v17, 0  ;;  %v1500_v11 = vshrl.u32 %v1499_v22, 23  ;;  %v6505_v50 = vsel %vm666_vm12, %v748_v32, %v747_v28 }
 0x20f   : > { %v6501_v46 = vsel %vm803_vm9, %v9199_v48, 1326507024  ;;  %9201 = vst [vmem:[#allocation39_spill] sm:$0xff] %v6505_v50  ;;  %v6510_v52 = vadd.s32 %v6313_v10, %v6318_v25  ;;  %v1406_v35 = vand.u32 31, %v1404_v41  ;;  %v6514_v45 = vsel %vm4495_vm13, 0, %v4494_v37 }
 0x210   : > { %9200 = vst [vmem:[#allocation38_spill] sm:$0xff] %v6501_v46  ;;  %v6512_v21 = vmul.f32 %v1058_v31, %v1056_v16  ;;  %v1349_v4 = vadd.s32 536870912, %v6492_v53  ;;  %v6519_v42 = vadd.f32 %v6152_v47, %v6122_v14  ;;  %v4498_v54 = vadd.s32 4294967294, %v1252_v24 }
 0x211   : > { %v1400_v28 = vor.u32 8388608, %v1399_v51  ;;  %v1407_v2 = vsub.s32 32, %v1406_v35  ;;  %v9046_v9 = vand.u32 2147483647, %v6470_v8  ;;  %v1405_v29 = vshrl.u32 %v1404_v41, 5 }
 0x212   : > { %9202 = vst [vmem:[#allocation40_spill] sm:$0xff] %v6519_v42  ;;  %v1409_v10 = vshll.u32 %v9188_v43, %v1406_v35  ;;  %v1412_v25 = vshll.u32 %v9182_v6, %v1406_v35  ;;  %v4508_v36 = vadd.s32 4294967169, %v1500_v11  ;;  %v1415_v47 = vshll.u32 %v9183_v7, %v1406_v35 }
 0x213   : > { %v1410_v37 = vshrl.u32 %v9182_v6, %v1407_v2  ;;  %v1413_v44 = vshrl.u32 %v9183_v7, %v1407_v2  ;;  %v1416_v63 = vshrl.u32 %v9194_v57, %v1407_v2  ;;  %v6530_v27 = vshrl.u32 %v1349_v4, 30 }
 0x214   : > { %v1418_v22 = vshll.u32 %v9194_v57, %v1406_v35  ;;  %v1419_v32 = vshrl.u32 %v9184_v49, %v1407_v2  ;;  %v1421_v33 = vshll.u32 %v9184_v49, %v1406_v35  ;;  %v1422_v51 = vshrl.u32 %v9186_v23, %v1407_v2 }
 0x215   : > { %9203 = vst [vmem:[#allocation41_spill] sm:$0xff] %v6530_v27  ;;  %v1411_v17 = vor.u32 %v1410_v37, %v1409_v10  ;;  %v1414_v16 = vor.u32 %v1413_v44, %v1412_v25  ;;  %v1417_v24 = vor.u32 %v1416_v63, %v1415_v47  ;;  %v1152_v48 = vsub.s32 32, %v6514_v45 }
 0x216   : > { %v1156_v31 = vsub.s32 4294967266, %v6514_v45  ;;  %v1420_v41 = vor.u32 %v1419_v32, %v1418_v22  ;;  %v1440_v11 = vshll.u32 %v1400_v28, 8  ;;  %vm4499_vm15 = vcmp.lt.s32.totalorder %v4498_v54, 0 }
 0x217   : > { %v1423_v4 = vor.u32 %v1422_v51, %v1421_v33  ;;  %v1503_v15 = vand.u32 8388607, %v9046_v9  ;;  %v1506_v39 = vadd.s32 1, %v4508_v36  ;;  %v1351_v50 = vshll.u32 %v6530_v27, 30 }
 0x218   : > { %v1408_v35 = vshrl.u32 %v9188_v43, %v1407_v2  ;;  %vm1424_vm1 = vcmp.lt.s32.totalorder %v1405_v29, 1  ;;  %vm1427_vm2 = vcmp.lt.s32.totalorder %v1405_v29, 4  ;;  %vm1426_vm3 = vcmp.lt.s32.totalorder %v1405_v29, 3 }
 0x219   : > { %v1429_v10 = vsel %vm1427_vm2, %v1417_v24, 2102212464  ;;  %v1432_v25 = vsel %vm1424_vm1, %v1411_v17, %v1414_v16  ;;  %v1433_v37 = vsel %vm1427_vm2, %v1420_v41, 920167782  ;;  %v6542_v44 = vsel %vm4499_vm15, 0, %v4498_v54 }
 0x21a   : > { %vm1425_vm4 = vcmp.lt.s32.totalorder %v1405_v29, 2  ;;  %v1434_v28 = vsel %vm1426_vm3, %v1417_v24, %v1433_v37  ;;  %v1436_v47 = vsel %vm1424_vm1, %v1414_v16, %v1417_v24  ;;  %v1428_v63 = vsel %vm1424_vm1, %v1408_v35, %v1411_v17 }
 0x21b   : > { %v1435_v22 = vsel %vm1425_vm4, %v1432_v25, %v1434_v28  ;;  %v1437_v32 = vsel %vm1427_vm2, %v1423_v4, 1326507024  ;;  %vm1507_vm5 = vcmp.gt.s32.totalorder %v1506_v39, 0  ;;  %v1430_v36 = vsel %vm1426_vm3, %v1414_v16, %v1429_v10 }
 0x21c   : > { %v1438_v33 = vsel %vm1426_vm3, %v1420_v41, %v1437_v32  ;;  %v6545_v51 = vmul.u32.u64.low %v1440_v11, %v1435_v22  ;;  %v6546_v2 = vmul.u32.u64.high %v1440_v11, %v1435_v22, %v6545_v51  ;;  %v1260_v9 = vsub.s32 4294967266, %v6542_v44 }
 0x21d   : > { %v6551_v27 = vsub.s32 %v6492_v53, %v1351_v50  ;;  %v1439_v54 = vsel %vm1425_vm4, %v1436_v47, %v1438_v33  ;;  %v1508_v37 = vsel %vm1507_vm5, %v1506_v39, 0  ;;  %v1603_v16 = vand.u32 2139095040, %v6519_v42 }
 0x21e   : > { %v6555_v24 = vmul.u32.u64.low %v1440_v11, %v1439_v54  ;;  %v6556_v35 = vmul.u32.u64.high %v1440_v11, %v1439_v54, %v6555_v24  ;;  %v1240_v4 = vadd.s32 %v6375_v1, %v6382_v62  ;;  %v1431_v10 = vsel %vm1425_vm4, %v1428_v63, %v1430_v36 }
 0x21f   : > { %v1510_v53 = vand.u32 31, %v1508_v37  ;;  %v6565_v50 = vshrl.u32 %v6510_v52, %v1152_v48  ;;  %v6567_v39 = vadd.s32 127, %v1156_v31  ;;  %v1450_v25 = vadd.s32 1, %v6546_v2 }
 0x220   : > { %v1504_v28 = vor.u32 8388608, %v1503_v15  ;;  %v1256_v47 = vsub.s32 32, %v6542_v44  ;;  %v1261_v22 = vadd.s32 127, %v1260_v9  ;;  %v1354_v32 = vsub.s32 0, %v6551_v27 }
 0x221   : > { %v1511_v33 = vsub.s32 32, %v1510_v53  ;;  %v1447_v54 = vmul.u32 %v1440_v11, %v1431_v10  ;;  %vm1449_vm6 = vc.u32 %v6556_v35, %v6545_v51  ;;  %v1513_v1 = vshll.u32 %v9188_v43, %v1510_v53 }
 0x222   : > { %v1604_v62 = vshrl.u32 %v1603_v16, 23  ;;  %v1451_v52 = vsel %vm1449_vm6, %v1450_v25, %v6546_v2  ;;  %v1516_v48 = vshll.u32 %v9182_v6, %v1510_v53  ;;  %v1509_v9 = vshrl.u32 %v1508_v37, 5 }
 0x223   : > { %v1514_v29 = vshrl.u32 %v9182_v6, %v1511_v33  ;;  %v1517_v15 = vshrl.u32 %v9183_v7, %v1511_v33  ;;  %v1452_v31 = vadd.s32 %v1451_v52, %v1447_v54  ;;  %v1519_v63 = vshll.u32 %v9183_v7, %v1510_v53 }
 0x224   : > { %v1520_v11 = vshrl.u32 %v9194_v57, %v1511_v33  ;;  %v1522_v10 = vshll.u32 %v9194_v57, %v1510_v53  ;;  %v1523_v16 = vshrl.u32 %v9184_v49, %v1511_v33  ;;  %v1158_v2 = vshll.u32 %v6567_v39, 23 }
 0x225   : > { %v1515_v36 = vor.u32 %v1514_v29, %v1513_v1  ;;  %v1518_v24 = vor.u32 %v1517_v15, %v1516_v48  ;;  %v1453_v25 = vadd.s32 536870912, %v1452_v31  ;;  %v6584_v41 = vshll.u32 %v1504_v28, 8  ;;  %v6591_v48 = vpop.f32.mrb[16].mxu0 }
 0x226   : > { %v1521_v17 = vor.u32 %v1520_v11, %v1519_v63  ;;  %v1258_v5 = vshrl.u32 %v1240_v4, %v1256_v47  ;;  %v1524_v19 = vor.u32 %v1523_v16, %v1522_v10  ;;  %v1525_v37 = vshll.u32 %v9184_v49, %v1510_v53 }
 0x227   : > { %v1526_v54 = vshrl.u32 %v9186_v23, %v1511_v33  ;;  %v1262_v52 = vshll.u32 %v1261_v22, 23  ;;  %v4501_v1 = vmin.u32 %v1354_v32, %v6551_v27  ;;  %v6589_v29 = vshrl.u32 %v1453_v25, 30 }
 0x228   : > { %vm1528_vm7 = vcmp.lt.s32.totalorder %v1509_v9, 1  ;;  %vm874_vm8 = vcmp.lt.s32.totalorder %v6120_v12, 0  ;;  %vm978_vm10 = vcmp.lt.s32.totalorder %v6128_v18, 0  ;;  %vm1531_vm11 = vcmp.lt.s32.totalorder %v1509_v9, 4 }
 0x229   : > { %9204 = vst [vmem:[#allocation42_spill] sm:$0xff] %v6589_v29  ;;  %v1527_v39 = vor.u32 %v1526_v54, %v1525_v37  ;;  %v1536_v4 = vsel %vm1528_vm7, %v1515_v36, %v1518_v24  ;;  %v4512_v28 = vadd.s32 4294967169, %v1604_v62  ;;  %v1512_v53 = vshrl.u32 %v9188_v43, %v1511_v33 }
 0x22a   : > { %vm1530_vm13 = vcmp.lt.s32.totalorder %v1509_v9, 3  ;;  %v1533_v47 = vsel %vm1531_vm11, %v1521_v17, 2102212464  ;;  %v1537_v22 = vsel %vm1531_vm11, %v1524_v19, 920167782  ;;  %vm1529_vm14 = vcmp.lt.s32.totalorder %v1509_v9, 2 }
 0x22b   : > { %v1538_v32 = vsel %vm1530_vm13, %v1521_v17, %v1537_v22  ;;  %v1540_v15 = vsel %vm1528_vm7, %v1518_v24, %v1521_v17  ;;  %v1541_v63 = vsel %vm1531_vm11, %v1527_v39, 1326507024  ;;  %v1356_v11 = vclz %v4501_v1 }
 0x22c   : > { %v1455_v10 = vshll.u32 %v6589_v29, 30  ;;  %v1532_v16 = vsel %vm1528_vm7, %v1512_v53, %v1515_v36  ;;  %v1539_v25 = vsel %vm1529_vm14, %v1536_v4, %v1538_v32  ;;  %v1534_v37 = vsel %vm1530_vm13, %v1518_v24, %v1533_v47  ;;  %v6661_v29 = vpop.f32.mrb[17].mxu0 }
 0x22d   : > { %v1542_v54 = vsel %vm1530_vm13, %v1524_v19, %v1541_v63  ;;  %v6602_v62 = vmul.u32.u64.low %v6584_v41, %v1539_v25  ;;  %v6603_v33 = vmul.u32.u64.high %v6584_v41, %v1539_v25, %v6602_v62  ;;  %v1257_v22 = vshll.u32 %v6450_v60, %v6542_v44 }
 0x22e   : > { %v1543_v17 = vsel %vm1529_vm14, %v1540_v15, %v1542_v54  ;;  %v9051_v1 = vand.u32 2147483647, %v6519_v42  ;;  %v1610_v39 = vadd.s32 1, %v4512_v28  ;;  %v9205_v36 = vshll.u32 %v6379_v20, %v6514_v45 }
 0x22f   : > { %v1159_v24 = vor.u32 4788187, %v1158_v2  ;;  %v6615_v19 = vmul.u32.u64.low %v6584_v41, %v1543_v17  ;;  %v6616_v53 = vmul.u32.u64.high %v6584_v41, %v1543_v17, %v6615_v19  ;;  %v1259_v47 = vor.u32 %v1258_v5, %v1257_v22 }
 0x230   : > { %v1155_v4 = vor.u32 %v6565_v50, %v9205_v36  ;;  %v1263_v32 = vor.u32 4788187, %v1262_v52  ;;  %v1535_v63 = vsel %vm1529_vm14, %v1532_v16, %v1534_v37  ;;  %vm1611_vm15 = vcmp.gt.s32.totalorder %v1610_v39, 0 }
 0x231   : > { %v4502_v60 = vadd.s32 4294967294, %v1356_v11  ;;  %v6619_v44 = vsub.s32 %v1452_v31, %v1455_v10  ;;  %v1554_v28 = vadd.s32 1, %v6603_v33  ;;  %v1612_v15 = vsel %vm1611_vm15, %v1610_v39, 0 }
 0x232   : > { %v9206_v20 = vxor.u32 2147483648, %v6483_v0  ;;  %v9208_v5 = vxor.u32 2147483648, %v6512_v21  ;;  %v1607_v31 = vand.u32 8388607, %v9051_v1  ;;  %v1614_v9 = vand.u32 31, %v1612_v15 }
 0x233   : > { %v1162_v2 = vcvt.s32.f32 %v1155_v4  ;;  %v1551_v52 = vmul.u32 %v6584_v41, %v1535_v63  ;;  %vm1553_vm1 = vc.u32 %v6616_v53, %v6602_v62  ;;  %v1160_v11 = vand.u32 2147483647, %v1159_v24 }
 0x234   : > { %v6627_v45 = vsel %vm874_vm8, %v9206_v20, %v6483_v0  ;;  %v6634_v50 = vsel %vm978_vm10, %v9208_v5, %v6512_v21  ;;  %v6643_v0 = vadd.f32 %v6186_v58, %v6110_v3  ;;  %v1266_v10 = vcvt.s32.f32 %v1259_v47 }
 0x235   : > { %9207 = vst [vmem:[#allocation43_spill] sm:$0xff] %v6627_v45  ;;  %9209 = vst [vmem:[#allocation44_spill] sm:$0xff] %v6634_v50  ;;  %v1555_v16 = vsel %vm1553_vm1, %v1554_v28, %v6603_v33  ;;  %v1615_v21 = vsub.s32 32, %v1614_v9  ;;  %v1264_v25 = vand.u32 2147483647, %v1263_v32  ;;  %vm4503_vm2 = vcmp.lt.s32.totalorder %v4502_v60, 0 }
 0x236   : > { %9210 = vst [vmem:[#allocation45_spill] sm:$0xff] %v6643_v0  ;;  %v1458_v37 = vsub.s32 0, %v6619_v44  ;;  %v1556_v54 = vadd.s32 %v1555_v16, %v1551_v52  ;;  %v1608_v22 = vor.u32 8388608, %v1607_v31  ;;  %v1617_v41 = vshll.u32 %v9188_v43, %v1614_v9 }
 0x237   : > { %v1618_v17 = vshrl.u32 %v9182_v6, %v1615_v21  ;;  %v1621_v39 = vshrl.u32 %v9183_v7, %v1615_v21  ;;  %v1620_v58 = vshll.u32 %v9182_v6, %v1614_v9  ;;  %v1624_v4 = vshrl.u32 %v9194_v57, %v1615_v21 }
 0x238   : > { %v1557_v36 = vadd.s32 536870912, %v1556_v54  ;;  %v1627_v33 = vshrl.u32 %v9184_v49, %v1615_v21  ;;  %v6653_v24 = vsel %vm4503_vm2, 0, %v4502_v60  ;;  %v1613_v19 = vshrl.u32 %v1612_v15, 5 }
 0x239   : > { %v1623_v47 = vshll.u32 %v9183_v7, %v1614_v9  ;;  %v1626_v32 = vshll.u32 %v9194_v57, %v1614_v9  ;;  %v4505_v63 = vmin.u32 %v1458_v37, %v6619_v44  ;;  %v1619_v28 = vor.u32 %v1618_v17, %v1617_v41 }
 0x23a   : > { %v1622_v20 = vor.u32 %v1621_v39, %v1620_v58  ;;  %v1707_v5 = vand.u32 2139095040, %v6643_v0  ;;  %v1629_v16 = vshll.u32 %v9184_v49, %v1614_v9  ;;  %v1630_v1 = vshrl.u32 %v9186_v23, %v1615_v21 }
 0x23b   : > { %v1625_v31 = vor.u32 %v1624_v4, %v1623_v47  ;;  %v1628_v52 = vor.u32 %v1627_v33, %v1626_v32  ;;  %v1163_v60 = vmul.f32 %v1162_v2, %v1160_v11  ;;  %v1267_v15 = vmul.f32 %v1266_v10, %v1264_v25 }
 0x23c   : > { %v6663_v45 = vshrl.u32 %v1557_v36, 30  ;;  %v1648_v12 = vshll.u32 %v1608_v22, 8  ;;  %v1360_v50 = vsub.s32 32, %v6653_v24  ;;  %v1364_v37 = vsub.s32 4294967266, %v6653_v24 }
 0x23d   : > { %v1631_v41 = vor.u32 %v1630_v1, %v1629_v16  ;;  %vm1632_vm3 = vcmp.lt.s32.totalorder %v1613_v19, 1  ;;  %v1460_v17 = vclz %v4505_v63  ;;  %vm1635_vm4 = vcmp.lt.s32.totalorder %v1613_v19, 4 }
 0x23e   : > { %9211 = vst [vmem:[#allocation46_spill] sm:$0xff] %v6663_v45  ;;  %v1640_v39 = vsel %vm1632_vm3, %v1619_v28, %v1622_v20  ;;  %v1708_v9 = vshrl.u32 %v1707_v5, 23  ;;  %v1616_v58 = vshrl.u32 %v9188_v43, %v1615_v21  ;;  %vm1634_vm5 = vcmp.lt.s32.totalorder %v1613_v19, 3 }
 0x23f   : > { %v1637_v2 = vsel %vm1635_vm4, %v1625_v31, 2102212464  ;;  %v1641_v11 = vsel %vm1635_vm4, %v1628_v52, 920167782  ;;  %vm1082_vm6 = vcmp.lt.s32.totalorder %v6238_v30, 0  ;;  %vm1186_vm7 = vcmp.lt.s32.totalorder %v6268_v61, 0 }
 0x240   : > { %v1559_v10 = vshll.u32 %v6663_v45, 30  ;;  %vm1633_vm11 = vcmp.lt.s32.totalorder %v1613_v19, 2  ;;  %v1642_v1 = vsel %vm1634_vm5, %v1625_v31, %v1641_v11  ;;  %v1644_v25 = vsel %vm1632_vm3, %v1622_v20, %v1625_v31 }
 0x241   : > { %v1365_v22 = vadd.s32 127, %v1364_v37  ;;  %v1636_v36 = vsel %vm1632_vm3, %v1616_v58, %v1619_v28  ;;  %v1643_v21 = vsel %vm1633_vm11, %v1640_v39, %v1642_v1  ;;  %v1645_v4 = vsel %vm1635_vm4, %v1631_v41, 1326507024 }
 0x242   : > { %v1638_v33 = vsel %vm1634_vm5, %v1622_v20, %v1637_v2  ;;  %v1646_v47 = vsel %vm1634_vm5, %v1628_v52, %v1645_v4  ;;  %v6678_v32 = vmul.u32.u64.low %v1648_v12, %v1643_v21  ;;  %v6679_v63 = vmul.u32.u64.high %v1648_v12, %v1643_v21, %v6678_v32 }
 0x243   : > { %v4506_v5 = vadd.s32 4294967294, %v1460_v17  ;;  %v1647_v16 = vsel %vm1633_vm11, %v1644_v25, %v1646_v47  ;;  %v9058_v11 = vand.u32 2147483647, %v6643_v0  ;;  %v4516_v45 = vadd.s32 4294967169, %v1708_v9 }
 0x244   : > { %v1344_v31 = vadd.s32 %v6461_v38, %v6466_v13  ;;  %v6686_v28 = vsub.s32 %v1556_v54, %v1559_v10  ;;  %v6688_v37 = vmul.u32.u64.low %v1648_v12, %v1647_v16  ;;  %v6689_v39 = vmul.u32.u64.high %v1648_v12, %v1647_v16, %v6688_v37 }
 0x245   : > { %v1164_v20 = vxor.u32 2147483648, %v1163_v60  ;;  %v1268_v52 = vxor.u32 2147483648, %v1267_v15  ;;  %v1639_v41 = vsel %vm1633_vm11, %v1636_v36, %v1638_v33  ;;  %v1714_v58 = vadd.s32 1, %v4516_v45 }
 0x246   : > { %v1361_v17 = vshll.u32 %v6551_v27, %v6653_v24  ;;  %v1362_v2 = vshrl.u32 %v1344_v31, %v1360_v50  ;;  %v1658_v1 = vadd.s32 1, %v6679_v63  ;;  %v6697_v9 = vadd.f32 %v6245_v55, %v6122_v14 }
 0x247   : > { %v1366_v38 = vshll.u32 %v1365_v22, 23  ;;  %vm4507_vm13 = vcmp.lt.s32.totalorder %v4506_v5, 0  ;;  %v1711_v13 = vand.u32 8388607, %v9058_v11  ;;  %vm1715_vm14 = vcmp.gt.s32.totalorder %v1714_v58, 0 }
 0x248   : > { %9212 = vst [vmem:[#allocation47_spill] sm:$0xff] %v6697_v9  ;;  %v1562_v54 = vsub.s32 0, %v6686_v28  ;;  %v1655_v19 = vmul.u32 %v1648_v12, %v1639_v41  ;;  %vm1657_vm15 = vc.u32 %v6689_v39, %v6678_v32  ;;  %v1716_v27 = vsel %vm1715_vm14, %v1714_v58, 0 }
 0x249   : > { %v6706_v45 = vsel %vm1082_vm6, %v1164_v20, %v1163_v60  ;;  %v6710_v55 = vsel %vm1186_vm7, %v1268_v52, %v1267_v15  ;;  %v1659_v50 = vsel %vm1657_vm15, %v1658_v1, %v6679_v63  ;;  %v1718_v24 = vand.u32 31, %v1716_v27 }
 0x24a   : > { %9213 = vst [vmem:[#allocation48_spill] sm:$0xff] %v6706_v45  ;;  %9214 = vst [vmem:[#allocation49_spill] sm:$0xff] %v6710_v55  ;;  %v6713_v10 = vor.u32 %v1362_v2, %v1361_v17  ;;  %v6717_v12 = vadd.s32 %v6545_v51, %v6556_v35  ;;  %v1660_v25 = vadd.s32 %v1659_v50, %v1655_v19  ;;  %v1811_v22 = vand.u32 2139095040, %v6697_v9  ;;  %v6741_v45 = vpop.f32.mrb[18].mxu0 }
 0x24b   : > { %v6720_v36 = vor.u32 4788187, %v1366_v38  ;;  %v6723_v60 = vsel %vm4507_vm13, 0, %v4506_v5  ;;  %v1712_v21 = vor.u32 8388608, %v1711_v13  ;;  %v1719_v15 = vsub.s32 32, %v1718_v24 }
 0x24c   : > { %v4509_v4 = vmin.u32 %v1562_v54, %v6686_v28  ;;  %v1661_v33 = vadd.s32 536870912, %v1660_v25  ;;  %v1721_v47 = vshll.u32 %v9188_v43, %v1718_v24  ;;  %v1724_v63 = vshll.u32 %v9182_v6, %v1718_v24 }
 0x24d   : > { %v1722_v51 = vshrl.u32 %v9182_v6, %v1719_v15  ;;  %v1725_v35 = vshrl.u32 %v9183_v7, %v1719_v15  ;;  %v1727_v16 = vshll.u32 %v9183_v7, %v1718_v24  ;;  %v1728_v31 = vshrl.u32 %v9194_v57, %v1719_v15 }
 0x24e   : > { %v1717_v37 = vshrl.u32 %v1716_v27, 5  ;;  %v1730_v5 = vshll.u32 %v9194_v57, %v1718_v24  ;;  %v1731_v20 = vshrl.u32 %v9184_v49, %v1719_v15  ;;  %v1812_v52 = vshrl.u32 %v1811_v22, 23 }
 0x24f   : > { %v1723_v41 = vor.u32 %v1722_v51, %v1721_v47  ;;  %v1726_v58 = vor.u32 %v1725_v35, %v1724_v63  ;;  %v1729_v17 = vor.u32 %v1728_v31, %v1727_v16  ;;  %v1464_v1 = vsub.s32 32, %v6723_v60 }
 0x250   : > { %v1468_v38 = vsub.s32 4294967266, %v6723_v60  ;;  %v6737_v13 = vshrl.u32 %v1661_v33, 30  ;;  %v1732_v54 = vor.u32 %v1731_v20, %v1730_v5  ;;  %v1564_v19 = vclz %v4509_v4 }
 0x251   : > { %v1733_v27 = vshll.u32 %v9184_v49, %v1718_v24  ;;  %v1734_v50 = vshrl.u32 %v9186_v23, %v1719_v15  ;;  %v1752_v11 = vshll.u32 %v1712_v21, 8  ;;  %vm1736_vm1 = vcmp.lt.s32.totalorder %v1717_v37, 1 }
 0x252   : > { %9215 = vst [vmem:[#allocation50_spill] sm:$0xff] %v6737_v13  ;;  %vm1738_vm2 = vcmp.lt.s32.totalorder %v1717_v37, 3  ;;  %vm1739_vm3 = vcmp.lt.s32.totalorder %v1717_v37, 4  ;;  %v4520_v22 = vadd.s32 4294967169, %v1812_v52  ;;  %v1744_v51 = vsel %vm1736_vm1, %v1723_v41, %v1726_v58 }
 0x253   : > { %v1735_v47 = vor.u32 %v1734_v50, %v1733_v27  ;;  %v1741_v63 = vsel %vm1739_vm3, %v1729_v17, 2102212464  ;;  %v1745_v35 = vsel %vm1739_vm3, %v1732_v54, 920167782  ;;  %v1663_v33 = vshll.u32 %v6737_v13, 30 }
 0x254   : > { %v1720_v4 = vshrl.u32 %v9188_v43, %v1719_v15  ;;  %vm1737_vm4 = vcmp.lt.s32.totalorder %v1717_v37, 2  ;;  %v1746_v24 = vsel %vm1738_vm2, %v1729_v17, %v1745_v35  ;;  %v4510_v16 = vadd.s32 4294967294, %v1564_v19 }
 0x255   : > { %v1747_v21 = vsel %vm1737_vm4, %v1744_v51, %v1746_v24  ;;  %v1748_v31 = vsel %vm1736_vm1, %v1726_v58, %v1729_v17  ;;  %v1749_v5 = vsel %vm1739_vm3, %v1735_v47, 1326507024  ;;  %v1469_v20 = vadd.s32 127, %v1468_v38 }
 0x256   : > { %v1740_v52 = vsel %vm1736_vm1, %v1720_v4, %v1723_v41  ;;  %v1742_v27 = vsel %vm1738_vm2, %v1726_v58, %v1741_v63  ;;  %v1750_v50 = vsel %vm1738_vm2, %v1732_v54, %v1749_v5  ;;  %v1818_v35 = vadd.s32 1, %v4520_v22 }
 0x257   : > { %v1751_v2 = vsel %vm1737_vm4, %v1748_v31, %v1750_v50  ;;  %v6753_v13 = vmul.u32.u64.low %v1752_v11, %v1747_v21  ;;  %v6754_v15 = vmul.u32.u64.high %v1752_v11, %v1747_v21, %v6753_v13  ;;  %v1370_v19 = vcvt.s32.f32 %v6713_v10 }
 0x258   : > { %v6758_v51 = vsub.s32 %v1660_v25, %v1663_v33  ;;  %v6760_v17 = vmul.u32.u64.low %v1752_v11, %v1751_v2  ;;  %v6761_v47 = vmul.u32.u64.high %v1752_v11, %v1751_v2, %v6760_v17  ;;  %v1368_v41 = vand.u32 2147483647, %v6720_v36 }
 0x259   : > { %vm4511_vm5 = vcmp.lt.s32.totalorder %v4510_v16, 0  ;;  %v1743_v58 = vsel %vm1737_vm4, %v1740_v52, %v1742_v27  ;;  %vm1819_vm11 = vcmp.gt.s32.totalorder %v1818_v35, 0  ;;  %v1466_v38 = vshrl.u32 %v6717_v12, %v1464_v1 }
 0x25a   : > { %v1470_v54 = vshll.u32 %v1469_v20, 23  ;;  %v9216_v63 = vand.u32 2147483647, %v6697_v9  ;;  %v1820_v22 = vsel %vm1819_vm11, %v1818_v35, 0  ;;  %v1465_v10 = vshll.u32 %v6619_v44, %v6723_v60 }
 0x25b   : > { %v1762_v25 = vadd.s32 1, %v6754_v15  ;;  %v1822_v2 = vand.u32 31, %v1820_v22  ;;  %v6773_v36 = vadd.f32 %v6304_v26, %v6110_v3  ;;  %v6775_v37 = vsel %vm4511_vm5, 0, %v4510_v16 }
 0x25c   : > { %v1815_v4 = vand.u32 8388607, %v9216_v63  ;;  %v1666_v33 = vsub.s32 0, %v6758_v51  ;;  %v1759_v12 = vmul.u32 %v1752_v11, %v1743_v58  ;;  %vm1761_vm13 = vc.u32 %v6761_v47, %v6753_v13 }
 0x25d   : > { %9217 = vst [vmem:[#allocation51_spill] sm:$0xff] %v6773_v36  ;;  %v6780_v1 = vmul.f32 %v1370_v19, %v1368_v41  ;;  %v1552_v44 = vadd.s32 %v6602_v62, %v6616_v53  ;;  %v1763_v60 = vsel %vm1761_vm13, %v1762_v25, %v6754_v15  ;;  %v1823_v24 = vsub.s32 32, %v1822_v2 }
 0x25e   : > { %v6785_v21 = vor.u32 %v1466_v38, %v1465_v10  ;;  %v6787_v26 = vor.u32 4788187, %v1470_v54  ;;  %v1764_v16 = vadd.s32 %v1763_v60, %v1759_v12  ;;  %v1816_v31 = vor.u32 8388608, %v1815_v4 }
 0x25f   : > { %v1568_v5 = vsub.s32 32, %v6775_v37  ;;  %v1572_v11 = vsub.s32 4294967266, %v6775_v37  ;;  %v1826_v20 = vshrl.u32 %v9182_v6, %v1823_v24  ;;  %v1829_v52 = vshrl.u32 %v9183_v7, %v1823_v24 }
 0x260   : > { %v4513_v27 = vmin.u32 %v1666_v33, %v6758_v51  ;;  %v1765_v62 = vadd.s32 536870912, %v1764_v16  ;;  %v1825_v53 = vshll.u32 %v9188_v43, %v1822_v2  ;;  %v1915_v50 = vand.u32 2139095040, %v6773_v36 }
 0x261   : > { %v1821_v15 = vshrl.u32 %v1820_v22, 5  ;;  %v1828_v35 = vshll.u32 %v9182_v6, %v1822_v2  ;;  %v1831_v19 = vshll.u32 %v9183_v7, %v1822_v2  ;;  %v1832_v17 = vshrl.u32 %v9194_v57, %v1823_v24  ;;  %v6805_v22 = vpop.f32.mrb[19].mxu0 }
 0x262   : > { %v6799_v41 = vshrl.u32 %v1765_v62, 30  ;;  %v1827_v58 = vor.u32 %v1826_v20, %v1825_v53  ;;  %v1834_v38 = vshll.u32 %v9194_v57, %v1822_v2  ;;  %v1835_v54 = vshrl.u32 %v9184_v49, %v1823_v24  ;;  %v6872_v46 = vpop.f32.mrb[20].mxu0 }
 0x263   : > { %v1830_v63 = vor.u32 %v1829_v52, %v1828_v35  ;;  %v1833_v4 = vor.u32 %v1832_v17, %v1831_v19  ;;  %v1837_v10 = vshll.u32 %v9184_v49, %v1822_v2  ;;  %v1838_v25 = vshrl.u32 %v9186_v23, %v1823_v24 }
 0x264   : > { %9218 = vst [vmem:[#allocation52_spill] sm:$0xff] %v6799_v41  ;;  %v1570_v33 = vshrl.u32 %v1552_v44, %v1568_v5  ;;  %v1767_v12 = vshll.u32 %v6799_v41, 30  ;;  %v1836_v60 = vor.u32 %v1835_v54, %v1834_v38  ;;  %v1573_v30 = vadd.s32 127, %v1572_v11 }
 0x265   : > { %v1668_v20 = vclz %v4513_v27  ;;  %v1839_v53 = vor.u32 %v1838_v25, %v1837_v10  ;;  %v1916_v55 = vshrl.u32 %v1915_v50, 23  ;;  %v1824_v61 = vshrl.u32 %v9188_v43, %v1823_v24 }
 0x266   : > { %vm1840_vm14 = vcmp.lt.s32.totalorder %v1821_v15, 1  ;;  %vm1843_vm15 = vcmp.lt.s32.totalorder %v1821_v15, 4  ;;  %v1856_v52 = vshll.u32 %v1816_v31, 8  ;;  %vm1842_vm1 = vcmp.lt.s32.totalorder %v1821_v15, 3 }
 0x267   : > { %v1845_v2 = vsel %vm1843_vm15, %v1833_v4, 2102212464  ;;  %v1848_v35 = vsel %vm1840_vm14, %v1827_v58, %v1830_v63  ;;  %v1849_v19 = vsel %vm1843_vm15, %v1836_v60, 920167782  ;;  %v6811_v44 = vsub.s32 %v1764_v16, %v1767_v12 }
 0x268   : > { %vm1841_vm2 = vcmp.lt.s32.totalorder %v1821_v15, 2  ;;  %v1850_v5 = vsel %vm1842_vm1, %v1833_v4, %v1849_v19  ;;  %v1852_v17 = vsel %vm1840_vm14, %v1830_v63, %v1833_v4  ;;  %v4514_v11 = vadd.s32 4294967294, %v1668_v20 }
 0x269   : > { %v1851_v27 = vsel %vm1841_vm2, %v1848_v35, %v1850_v5  ;;  %v1853_v50 = vsel %vm1843_vm15, %v1839_v53, 1326507024  ;;  %v4524_v38 = vadd.s32 4294967169, %v1916_v55  ;;  %v1574_v24 = vshll.u32 %v1573_v30, 23 }
 0x26a   : > { %v1844_v54 = vsel %vm1840_vm14, %v1824_v61, %v1827_v58  ;;  %v1846_v31 = vsel %vm1842_vm1, %v1830_v63, %v1845_v2  ;;  %v1854_v10 = vsel %vm1842_vm1, %v1836_v60, %v1853_v50  ;;  %v1569_v4 = vshll.u32 %v6686_v28, %v6775_v37 }
 0x26b   : > { %v1855_v25 = vsel %vm1841_vm2, %v1852_v17, %v1854_v10  ;;  %v6817_v62 = vmul.u32.u64.low %v1856_v52, %v1851_v27  ;;  %v6818_v41 = vmul.u32.u64.high %v1856_v52, %v1851_v27, %v6817_v62  ;;  %v1922_v16 = vadd.s32 1, %v4524_v38 }
 0x26c   : > { %v1770_v12 = vsub.s32 0, %v6811_v44  ;;  %v6824_v20 = vmul.u32.u64.low %v1856_v52, %v1855_v25  ;;  %v6825_v53 = vmul.u32.u64.high %v1856_v52, %v1855_v25, %v6824_v20  ;;  %v1472_v30 = vand.u32 2147483647, %v6787_v26 }
 0x26d   : > { %vm4515_vm3 = vcmp.lt.s32.totalorder %v4514_v11, 0  ;;  %v1847_v61 = vsel %vm1841_vm2, %v1844_v54, %v1846_v31  ;;  %vm1923_vm4 = vcmp.gt.s32.totalorder %v1922_v16, 0  ;;  %v6830_v58 = vor.u32 %v1570_v33, %v1569_v4 }
 0x26e   : > { %v6832_v63 = vor.u32 4788187, %v1574_v24  ;;  %v1924_v60 = vsel %vm1923_vm4, %v1922_v16, 0  ;;  %v1474_v28 = vcvt.s32.f32 %v6785_v21  ;;  %v1866_v37 = vadd.s32 1, %v6818_v41  ;;  %v9220_v21 = vld [vmem:[#allocation31_spill] sm:$0xff] }
 0x26f   : > { %v9219_v2 = vand.u32 2147483647, %v6773_v36  ;;  %v1926_v19 = vand.u32 31, %v1924_v60  ;;  %v6838_v26 = vsel %vm4515_vm3, 0, %v4514_v11  ;;  %v4517_v15 = vmin.u32 %v1770_v12, %v6811_v44 }
 0x270   : > { %v1863_v5 = vmul.u32 %v1856_v52, %v1847_v61  ;;  %vm1865_vm5 = vc.u32 %v6825_v53, %v6817_v62  ;;  %v6843_v33 = vmul.f32 %v1474_v28, %v1472_v30  ;;  %v6848_v50 = vadd.f32 %v9220_v21, %v6122_v14 }
 0x271   : > { %v1919_v35 = vand.u32 8388607, %v9219_v2  ;;  %v1867_v17 = vsel %vm1865_vm5, %v1866_v37, %v6818_v41  ;;  %v1927_v27 = vsub.s32 32, %v1926_v19  ;;  %v1576_v38 = vand.u32 2147483647, %v6832_v63 }
 0x272   : > { %v1578_v11 = vcvt.s32.f32 %v6830_v58  ;;  %v1656_v24 = vadd.s32 %v6678_v32, %v6689_v39  ;;  %v1868_v52 = vadd.s32 %v1867_v17, %v1863_v5  ;;  %v1672_v54 = vsub.s32 32, %v6838_v26  ;;  %v9221_v5 = vld [vmem:[#allocation29_spill] sm:$0xff] }
 0x273   : > { %v1920_v31 = vor.u32 8388608, %v1919_v35  ;;  %v1930_v10 = vshrl.u32 %v9182_v6, %v1927_v27  ;;  %v1933_v41 = vshrl.u32 %v9183_v7, %v1927_v27  ;;  %v1676_v25 = vsub.s32 4294967266, %v6838_v26 }
 0x274   : > { %v1772_v16 = vclz %v4517_v15  ;;  %v1869_v4 = vadd.s32 536870912, %v1868_v52  ;;  %v1929_v12 = vshll.u32 %v9188_v43, %v1926_v19  ;;  %v1932_v20 = vshll.u32 %v9182_v6, %v1926_v19 }
 0x275   : > { %v1935_v30 = vshll.u32 %v9183_v7, %v1926_v19  ;;  %v1936_v32 = vshrl.u32 %v9194_v57, %v1927_v27  ;;  %v2019_v39 = vand.u32 2139095040, %v6848_v50  ;;  %v1925_v61 = vshrl.u32 %v1924_v60, 5 }
 0x276   : > { %v1931_v58 = vor.u32 %v1930_v10, %v1929_v12  ;;  %v1938_v63 = vshll.u32 %v9194_v57, %v1926_v19  ;;  %v1939_v28 = vshrl.u32 %v9184_v49, %v1927_v27  ;;  %v1934_v37 = vor.u32 %v1933_v41, %v1932_v20 }
 0x277   : > { %v1937_v2 = vor.u32 %v1936_v32, %v1935_v30  ;;  %v1941_v35 = vshll.u32 %v9184_v49, %v1926_v19  ;;  %v1942_v15 = vshrl.u32 %v9186_v23, %v1927_v27  ;;  %vm1290_vm11 = vcmp.lt.s32.totalorder %v9221_v5, 0 }
 0x278   : > { %v1673_v17 = vshll.u32 %v6758_v51, %v6838_v26  ;;  %v1674_v21 = vshrl.u32 %v1656_v24, %v1672_v54  ;;  %v6870_v55 = vshrl.u32 %v1869_v4, 30  ;;  %v1940_v60 = vor.u32 %v1939_v28, %v1938_v63 }
 0x279   : > { %v1677_v10 = vadd.s32 127, %v1676_v25  ;;  %v4518_v12 = vadd.s32 4294967294, %v1772_v16  ;;  %v1943_v18 = vor.u32 %v1942_v15, %v1941_v35  ;;  %v2020_v34 = vshrl.u32 %v2019_v39, 23 }
 0x27a   : > { %9222 = vst [vmem:[#allocation31_spill] sm:$0xff] %v6870_v55  ;;  %v1928_v41 = vshrl.u32 %v9188_v43, %v1927_v27  ;;  %vm1944_vm13 = vcmp.lt.s32.totalorder %v1925_v61, 1  ;;  %vm1947_vm14 = vcmp.lt.s32.totalorder %v1925_v61, 4  ;;  %v1960_v19 = vshll.u32 %v1920_v31, 8 }
 0x27b   : > { %vm1946_vm15 = vcmp.lt.s32.totalorder %v1925_v61, 3  ;;  %v1949_v20 = vsel %vm1947_vm14, %v1937_v2, 2102212464  ;;  %v1952_v30 = vsel %vm1944_vm13, %v1931_v58, %v1934_v37  ;;  %v1953_v51 = vsel %vm1947_vm14, %v1940_v60, 920167782 }
 0x27c   : > { %v1871_v26 = vshll.u32 %v6870_v55, 30  ;;  %vm1945_vm1 = vcmp.lt.s32.totalorder %v1925_v61, 2  ;;  %v1954_v24 = vsel %vm1946_vm15, %v1937_v2, %v1953_v51  ;;  %v1956_v54 = vsel %vm1944_vm13, %v1934_v37, %v1937_v2  ;;  %v9225_v61 = vld [vmem:[#allocation35_spill] sm:$0xff] }
 0x27d   : > { %vm4519_vm2 = vcmp.lt.s32.totalorder %v4518_v12, 0  ;;  %v1955_v25 = vsel %vm1945_vm1, %v1952_v30, %v1954_v24  ;;  %v1957_v16 = vsel %vm1947_vm14, %v1943_v18, 1326507024  ;;  %v4528_v4 = vadd.s32 4294967169, %v2020_v34 }
 0x27e   : > { %v1678_v27 = vshll.u32 %v1677_v10, 23  ;;  %v1948_v32 = vsel %vm1944_vm13, %v1928_v41, %v1931_v58  ;;  %v1950_v31 = vsel %vm1946_vm15, %v1934_v37, %v1949_v20  ;;  %v1958_v39 = vsel %vm1946_vm15, %v1940_v60, %v1957_v16 }
 0x27f   : > { %v1959_v63 = vsel %vm1945_vm1, %v1956_v54, %v1958_v39  ;;  %v6881_v28 = vmul.u32.u64.low %v1960_v19, %v1955_v25  ;;  %v6882_v35 = vmul.u32.u64.high %v1960_v19, %v1955_v25, %v6881_v28  ;;  %v2026_v15 = vadd.s32 1, %v4528_v4 }
 0x280   : > { %v6885_v51 = vsel %vm4519_vm2, 0, %v4518_v12  ;;  %v6887_v2 = vsub.s32 %v1868_v52, %v1871_v26  ;;  %v6889_v55 = vmul.u32.u64.low %v1960_v19, %v1959_v63  ;;  %v6890_v30 = vmul.u32.u64.high %v1960_v19, %v1959_v63, %v6889_v55 }
 0x281   : > { %v9223_v18 = vxor.u32 2147483648, %v6780_v1  ;;  %v6899_v58 = vmul.f32 %v1578_v11, %v1576_v38  ;;  %v1951_v37 = vsel %vm1945_vm1, %v1948_v32, %v1950_v31  ;;  %vm2027_vm3 = vcmp.gt.s32.totalorder %v2026_v15, 0 }
 0x282   : > { %v6902_v60 = vor.u32 %v1674_v21, %v1673_v17  ;;  %v6904_v10 = vor.u32 4788187, %v1678_v27  ;;  %v9072_v52 = vand.u32 2147483647, %v6848_v50  ;;  %v2028_v12 = vsel %vm2027_vm3, %v2026_v15, 0 }
 0x283   : > { %v6897_v34 = vsel %vm1290_vm11, %v9223_v18, %v6780_v1  ;;  %v1780_v41 = vsub.s32 4294967266, %v6885_v51  ;;  %v1970_v20 = vadd.s32 1, %v6882_v35  ;;  %v2030_v1 = vand.u32 31, %v2028_v12 }
 0x284   : > { %9224 = vst [vmem:[#allocation53_spill] sm:$0xff] %v6897_v34  ;;  %v1874_v38 = vsub.s32 0, %v6887_v2  ;;  %v1967_v11 = vmul.u32 %v1960_v19, %v1951_v37  ;;  %vm1969_vm4 = vc.u32 %v6890_v30, %v6881_v28  ;;  %v6915_v17 = vadd.f32 %v9225_v61, %v6110_v3 }
 0x285   : > { %v1760_v26 = vadd.s32 %v6753_v13, %v6761_v47  ;;  %v1971_v24 = vsel %vm1969_vm4, %v1970_v20, %v6882_v35  ;;  %v2031_v54 = vsub.s32 32, %v2030_v1  ;;  %v1682_v16 = vcvt.s32.f32 %v6902_v60 }
 0x286   : > { %9226 = vst [vmem:[#allocation35_spill] sm:$0xff] %v6915_v17  ;;  %v1972_v19 = vadd.s32 %v1971_v24, %v1967_v11  ;;  %v2023_v4 = vand.u32 8388607, %v9072_v52  ;;  %v1776_v27 = vsub.s32 32, %v6885_v51  ;;  %v1781_v32 = vadd.s32 127, %v1780_v41 }
 0x287   : > { %v2034_v31 = vshrl.u32 %v9182_v6, %v2031_v54  ;;  %v2037_v39 = vshrl.u32 %v9183_v7, %v2031_v54  ;;  %v4521_v13 = vmin.u32 %v1874_v38, %v6887_v2  ;;  %v2033_v63 = vshll.u32 %v9188_v43, %v2030_v1 }
 0x288   : > { %v1973_v47 = vadd.s32 536870912, %v1972_v19  ;;  %v2123_v35 = vand.u32 2139095040, %v6915_v17  ;;  %v2029_v15 = vshrl.u32 %v2028_v12, 5  ;;  %v2036_v18 = vshll.u32 %v9182_v6, %v2030_v1  ;;  %v6940_v12 = vpop.f32.mrb[21].mxu0 }
 0x289   : > { %v2039_v37 = vshll.u32 %v9183_v7, %v2030_v1  ;;  %v2040_v60 = vshrl.u32 %v9194_v57, %v2031_v54  ;;  %v2035_v41 = vor.u32 %v2034_v31, %v2033_v63  ;;  %v2042_v11 = vshll.u32 %v9194_v57, %v2030_v1 }
 0x28a   : > { %v6934_v20 = vshrl.u32 %v1973_v47, 30  ;;  %v2043_v61 = vshrl.u32 %v9184_v49, %v2031_v54  ;;  %v2038_v38 = vor.u32 %v2037_v39, %v2036_v18  ;;  %v2045_v52 = vshll.u32 %v9184_v49, %v2030_v1 }
 0x28b   : > { %v2041_v24 = vor.u32 %v2040_v60, %v2039_v37  ;;  %v2046_v21 = vshrl.u32 %v9186_v23, %v2031_v54  ;;  %vm1394_vm5 = vcmp.lt.s32.totalorder %v6444_v56, 0  ;;  %v1777_v25 = vshll.u32 %v6811_v44, %v6885_v51 }
 0x28c   : > { %9227 = vst [vmem:[#allocation54_spill] sm:$0xff] %v6934_v20  ;;  %v1975_v47 = vshll.u32 %v6934_v20, 30  ;;  %v2024_v31 = vor.u32 8388608, %v2023_v4  ;;  %v2044_v63 = vor.u32 %v2043_v61, %v2042_v11  ;;  %v1778_v55 = vshrl.u32 %v1760_v26, %v1776_v27 }
 0x28d   : > { %v1782_v34 = vshll.u32 %v1781_v32, 23  ;;  %v2047_v5 = vor.u32 %v2046_v21, %v2045_v52  ;;  %v2124_v39 = vshrl.u32 %v2123_v35, 23  ;;  %vm9090_vm13 = vcmp.lt.s32.totalorder %v6470_v8, 0 }
 0x28e   : > { %v1876_v1 = vclz %v4521_v13  ;;  %v2032_v18 = vshrl.u32 %v9188_v43, %v2031_v54  ;;  %vm2048_vm14 = vcmp.lt.s32.totalorder %v2029_v15, 1  ;;  %vm2051_vm15 = vcmp.lt.s32.totalorder %v2029_v15, 4 }
 0x28f   : > { %vm2050_vm1 = vcmp.lt.s32.totalorder %v2029_v15, 3  ;;  %v2053_v37 = vsel %vm2051_vm15, %v2041_v24, 2102212464  ;;  %v2056_v60 = vsel %vm2048_vm14, %v2035_v41, %v2038_v38  ;;  %v2057_v59 = vsel %vm2051_vm15, %v2044_v63, 920167782 }
 0x290   : > { %v6948_v44 = vsub.s32 %v1972_v19, %v1975_v47  ;;  %vm2049_vm2 = vcmp.lt.s32.totalorder %v2029_v15, 2  ;;  %v2058_v51 = vsel %vm2050_vm1, %v2041_v24, %v2057_v59  ;;  %v2060_v4 = vsel %vm2048_vm14, %v2038_v38, %v2041_v24 }
 0x291   : > { %v2059_v26 = vsel %vm2049_vm2, %v2056_v60, %v2058_v51  ;;  %v2061_v52 = vsel %vm2051_vm15, %v2047_v5, 1326507024  ;;  %v2064_v21 = vshll.u32 %v2024_v31, 8  ;;  %v4532_v27 = vadd.s32 4294967169, %v2124_v39 }
 0x292   : > { %v2052_v32 = vsel %vm2048_vm14, %v2032_v18, %v2035_v41  ;;  %v2054_v13 = vsel %vm2050_vm1, %v2038_v38, %v2053_v37  ;;  %v2062_v35 = vsel %vm2050_vm1, %v2044_v63, %v2061_v52  ;;  %v9078_v54 = vand.u32 2147483647, %v6915_v17 }
 0x293   : > { %v2063_v11 = vsel %vm2049_vm2, %v2060_v4, %v2062_v35  ;;  %v6953_v61 = vmul.u32.u64.low %v2064_v21, %v2059_v26  ;;  %v6954_v20 = vmul.u32.u64.high %v2064_v21, %v2059_v26, %v6953_v61  ;;  %v2130_v19 = vadd.s32 1, %v4532_v27 }
 0x294   : > { %v4522_v47 = vadd.s32 4294967294, %v1876_v1  ;;  %v1978_v59 = vsub.s32 0, %v6948_v44  ;;  %v6958_v24 = vmul.u32.u64.low %v2064_v21, %v2063_v11  ;;  %v6959_v60 = vmul.u32.u64.high %v2064_v21, %v2063_v11, %v6958_v24 }
 0x295   : > { %v9228_v5 = vxor.u32 2147483648, %v6843_v33  ;;  %v9230_v38 = vand.u32 2147483647, %v6904_v10  ;;  %v2055_v63 = vsel %vm2049_vm2, %v2052_v32, %v2054_v13  ;;  %vm2131_vm3 = vcmp.gt.s32.totalorder %v2130_v19, 0 }
 0x296   : > { %v6973_v39 = vor.u32 %v1778_v55, %v1777_v25  ;;  %v6975_v1 = vor.u32 4788187, %v1782_v34  ;;  %v2132_v18 = vsel %vm2131_vm3, %v2130_v19, 0  ;;  %v6979_v37 = vadd.f32 %v6524_v40, %v6122_v14  ;;  %v7022_v40 = vpop.f32.mrb[22].mxu0 }
 0x297   : > { %v6966_v41 = vsel %vm1394_vm5, %v9228_v5, %v6843_v33  ;;  %v6970_v31 = vmul.f32 %v1682_v16, %v9230_v38  ;;  %v9231_v33 = vxor.u32 2147483648, %v6899_v58  ;;  %v2074_v16 = vadd.s32 1, %v6954_v20 }
 0x298   : > { %9229 = vst [vmem:[#allocation55_spill] sm:$0xff] %v6966_v41  ;;  %v2127_v55 = vand.u32 8388607, %v9078_v54  ;;  %v2134_v25 = vand.u32 31, %v2132_v18  ;;  %vm4523_vm4 = vcmp.lt.s32.totalorder %v4522_v47, 0  ;;  %v4525_v34 = vmin.u32 %v1978_v59, %v6948_v44 }
 0x299   : > { %v6986_v10 = vsel %vm9090_vm13, %v9231_v33, %v6899_v58  ;;  %v2071_v15 = vmul.u32 %v2064_v21, %v2055_v63  ;;  %vm2073_vm14 = vc.u32 %v6959_v60, %v6953_v61  ;;  %v6997_v51 = vadd.s32 %v6817_v62, %v6825_v53 }
 0x29a   : > { %9232 = vst [vmem:[#allocation56_spill] sm:$0xff] %v6986_v10  ;;  %v2075_v58 = vsel %vm2073_vm14, %v2074_v16, %v6954_v20  ;;  %v2135_v4 = vsub.s32 32, %v2134_v25  ;;  %v1784_v26 = vand.u32 2147483647, %v6975_v1  ;;  %v1786_v52 = vcvt.s32.f32 %v6973_v39 }
 0x29b   : > { %v2076_v27 = vadd.s32 %v2075_v58, %v2071_v15  ;;  %v7003_v21 = vsel %vm4523_vm4, 0, %v4522_v47  ;;  %v2128_v13 = vor.u32 8388608, %v2127_v55  ;;  %v1980_v19 = vclz %v4525_v34 }
 0x29c   : > { %v2138_v35 = vshrl.u32 %v9182_v6, %v2135_v4  ;;  %v2141_v11 = vshrl.u32 %v9183_v7, %v2135_v4  ;;  %v2137_v53 = vshll.u32 %v9188_v43, %v2134_v25  ;;  %v2227_v20 = vand.u32 2139095040, %v6979_v37 }
 0x29d   : > { %v2077_v62 = vadd.s32 536870912, %v2076_v27  ;;  %v2133_v59 = vshrl.u32 %v2132_v18, 5  ;;  %v2140_v24 = vshll.u32 %v9182_v6, %v2134_v25  ;;  %v2143_v5 = vshll.u32 %v9183_v7, %v2134_v25 }
 0x29e   : > { %v2144_v38 = vshrl.u32 %v9194_v57, %v2135_v4  ;;  %v2139_v63 = vor.u32 %v2138_v35, %v2137_v53  ;;  %v2146_v39 = vshll.u32 %v9194_v57, %v2134_v25  ;;  %v2147_v1 = vshrl.u32 %v9184_v49, %v2135_v4 }
 0x29f   : > { %v7012_v47 = vshrl.u32 %v2077_v62, 30  ;;  %v2142_v33 = vor.u32 %v2141_v11, %v2140_v24  ;;  %v2149_v55 = vshll.u32 %v9184_v49, %v2134_v25  ;;  %v2150_v34 = vshrl.u32 %v9186_v23, %v2135_v4 }
 0x2a0   : > { %v2145_v16 = vor.u32 %v2144_v38, %v2143_v5  ;;  %vm9119_vm15 = vcmp.lt.s32.totalorder %v6519_v42, 0  ;;  %v1880_v18 = vsub.s32 32, %v7003_v21  ;;  %v1884_v15 = vsub.s32 4294967266, %v7003_v21 }
 0x2a1   : > { %9233 = vst [vmem:[#allocation57_spill] sm:$0xff] %v7012_v47  ;;  %v2079_v58 = vshll.u32 %v7012_v47, 30  ;;  %v2148_v62 = vor.u32 %v2147_v1, %v2146_v39  ;;  %v4526_v35 = vadd.s32 4294967294, %v1980_v19  ;;  %v2151_v53 = vor.u32 %v2150_v34, %v2149_v55 }
 0x2a2   : > { %v2168_v54 = vshll.u32 %v2128_v13, 8  ;;  %v2228_v32 = vshrl.u32 %v2227_v20, 23  ;;  %v2136_v25 = vshrl.u32 %v9188_v43, %v2135_v4  ;;  %vm2152_vm1 = vcmp.lt.s32.totalorder %v2133_v59, 1 }
 0x2a3   : > { %v7024_v11 = vsub.s32 %v2076_v27, %v2079_v58  ;;  %vm2155_vm2 = vcmp.lt.s32.totalorder %v2133_v59, 4  ;;  %vm2154_vm3 = vcmp.lt.s32.totalorder %v2133_v59, 3  ;;  %v2160_v5 = vsel %vm2152_vm1, %v2139_v63, %v2142_v33 }
 0x2a4   : > { %v2157_v24 = vsel %vm2155_vm2, %v2145_v16, 2102212464  ;;  %v2161_v38 = vsel %vm2155_vm2, %v2148_v62, 920167782  ;;  %vm2153_vm4 = vcmp.lt.s32.totalorder %v2133_v59, 2  ;;  %v2164_v19 = vsel %vm2152_vm1, %v2142_v33, %v2145_v16 }
 0x2a5   : > { %v2082_v10 = vsub.s32 0, %v7024_v11  ;;  %v2162_v39 = vsel %vm2154_vm3, %v2145_v16, %v2161_v38  ;;  %vm4527_vm14 = vcmp.lt.s32.totalorder %v4526_v35, 0  ;;  %v2165_v20 = vsel %vm2155_vm2, %v2151_v53, 1326507024 }
 0x2a6   : > { %v2163_v13 = vsel %vm2153_vm4, %v2160_v5, %v2162_v39  ;;  %v4536_v1 = vadd.s32 4294967169, %v2228_v32  ;;  %v1885_v27 = vadd.s32 127, %v1884_v15  ;;  %v2156_v55 = vsel %vm2152_vm1, %v2136_v25, %v2139_v63 }
 0x2a7   : > { %v2158_v34 = vsel %vm2154_vm3, %v2142_v33, %v2157_v24  ;;  %v2166_v4 = vsel %vm2154_vm3, %v2148_v62, %v2165_v20  ;;  %v7030_v47 = vmul.u32.u64.low %v2168_v54, %v2163_v13  ;;  %v7031_v8 = vmul.u32.u64.high %v2168_v54, %v2163_v13, %v7030_v47 }
 0x2a8   : > { %v2167_v58 = vsel %vm2153_vm4, %v2164_v19, %v2166_v4  ;;  %v2234_v41 = vadd.s32 1, %v4536_v1  ;;  %v7034_v56 = vsel %vm4527_vm14, 0, %v4526_v35  ;;  %v4529_v16 = vmin.u32 %v2082_v10, %v7024_v11 }
 0x2a9   : > { %v7037_v38 = vmul.u32.u64.low %v2168_v54, %v2167_v58  ;;  %v7038_v17 = vmul.u32.u64.high %v2168_v54, %v2167_v58, %v7037_v38  ;;  %v9234_v32 = vxor.u32 2147483648, %v6970_v31  ;;  %v7047_v33 = vmul.f32 %v1786_v52, %v1784_v26 }
 0x2aa   : > { %v2159_v15 = vsel %vm2153_vm4, %v2156_v55, %v2158_v34  ;;  %vm2235_vm1 = vcmp.gt.s32.totalorder %v2234_v41, 0  ;;  %v1882_v62 = vshrl.u32 %v6997_v51, %v1880_v18  ;;  %v1886_v35 = vshll.u32 %v1885_v27, 23 }
 0x2ab   : > { %v7045_v63 = vsel %vm9119_vm15, %v9234_v32, %v6970_v31  ;;  %v9236_v10 = vand.u32 2147483647, %v6979_v37  ;;  %v2236_v25 = vsel %vm2235_vm1, %v2234_v41, 0  ;;  %v1881_v24 = vshll.u32 %v6887_v2, %v7003_v21 }
 0x2ac   : > { %9235 = vst [vmem:[#allocation58_spill] sm:$0xff] %v7045_v63  ;;  %v1988_v5 = vsub.s32 4294967266, %v7034_v56  ;;  %v2178_v31 = vadd.s32 1, %v7031_v8  ;;  %v2238_v39 = vand.u32 31, %v2236_v25  ;;  %v2084_v26 = vclz %v4529_v16 }
 0x2ad   : > { %v2231_v53 = vand.u32 8388607, %v9236_v10  ;;  %v2175_v52 = vmul.u32 %v2168_v54, %v2159_v15  ;;  %vm2177_vm2 = vc.u32 %v7038_v17, %v7030_v47  ;;  %v7061_v51 = vadd.f32 %v6591_v48, %v6110_v3 }
 0x2ae   : > { %v1968_v41 = vadd.s32 %v6881_v28, %v6890_v30  ;;  %v2179_v2 = vsel %vm2177_vm2, %v2178_v31, %v7031_v8  ;;  %v2239_v21 = vsub.s32 32, %v2238_v39  ;;  %v7067_v18 = vor.u32 %v1882_v62, %v1881_v24 }
 0x2af   : > { %9237 = vst [vmem:[#allocation59_spill] sm:$0xff] %v7061_v51  ;;  %v7069_v19 = vor.u32 4788187, %v1886_v35  ;;  %v2180_v54 = vadd.s32 %v2179_v2, %v2175_v52  ;;  %v2232_v13 = vor.u32 8388608, %v2231_v53  ;;  %v1984_v20 = vsub.s32 32, %v7034_v56 }
 0x2b0   : > { %v1989_v1 = vadd.s32 127, %v1988_v5  ;;  %v2242_v48 = vshrl.u32 %v9182_v6, %v2239_v21  ;;  %v2245_v27 = vshrl.u32 %v9183_v7, %v2239_v21  ;;  %v4530_v55 = vadd.s32 4294967294, %v2084_v26 }
 0x2b1   : > { %v2181_v34 = vadd.s32 536870912, %v2180_v54  ;;  %v2241_v28 = vshll.u32 %v9188_v43, %v2238_v39  ;;  %v2331_v8 = vand.u32 2139095040, %v7061_v51  ;;  %v2237_v30 = vshrl.u32 %v2236_v25, 5 }
 0x2b2   : > { %v2244_v4 = vshll.u32 %v9182_v6, %v2238_v39  ;;  %v2247_v58 = vshll.u32 %v9183_v7, %v2238_v39  ;;  %v2248_v16 = vshrl.u32 %v9194_v57, %v2239_v21  ;;  %v2250_v15 = vshll.u32 %v9194_v57, %v2238_v39 }
 0x2b3   : > { %v7079_v38 = vshrl.u32 %v2181_v34, 30  ;;  %v2243_v32 = vor.u32 %v2242_v48, %v2241_v28  ;;  %v2251_v62 = vshrl.u32 %v9184_v49, %v2239_v21  ;;  %v2253_v53 = vshll.u32 %v9184_v49, %v2238_v39 }
 0x2b4   : > { %v2246_v35 = vor.u32 %v2245_v27, %v2244_v4  ;;  %v2249_v10 = vor.u32 %v2248_v16, %v2247_v58  ;;  %v2254_v24 = vshrl.u32 %v9186_v23, %v2239_v21  ;;  %v1890_v25 = vcvt.s32.f32 %v7067_v18  ;;  %v7090_v18 = vpop.f32.mrb[23].mxu0 }
 0x2b5   : > { %9238 = vst [vmem:[#allocation60_spill] sm:$0xff] %v7079_v38  ;;  %v1985_v5 = vshll.u32 %v6948_v44, %v7034_v56  ;;  %v1986_v31 = vshrl.u32 %v1968_v41, %v1984_v20  ;;  %v2252_v26 = vor.u32 %v2251_v62, %v2250_v15  ;;  %v1990_v52 = vshll.u32 %v1989_v1, 23 }
 0x2b6   : > { %v2255_v2 = vor.u32 %v2254_v24, %v2253_v53  ;;  %v2272_v48 = vshll.u32 %v2232_v13, 8  ;;  %v2332_v34 = vshrl.u32 %v2331_v8, 23  ;;  %vm4531_vm3 = vcmp.lt.s32.totalorder %v4530_v55, 0 }
 0x2b7   : > { %v2183_v28 = vshll.u32 %v7079_v38, 30  ;;  %vm2256_vm4 = vcmp.lt.s32.totalorder %v2237_v30, 1  ;;  %vm2259_vm14 = vcmp.lt.s32.totalorder %v2237_v30, 4  ;;  %vm2258_vm1 = vcmp.lt.s32.totalorder %v2237_v30, 3 }
 0x2b8   : > { %v2261_v39 = vsel %vm2259_vm14, %v2249_v10, 2102212464  ;;  %v2264_v27 = vsel %vm2256_vm4, %v2243_v32, %v2246_v35  ;;  %v2265_v4 = vsel %vm2259_vm14, %v2252_v26, 920167782  ;;  %v2240_v56 = vshrl.u32 %v9188_v43, %v2239_v21 }
 0x2b9   : > { %vm2257_vm2 = vcmp.lt.s32.totalorder %v2237_v30, 2  ;;  %v2266_v44 = vsel %vm2258_vm1, %v2249_v10, %v2265_v4  ;;  %v2268_v41 = vsel %vm2256_vm4, %v2246_v35, %v2249_v10  ;;  %v2087_v13 = vsel %vm4531_vm3, 0, %v4530_v55 }
 0x2ba   : > { %v2267_v20 = vsel %vm2257_vm2, %v2264_v27, %v2266_v44  ;;  %v2269_v1 = vsel %vm2259_vm14, %v2255_v2, 1326507024  ;;  %v4540_v8 = vadd.s32 4294967169, %v2332_v34  ;;  %v7096_v58 = vsub.s32 %v2180_v54, %v2183_v28 }
 0x2bb   : > { %v2260_v16 = vsel %vm2256_vm4, %v2240_v56, %v2243_v32  ;;  %v2262_v15 = vsel %vm2258_vm1, %v2246_v35, %v2261_v39  ;;  %v2270_v62 = vsel %vm2258_vm1, %v2252_v26, %v2269_v1  ;;  %v1888_v55 = vand.u32 2147483647, %v7069_v19 }
 0x2bc   : > { %v2271_v21 = vsel %vm2257_vm2, %v2268_v41, %v2270_v62  ;;  %v7102_v53 = vmul.u32.u64.low %v2272_v48, %v2267_v20  ;;  %v7103_v24 = vmul.u32.u64.high %v2272_v48, %v2267_v20, %v7102_v53  ;;  %v2338_v10 = vadd.s32 1, %v4540_v8 }
 0x2bd   : > { %v7107_v27 = vmul.u32.u64.low %v2272_v48, %v2271_v21  ;;  %v7108_v2 = vmul.u32.u64.high %v2272_v48, %v2271_v21, %v7107_v27  ;;  %v9087_v54 = vand.u32 2147483647, %v7061_v51  ;;  %v7111_v34 = vor.u32 %v1986_v31, %v1985_v5 }
 0x2be   : > { %v2263_v32 = vsel %vm2257_vm2, %v2260_v16, %v2262_v15  ;;  %vm2339_vm3 = vcmp.gt.s32.totalorder %v2338_v10, 0  ;;  %v7116_v35 = vadd.f32 %v6661_v29, %v6122_v14  ;;  %v7118_v26 = vor.u32 4788187, %v1990_v52 }
 0x2bf   : > { %v2088_v28 = vsub.s32 32, %v2087_v13  ;;  %v2340_v39 = vsel %vm2339_vm3, %v2338_v10, 0  ;;  %v2092_v4 = vsub.s32 4294967266, %v2087_v13  ;;  %v2186_v19 = vsub.s32 0, %v7096_v58 }
 0x2c0   : > { %v2282_v56 = vadd.s32 1, %v7103_v24  ;;  %v2342_v44 = vand.u32 31, %v2340_v39  ;;  %v9088_v41 = vmov 0.0|0.0   ;;  %v2072_v30 = vadd.s32 %v6953_v61, %v6959_v60 }
 0x2c1   : > { %5057 = vmatprep.subr.bf16.mxu0 %v9088_v41  ;;  %v2279_v5 = vmul.u32 %v2272_v48, %v2263_v32  ;;  %vm2281_vm4 = vc.u32 %v7108_v2, %v7102_v53  ;;  %v2335_v29 = vand.u32 8388607, %v9087_v54  ;;  %v7129_v31 = vmul.f32 %v1890_v25, %v1888_v55 }
 0x2c2   : > { %v2283_v20 = vsel %vm2281_vm4, %v2282_v56, %v7103_v24  ;;  %v2343_v1 = vsub.s32 32, %v2342_v44  ;;  %v2089_v16 = vshll.u32 %v7024_v11, %v2087_v13  ;;  %v2090_v15 = vshrl.u32 %v2072_v30, %v2088_v28 }
 0x2c3   : > { %v2284_v61 = vadd.s32 %v2283_v20, %v2279_v5  ;;  %v2093_v60 = vadd.s32 127, %v2092_v4  ;;  %v4533_v48 = vmin.u32 %v2186_v19, %v7096_v58  ;;  %v2336_v10 = vor.u32 8388608, %v2335_v29 }
 0x2c4   : > { %v2346_v62 = vshrl.u32 %v9182_v6, %v2343_v1  ;;  %v2349_v21 = vshrl.u32 %v9183_v7, %v2343_v1  ;;  %v2345_v55 = vshll.u32 %v9188_v43, %v2342_v44  ;;  %v2435_v24 = vand.u32 2139095040, %v7116_v35 }
 0x2c5   : > { %v2285_v25 = vadd.s32 536870912, %v2284_v61  ;;  %v2341_v27 = vshrl.u32 %v2340_v39, 5  ;;  %v2348_v32 = vshll.u32 %v9182_v6, %v2342_v44  ;;  %v2351_v11 = vshll.u32 %v9183_v7, %v2342_v44 }
 0x2c6   : > { %v2352_v13 = vshrl.u32 %v9194_v57, %v2343_v1  ;;  %v2347_v4 = vor.u32 %v2346_v62, %v2345_v55  ;;  %v2354_v19 = vshll.u32 %v9194_v57, %v2342_v44  ;;  %v2355_v56 = vshrl.u32 %v9184_v49, %v2343_v1 }
 0x2c7   : > { %v7143_v28 = vshrl.u32 %v2285_v25, 30  ;;  %v2350_v30 = vor.u32 %v2349_v21, %v2348_v32  ;;  %v2357_v29 = vshll.u32 %v9184_v49, %v2342_v44  ;;  %v2358_v20 = vshrl.u32 %v9186_v23, %v2343_v1 }
 0x2c8   : > { %v2353_v5 = vor.u32 %v2352_v13, %v2351_v11  ;;  %v7149_v39 = vor.u32 %v2090_v15, %v2089_v16  ;;  %v2356_v41 = vor.u32 %v2355_v56, %v2354_v19  ;;  %v2094_v25 = vshll.u32 %v2093_v60, 23  ;;  %v7155_v15 = vpop.f32.mrb[24].mxu0 }
 0x2c9   : > { %9239 = vst [vmem:[#allocation61_spill] sm:$0xff] %v7143_v28  ;;  %v2287_v54 = vshll.u32 %v7143_v28, 30  ;;  %v2188_v52 = vclz %v4533_v48  ;;  %v2359_v62 = vor.u32 %v2358_v20, %v2357_v29  ;;  %v2436_v55 = vshrl.u32 %v2435_v24, 23 }
 0x2ca   : > { %v2344_v8 = vshrl.u32 %v9188_v43, %v2343_v1  ;;  %vm2360_vm14 = vcmp.lt.s32.totalorder %v2341_v27, 1  ;;  %vm2363_vm1 = vcmp.lt.s32.totalorder %v2341_v27, 4  ;;  %v2376_v21 = vshll.u32 %v2336_v10, 8 }
 0x2cb   : > { %vm2362_vm2 = vcmp.lt.s32.totalorder %v2341_v27, 3  ;;  %v2365_v44 = vsel %vm2363_vm1, %v2353_v5, 2102212464  ;;  %v2368_v32 = vsel %vm2360_vm14, %v2347_v4, %v2350_v30  ;;  %v2369_v16 = vsel %vm2363_vm1, %v2356_v41, 920167782 }
 0x2cc   : > { %vm9101_vm3 = vcmp.lt.s32.totalorder %v6643_v0, 0  ;;  %vm9102_vm4 = vcmp.lt.s32.totalorder %v6697_v9, 0  ;;  %v7159_v60 = vsub.s32 %v2284_v61, %v2287_v54  ;;  %vm2361_vm13 = vcmp.lt.s32.totalorder %v2341_v27, 2 }
 0x2cd   : > { %v2370_v48 = vsel %vm2362_vm2, %v2353_v5, %v2369_v16  ;;  %v2372_v1 = vsel %vm2360_vm14, %v2350_v30, %v2353_v5  ;;  %v4534_v24 = vadd.s32 4294967294, %v2188_v52  ;;  %v2373_v11 = vsel %vm2363_vm1, %v2359_v62, 1326507024  ;;  %v3368_v52 = vld [vmem:[%s8995_s3] sm:$0xff]  ;;  %v3369_v5 = vld [vmem:[%s8995_s3 + $0x8] sm:$0xff] }
 0x2ce   : > { %v2371_v10 = vsel %vm2361_vm13, %v2368_v32, %v2370_v48  ;;  %v4544_v13 = vadd.s32 4294967169, %v2436_v55  ;;  %v2095_v19 = vor.u32 4788187, %v2094_v25  ;;  %v2364_v56 = vsel %vm2360_vm14, %v2344_v8, %v2347_v4 }
 0x2cf   : > { %v2366_v29 = vsel %vm2362_vm2, %v2350_v30, %v2365_v44  ;;  %v2374_v20 = vsel %vm2362_vm2, %v2356_v41, %v2373_v11  ;;  %v7168_v61 = vmul.u32.u64.low %v2376_v21, %v2371_v10  ;;  %v7169_v59 = vmul.u32.u64.high %v2376_v21, %v2371_v10, %v7168_v61 }
 0x2d0   : > { %v2375_v54 = vsel %vm2361_vm13, %v2372_v1, %v2374_v20  ;;  %v2442_v16 = vadd.s32 1, %v4544_v13  ;;  %v1892_v8 = vxor.u32 2147483648, %v7129_v31  ;;  %v2290_v4 = vsub.s32 0, %v7159_v60 }
 0x2d1   : > { %v7180_v41 = vmul.u32.u64.low %v2376_v21, %v2375_v54  ;;  %v7181_v30 = vmul.u32.u64.high %v2376_v21, %v2375_v54, %v7180_v41  ;;  %v9240_v25 = vand.u32 2147483647, %v7118_v26  ;;  %v9241_v62 = vcvt.s32.f32 %v7111_v34 }
 0x2d2   : > { %vm4535_vm14 = vcmp.lt.s32.totalorder %v4534_v24, 0  ;;  %v2367_v44 = vsel %vm2361_vm13, %v2364_v56, %v2366_v29  ;;  %vm2443_vm1 = vcmp.gt.s32.totalorder %v2442_v16, 0  ;;  %v2096_v32 = vand.u32 2147483647, %v2095_v19 }
 0x2d3   : > { %v7187_v55 = vmul.f32 %v9241_v62, %v9240_v25  ;;  %v9242_v48 = vand.u32 2147483647, %v7116_v35  ;;  %v2444_v10 = vsel %vm2443_vm1, %v2442_v16, 0  ;;  %v5058_v11 = vpack.c.bf16 %v3369_v5, %v3368_v52 }
 0x2d4   : > { %v2098_v13 = vcvt.s32.f32 %v7149_v39  ;;  %v2386_v20 = vadd.s32 1, %v7169_v59  ;;  %v2446_v54 = vand.u32 31, %v2444_v10  ;;  %v7196_v34 = vadd.f32 %v6741_v45, %v6110_v3 }
 0x2d5   : > { %v2439_v1 = vand.u32 8388607, %v9242_v48  ;;  %v7198_v26 = vsel %vm4535_vm14, 0, %v4534_v24  ;;  %v4537_v27 = vmin.u32 %v2290_v4, %v7159_v60  ;;  %v2383_v56 = vmul.u32 %v2376_v21, %v2367_v44  ;;  %5059 = vmatpush3.bf16.msra.mxu0 %v5058_v11 }
 0x2d6   : > { %9243 = vst [vmem:[#allocation62_spill] sm:$0xff] %v7196_v34  ;;  %vm2385_vm13 = vc.u32 %v7181_v30, %v7168_v61  ;;  %v9244_v19 = vxor.u32 2147483648, %v7047_v33  ;;  %v7213_v45 = vsel %vm9102_vm4, %v1892_v8, %v7129_v31  ;;  %v2447_v29 = vsub.s32 32, %v2446_v54 }
 0x2d7   : > { %9246 = vst [vmem:[#allocation64_spill] sm:$0xff] %v7213_v45  ;;  %v2387_v24 = vsel %vm2385_vm13, %v2386_v20, %v7169_v59  ;;  %v9247_v21 = vmov 0.0|0.0   ;;  %v1996_v16 = vxor.u32 2147483648, %v7187_v55  ;;  %v7218_v52 = vmul.f32 %v2098_v13, %v2096_v32 }
 0x2d8   : > { %v7208_v39 = vsel %vm9101_vm3, %v9244_v19, %v7047_v33  ;;  %5060 = vmatprep.subr.bf16.mxu0 %v9247_v21  ;;  %v2388_v5 = vadd.s32 %v2387_v24, %v2383_v56  ;;  %v2440_v4 = vor.u32 8388608, %v2439_v1  ;;  %v2192_v41 = vsub.s32 32, %v7198_v26 }
 0x2d9   : > { %9245 = vst [vmem:[#allocation63_spill] sm:$0xff] %v7208_v39  ;;  %v2196_v33 = vsub.s32 4294967266, %v7198_v26  ;;  %v2450_v25 = vshrl.u32 %v9182_v6, %v2447_v29  ;;  %v2453_v31 = vshrl.u32 %v9183_v7, %v2447_v29  ;;  %v2292_v8 = vclz %v4537_v27  ;;  %v7233_v27 = vpop.f32.mrb[25].mxu0 }
 0x2da   : > { %v2389_v62 = vadd.s32 536870912, %v2388_v5  ;;  %v2449_v59 = vshll.u32 %v9188_v43, %v2446_v54  ;;  %v2539_v44 = vand.u32 2139095040, %v7196_v34  ;;  %v2445_v48 = vshrl.u32 %v2444_v10, 5  ;;  %9249 = vst [vmem:[#allocation66_spill] sm:$0xff] %v7233_v27 }
 0x2db   : > { %v2452_v32 = vshll.u32 %v9182_v6, %v2446_v54  ;;  %v2455_v11 = vshll.u32 %v9183_v7, %v2446_v54  ;;  %v2456_v1 = vshrl.u32 %v9194_v57, %v2447_v29  ;;  %v2458_v56 = vshll.u32 %v9194_v57, %v2446_v54 }
 0x2dc   : > { %v7229_v13 = vshrl.u32 %v2389_v62, 30  ;;  %v2451_v20 = vor.u32 %v2450_v25, %v2449_v59  ;;  %v2459_v19 = vshrl.u32 %v9184_v49, %v2447_v29  ;;  %v2461_v28 = vshll.u32 %v9184_v49, %v2446_v54 }
 0x2dd   : > { %v2454_v24 = vor.u32 %v2453_v31, %v2452_v32  ;;  %v2457_v38 = vor.u32 %v2456_v1, %v2455_v11  ;;  %v2462_v10 = vshrl.u32 %v9186_v23, %v2447_v29  ;;  %vm9118_vm2 = vcmp.lt.s32.totalorder %v6773_v36, 0 }
 0x2de   : > { %9248 = vst [vmem:[#allocation65_spill] sm:$0xff] %v7229_v13  ;;  %v2197_v39 = vadd.s32 127, %v2196_v33  ;;  %v2391_v0 = vshll.u32 %v7229_v13, 30  ;;  %v2460_v62 = vor.u32 %v2459_v19, %v2458_v56  ;;  %v2480_v45 = vshll.u32 %v2440_v4, 8 }
 0x2df   : > { %v4538_v25 = vadd.s32 4294967294, %v2292_v8  ;;  %v2463_v59 = vor.u32 %v2462_v10, %v2461_v28  ;;  %v2540_v63 = vshrl.u32 %v2539_v44, 23  ;;  %v2448_v31 = vshrl.u32 %v9188_v43, %v2447_v29 }
 0x2e0   : > { %v7240_v42 = vsub.s32 %v2388_v5, %v2391_v0  ;;  %vm2464_vm14 = vcmp.lt.s32.totalorder %v2445_v48, 1  ;;  %vm2467_vm1 = vcmp.lt.s32.totalorder %v2445_v48, 4  ;;  %vm2466_vm13 = vcmp.lt.s32.totalorder %v2445_v48, 3 }
 0x2e1   : > { %v2469_v54 = vsel %vm2467_vm1, %v2457_v38, 2102212464  ;;  %v2472_v32 = vsel %vm2464_vm14, %v2451_v20, %v2454_v24  ;;  %v2473_v11 = vsel %vm2467_vm1, %v2460_v62, 920167782  ;;  %vm2465_vm3 = vcmp.lt.s32.totalorder %v2445_v48, 2 }
 0x2e2   : > { %v2394_v33 = vsub.s32 0, %v7240_v42  ;;  %v2474_v1 = vsel %vm2466_vm13, %v2457_v38, %v2473_v11  ;;  %v2476_v4 = vsel %vm2464_vm14, %v2454_v24, %v2457_v38  ;;  %vm4539_vm4 = vcmp.lt.s32.totalorder %v4538_v25, 0 }
 0x2e3   : > { %v2475_v28 = vsel %vm2465_vm3, %v2472_v32, %v2474_v1  ;;  %v2477_v8 = vsel %vm2467_vm1, %v2463_v59, 1326507024  ;;  %v4548_v44 = vadd.s32 4294967169, %v2540_v63  ;;  %v2468_v5 = vsel %vm2464_vm14, %v2448_v31, %v2451_v20 }
 0x2e4   : > { %v4541_v0 = vmin.u32 %v2394_v33, %v7240_v42  ;;  %v2470_v29 = vsel %vm2466_vm13, %v2454_v24, %v2469_v54  ;;  %v2478_v56 = vsel %vm2466_vm13, %v2460_v62, %v2477_v8  ;;  %v2176_v38 = vadd.s32 %v7030_v47, %v7038_v17 }
 0x2e5   : > { %v2479_v19 = vsel %vm2465_vm3, %v2476_v4, %v2478_v56  ;;  %v7247_v10 = vmul.u32.u64.low %v2480_v45, %v2475_v28  ;;  %v7248_v9 = vmul.u32.u64.high %v2480_v45, %v2475_v28, %v7247_v10  ;;  %v2546_v13 = vadd.s32 1, %v4548_v44 }
 0x2e6   : > { %v7253_v11 = vsel %vm4539_vm4, 0, %v4538_v25  ;;  %v7255_v32 = vmul.u32.u64.low %v2480_v45, %v2479_v19  ;;  %v7256_v59 = vmul.u32.u64.high %v2480_v45, %v2479_v19, %v7255_v32  ;;  %v7261_v63 = vsel %vm9118_vm2, %v1996_v16, %v7187_v55 }
 0x2e7   : > { %9250 = vst [vmem:[#allocation67_spill] sm:$0xff] %v7261_v63  ;;  %v2396_v20 = vclz %v4541_v0  ;;  %v2471_v24 = vsel %vm2465_vm3, %v2468_v5, %v2470_v29  ;;  %vm2547_vm14 = vcmp.gt.s32.totalorder %v2546_v13, 0  ;;  %v2194_v31 = vshrl.u32 %v2176_v38, %v2192_v41 }
 0x2e8   : > { %v2198_v54 = vshll.u32 %v2197_v39, 23  ;;  %v2548_v33 = vsel %vm2547_vm14, %v2546_v13, 0  ;;  %v2300_v17 = vsub.s32 4294967266, %v7253_v11  ;;  %v2490_v47 = vadd.s32 1, %v7248_v9 }
 0x2e9   : > { %v9251_v25 = vand.u32 2147483647, %v7196_v34  ;;  %v2550_v4 = vand.u32 31, %v2548_v33  ;;  %v2193_v55 = vshll.u32 %v7096_v58, %v7198_v26  ;;  %v2487_v16 = vmul.u32 %v2480_v45, %v2471_v24 }
 0x2ea   : > { %vm2489_vm3 = vc.u32 %v7256_v59, %v7247_v10  ;;  %v7275_v41 = vadd.f32 %v6805_v22, %v6122_v14  ;;  %v2280_v39 = vadd.s32 %v7102_v53, %v7108_v2  ;;  %v4542_v48 = vadd.s32 4294967294, %v2396_v20 }
 0x2eb   : > { %v2543_v1 = vand.u32 8388607, %v9251_v25  ;;  %v2491_v13 = vsel %vm2489_vm3, %v2490_v47, %v7248_v9  ;;  %v2551_v28 = vsub.s32 32, %v2550_v4  ;;  %v7280_v8 = vor.u32 %v2194_v31, %v2193_v55 }
 0x2ec   : > { %9252 = vst [vmem:[#allocation68_spill] sm:$0xff] %v7275_v41  ;;  %v7282_v44 = vor.u32 4788187, %v2198_v54  ;;  %v2296_v58 = vsub.s32 32, %v7253_v11  ;;  %v2492_v26 = vadd.s32 %v2491_v13, %v2487_v16  ;;  %v2301_v45 = vadd.s32 127, %v2300_v17 }
 0x2ed   : > { %v2544_v0 = vor.u32 8388608, %v2543_v1  ;;  %v2554_v5 = vshrl.u32 %v9182_v6, %v2551_v28  ;;  %v2557_v22 = vshrl.u32 %v9183_v7, %v2551_v28  ;;  %v2549_v56 = vshrl.u32 %v2548_v33, 5 }
 0x2ee   : > { %v2493_v29 = vadd.s32 536870912, %v2492_v26  ;;  %v2553_v53 = vshll.u32 %v9188_v43, %v2550_v4  ;;  %v2643_v9 = vand.u32 2139095040, %v7275_v41  ;;  %vm4543_vm4 = vcmp.lt.s32.totalorder %v4542_v48, 0 }
 0x2ef   : > { %v2556_v2 = vshll.u32 %v9182_v6, %v2550_v4  ;;  %v2559_v19 = vshll.u32 %v9183_v7, %v2550_v4  ;;  %v2560_v38 = vshrl.u32 %v9194_v57, %v2551_v28  ;;  %v2562_v24 = vshll.u32 %v9194_v57, %v2550_v4 }
 0x2f0   : > { %v7292_v32 = vshrl.u32 %v2493_v29, 30  ;;  %v2555_v20 = vor.u32 %v2554_v5, %v2553_v53  ;;  %v2563_v31 = vshrl.u32 %v9184_v49, %v2551_v28  ;;  %v2565_v17 = vshll.u32 %v9184_v49, %v2550_v4 }
 0x2f1   : > { %v2558_v54 = vor.u32 %v2557_v22, %v2556_v2  ;;  %v2561_v33 = vor.u32 %v2560_v38, %v2559_v19  ;;  %v2566_v47 = vshrl.u32 %v9186_v23, %v2551_v28  ;;  %v2297_v25 = vshll.u32 %v7159_v60, %v7253_v11 }
 0x2f2   : > { %9253 = vst [vmem:[#allocation69_spill] sm:$0xff] %v7292_v32  ;;  %v2298_v1 = vshrl.u32 %v2280_v39, %v2296_v58  ;;  %v2495_v55 = vshll.u32 %v7292_v32, 30  ;;  %v2564_v16 = vor.u32 %v2563_v31, %v2562_v24  ;;  %v2302_v13 = vshll.u32 %v2301_v45, 23 }
 0x2f3   : > { %v2567_v29 = vor.u32 %v2566_v47, %v2565_v17  ;;  %v2584_v5 = vshll.u32 %v2544_v0, 8  ;;  %v2644_v53 = vshrl.u32 %v2643_v9, 23  ;;  %v7302_v62 = vsel %vm4543_vm4, 0, %v4542_v48 }
 0x2f4   : > { %v2552_v22 = vshrl.u32 %v9188_v43, %v2551_v28  ;;  %vm2568_vm1 = vcmp.lt.s32.totalorder %v2549_v56, 1  ;;  %vm2571_vm13 = vcmp.lt.s32.totalorder %v2549_v56, 4  ;;  %vm2570_vm14 = vcmp.lt.s32.totalorder %v2549_v56, 3 }
 0x2f5   : > { %v2573_v4 = vsel %vm2571_vm13, %v2561_v33, 2102212464  ;;  %v2576_v2 = vsel %vm2568_vm1, %v2555_v20, %v2558_v54  ;;  %v2577_v19 = vsel %vm2571_vm13, %v2564_v16, 920167782  ;;  %v7305_v60 = vsub.s32 %v2492_v26, %v2495_v55 }
 0x2f6   : > { %vm2569_vm3 = vcmp.lt.s32.totalorder %v2549_v56, 2  ;;  %v2578_v11 = vsel %vm2570_vm14, %v2561_v33, %v2577_v19  ;;  %v2580_v39 = vsel %vm2568_vm1, %v2558_v54, %v2561_v33  ;;  %v2581_v45 = vsel %vm2571_vm13, %v2567_v29, 1326507024 }
 0x2f7   : > { %v2579_v58 = vsel %vm2569_vm3, %v2576_v2, %v2578_v11  ;;  %v9105_v0 = vand.u32 2147483647, %v7275_v41  ;;  %v4552_v48 = vadd.s32 4294967169, %v2644_v53  ;;  %v2404_v9 = vsub.s32 4294967266, %v7302_v62 }
 0x2f8   : > { %v2572_v28 = vsel %vm2568_vm1, %v2552_v22, %v2555_v20  ;;  %v2574_v38 = vsel %vm2570_vm14, %v2558_v54, %v2573_v4  ;;  %v2582_v24 = vsel %vm2570_vm14, %v2564_v16, %v2581_v45  ;;  %v2202_v33 = vcvt.s32.f32 %v7280_v8 }
 0x2f9   : > { %v2583_v31 = vsel %vm2569_vm3, %v2580_v39, %v2582_v24  ;;  %v7311_v17 = vmul.u32.u64.low %v2584_v5, %v2579_v58  ;;  %v7312_v47 = vmul.u32.u64.high %v2584_v5, %v2579_v58, %v7311_v17  ;;  %v2650_v26 = vadd.s32 1, %v4552_v48 }
 0x2fa   : > { %v2498_v55 = vsub.s32 0, %v7305_v60  ;;  %v7317_v29 = vmul.u32.u64.low %v2584_v5, %v2583_v31  ;;  %v7318_v2 = vmul.u32.u64.high %v2584_v5, %v2583_v31, %v7317_v29  ;;  %v2200_v53 = vand.u32 2147483647, %v7282_v44 }
 0x2fb   : > { %v7321_v19 = vor.u32 %v2298_v1, %v2297_v25  ;;  %v2575_v20 = vsel %vm2569_vm3, %v2572_v28, %v2574_v38  ;;  %vm2651_vm4 = vcmp.gt.s32.totalorder %v2650_v26, 0  ;;  %v7324_v54 = vor.u32 4788187, %v2302_v13 }
 0x2fc   : > { %v2384_v16 = vadd.s32 %v7168_v61, %v7181_v30  ;;  %v2400_v22 = vsub.s32 32, %v7302_v62  ;;  %v2652_v8 = vsel %vm2651_vm4, %v2650_v26, 0  ;;  %v2405_v4 = vadd.s32 127, %v2404_v9 }
 0x2fd   : > { %v2594_v11 = vadd.s32 1, %v7312_v47  ;;  %v2647_v39 = vand.u32 8388607, %v9105_v0  ;;  %v2654_v44 = vand.u32 31, %v2652_v8  ;;  %v4545_v25 = vmin.u32 %v2498_v55, %v7305_v60 }
 0x2fe   : > { %v2591_v56 = vmul.u32 %v2584_v5, %v2575_v20  ;;  %vm2593_vm1 = vc.u32 %v7318_v2, %v7311_v17  ;;  %v7337_v1 = vadd.f32 %v6872_v46, %v6110_v3  ;;  %v7339_v61 = vmul.f32 %v2202_v33, %v2200_v53 }
 0x2ff   : > { %v2595_v13 = vsel %vm2593_vm1, %v2594_v11, %v7312_v47  ;;  %v2655_v58 = vsub.s32 32, %v2654_v44  ;;  %v2304_v45 = vand.u32 2147483647, %v7324_v54  ;;  %v2401_v48 = vshll.u32 %v7240_v42, %v7302_v62 }
 0x300   : > { %9254 = vst [vmem:[#allocation70_spill] sm:$0xff] %v7337_v1  ;;  %v2402_v5 = vshrl.u32 %v2384_v16, %v2400_v22  ;;  %v2596_v9 = vadd.s32 %v2595_v13, %v2591_v56  ;;  %v2406_v28 = vshll.u32 %v2405_v4, 23  ;;  %v2648_v38 = vor.u32 8388608, %v2647_v39 }
 0x301   : > { %v2658_v24 = vshrl.u32 %v9182_v6, %v2655_v58  ;;  %v2661_v46 = vshrl.u32 %v9183_v7, %v2655_v58  ;;  %v2500_v31 = vclz %v4545_v25  ;;  %v2657_v33 = vshll.u32 %v9188_v43, %v2654_v44 }
 0x302   : > { %v2597_v26 = vadd.s32 536870912, %v2596_v9  ;;  %v2747_v47 = vand.u32 2139095040, %v7337_v1  ;;  %v2653_v55 = vshrl.u32 %v2652_v8, 5  ;;  %v2660_v29 = vshll.u32 %v9182_v6, %v2654_v44 }
 0x303   : > { %v2663_v53 = vshll.u32 %v9183_v7, %v2654_v44  ;;  %v2664_v42 = vshrl.u32 %v9194_v57, %v2655_v58  ;;  %v2659_v20 = vor.u32 %v2658_v24, %v2657_v33  ;;  %v2666_v54 = vshll.u32 %v9194_v57, %v2654_v44 }
 0x304   : > { %v7353_v62 = vshrl.u32 %v2597_v26, 30  ;;  %v2667_v16 = vshrl.u32 %v9184_v49, %v2655_v58  ;;  %v2662_v22 = vor.u32 %v2661_v46, %v2660_v29  ;;  %v2669_v11 = vshll.u32 %v9184_v49, %v2654_v44 }
 0x305   : > { %v2665_v4 = vor.u32 %v2664_v42, %v2663_v53  ;;  %v2670_v39 = vshrl.u32 %v9186_v23, %v2655_v58  ;;  %v2403_v8 = vor.u32 %v2402_v5, %v2401_v48  ;;  %v2407_v25 = vor.u32 4788187, %v2406_v28 }
 0x306   : > { %9255 = vst [vmem:[#allocation71_spill] sm:$0xff] %v7353_v62  ;;  %v2599_v56 = vshll.u32 %v7353_v62, 30  ;;  %v2668_v13 = vor.u32 %v2667_v16, %v2666_v54  ;;  %v4546_v0 = vadd.s32 4294967294, %v2500_v31  ;;  %v2688_v26 = vshll.u32 %v2648_v38, 8 }
 0x307   : > { %v2671_v30 = vor.u32 %v2670_v39, %v2669_v11  ;;  %v2748_v32 = vshrl.u32 %v2747_v47, 23  ;;  %v2656_v33 = vshrl.u32 %v9188_v43, %v2655_v58  ;;  %vm2672_vm13 = vcmp.lt.s32.totalorder %v2653_v55, 1 }
 0x308   : > { %v7360_v24 = vsub.s32 %v2596_v9, %v2599_v56  ;;  %vm2675_vm14 = vcmp.lt.s32.totalorder %v2653_v55, 4  ;;  %vm2674_vm3 = vcmp.lt.s32.totalorder %v2653_v55, 3  ;;  %v2680_v44 = vsel %vm2672_vm13, %v2659_v20, %v2662_v22 }
 0x309   : > { %v2677_v46 = vsel %vm2675_vm14, %v2665_v4, 2102212464  ;;  %v2681_v29 = vsel %vm2675_vm14, %v2668_v13, 920167782  ;;  %vm2673_vm4 = vcmp.lt.s32.totalorder %v2653_v55, 2  ;;  %v2684_v28 = vsel %vm2672_vm13, %v2662_v22, %v2665_v4 }
 0x30a   : > { %v2602_v48 = vsub.s32 0, %v7360_v24  ;;  %v2682_v5 = vsel %vm2674_vm3, %v2665_v4, %v2681_v29  ;;  %v2685_v53 = vsel %vm2675_vm14, %v2671_v30, 1326507024  ;;  %v9108_v38 = vand.u32 2147483647, %v7337_v1  ;;  %v3370_v4 = vld [vmem:[%s8995_s3 + $0x10] sm:$0xff] }
 0x30b   : > { %v2683_v31 = vsel %vm2673_vm4, %v2680_v44, %v2682_v5  ;;  %v4556_v9 = vadd.s32 4294967169, %v2748_v32  ;;  %v2676_v58 = vsel %vm2672_vm13, %v2656_v33, %v2659_v20  ;;  %v2678_v42 = vsel %vm2674_vm3, %v2662_v22, %v2677_v46  ;;  %v3371_v32 = vld [vmem:[%s8995_s3 + $0x18] sm:$0xff] }
 0x30c   : > { %v4549_v47 = vmin.u32 %v2602_v48, %v7360_v24  ;;  %v2686_v54 = vsel %vm2674_vm3, %v2668_v13, %v2685_v53  ;;  %v7368_v11 = vmul.u32.u64.low %v2688_v26, %v2683_v31  ;;  %v7369_v39 = vmul.u32.u64.high %v2688_v26, %v2683_v31, %v7368_v11 }
 0x30d   : > { %v2687_v16 = vsel %vm2673_vm4, %v2684_v28, %v2686_v54  ;;  %v2754_v56 = vadd.s32 1, %v4556_v9  ;;  %vm4547_vm1 = vcmp.lt.s32.totalorder %v4546_v0, 0  ;;  %v9256_v33 = vcvt.s32.f32 %v7321_v19 }
 0x30e   : > { %v2604_v30 = vclz %v4549_v47  ;;  %v7378_v20 = vmul.u32.u64.low %v2688_v26, %v2687_v16  ;;  %v7379_v22 = vmul.u32.u64.high %v2688_v26, %v2687_v16, %v7378_v20  ;;  %v2679_v44 = vsel %vm2673_vm4, %v2676_v58, %v2678_v42 }
 0x30f   : > { %v7384_v46 = vmul.f32 %v9256_v33, %v2304_v45  ;;  %vm2755_vm13 = vcmp.gt.s32.totalorder %v2754_v56, 0  ;;  %v2408_v29 = vand.u32 2147483647, %v2407_v25  ;;  %v5061_v28 = vpack.c.bf16 %v3371_v32, %v3370_v4 }
 0x310   : > { %v4550_v48 = vadd.s32 4294967294, %v2604_v30  ;;  %v2756_v5 = vsel %vm2755_vm13, %v2754_v56, 0  ;;  %v7387_v31 = vsel %vm4547_vm1, 0, %v4546_v0  ;;  %v2698_v53 = vadd.s32 1, %v7369_v39 }
 0x311   : > { %v2751_v9 = vand.u32 8388607, %v9108_v38  ;;  %v2758_v47 = vand.u32 31, %v2756_v5  ;;  %v2410_v54 = vcvt.s32.f32 %v2403_v8  ;;  %v2695_v16 = vmul.u32 %v2688_v26, %v2679_v44  ;;  %5062 = vmatpush3.bf16.msra.mxu0 %v5061_v28 }
 0x312   : > { %vm2697_vm14 = vc.u32 %v7379_v22, %v7368_v11  ;;  %v7396_v19 = vadd.f32 %v6940_v12, %v6122_v14  ;;  %v2488_v0 = vadd.s32 %v7247_v10, %v7256_v59  ;;  %5063 = vmatprep.subr.bf16.mxu0 %v9247_v21  ;;  %v2504_v26 = vsub.s32 32, %v7387_v31 }
 0x313   : > { %v2699_v55 = vsel %vm2697_vm14, %v2698_v53, %v7369_v39  ;;  %v2759_v25 = vsub.s32 32, %v2758_v47  ;;  %v7403_v8 = vmul.f32 %v2410_v54, %v2408_v29  ;;  %vm4551_vm3 = vcmp.lt.s32.totalorder %v4550_v48, 0 }
 0x314   : > { %v2700_v58 = vadd.s32 %v2699_v55, %v2695_v16  ;;  %v2508_v12 = vsub.s32 4294967266, %v7387_v31  ;;  %v2752_v42 = vor.u32 8388608, %v2751_v9  ;;  %v2757_v10 = vshrl.u32 %v2756_v5, 5 }
 0x315   : > { %v2762_v56 = vshrl.u32 %v9182_v6, %v2759_v25  ;;  %v2765_v4 = vshrl.u32 %v9183_v7, %v2759_v25  ;;  %v2761_v59 = vshll.u32 %v9188_v43, %v2758_v47  ;;  %v2851_v39 = vand.u32 2139095040, %v7396_v19 }
 0x316   : > { %v2701_v32 = vadd.s32 536870912, %v2700_v58  ;;  %v7411_v30 = vsel %vm4551_vm3, 0, %v4550_v48  ;;  %v2764_v20 = vshll.u32 %v9182_v6, %v2758_v47  ;;  %v2767_v33 = vshll.u32 %v9183_v7, %v2758_v47 }
 0x317   : > { %v2768_v44 = vshrl.u32 %v9194_v57, %v2759_v25  ;;  %v2763_v28 = vor.u32 %v2762_v56, %v2761_v59  ;;  %v2770_v53 = vshll.u32 %v9194_v57, %v2758_v47  ;;  %v2771_v9 = vshrl.u32 %v9184_v49, %v2759_v25 }
 0x318   : > { %v7416_v29 = vshrl.u32 %v2701_v32, 30  ;;  %v2766_v5 = vor.u32 %v2765_v4, %v2764_v20  ;;  %v2773_v16 = vshll.u32 %v9184_v49, %v2758_v47  ;;  %v2774_v48 = vshrl.u32 %v9186_v23, %v2759_v25 }
 0x319   : > { %v2769_v54 = vor.u32 %v2768_v44, %v2767_v33  ;;  %v2509_v55 = vadd.s32 127, %v2508_v12  ;;  %v2772_v45 = vor.u32 %v2771_v9, %v2770_v53  ;;  %v2792_v13 = vshll.u32 %v2752_v42, 8 }
 0x31a   : > { %9257 = vst [vmem:[#allocation72_spill] sm:$0xff] %v7416_v29  ;;  %v2703_v38 = vshll.u32 %v7416_v29, 30  ;;  %v2608_v62 = vsub.s32 32, %v7411_v30  ;;  %v2612_v32 = vsub.s32 4294967266, %v7411_v30  ;;  %v2775_v56 = vor.u32 %v2774_v48, %v2773_v16 }
 0x31b   : > { %v2852_v59 = vshrl.u32 %v2851_v39, 23  ;;  %v2760_v4 = vshrl.u32 %v9188_v43, %v2759_v25  ;;  %vm2776_vm4 = vcmp.lt.s32.totalorder %v2757_v10, 1  ;;  %vm2779_vm1 = vcmp.lt.s32.totalorder %v2757_v10, 4 }
 0x31c   : > { %v7425_v63 = vsub.s32 %v2700_v58, %v2703_v38  ;;  %vm2778_vm13 = vcmp.lt.s32.totalorder %v2757_v10, 3  ;;  %v2781_v47 = vsel %vm2779_vm1, %v2769_v54, 2102212464  ;;  %v2784_v20 = vsel %vm2776_vm4, %v2763_v28, %v2766_v5 }
 0x31d   : > { %v2785_v12 = vsel %vm2779_vm1, %v2772_v45, 920167782  ;;  %vm2777_vm14 = vcmp.lt.s32.totalorder %v2757_v10, 2  ;;  %v2788_v44 = vsel %vm2776_vm4, %v2766_v5, %v2769_v54  ;;  %v2613_v53 = vadd.s32 127, %v2612_v32 }
 0x31e   : > { %v2706_v33 = vsub.s32 0, %v7425_v63  ;;  %v2786_v42 = vsel %vm2778_vm13, %v2769_v54, %v2785_v12  ;;  %v2789_v16 = vsel %vm2779_vm1, %v2775_v56, 1326507024  ;;  %v4560_v39 = vadd.s32 4294967169, %v2852_v59 }
 0x31f   : > { %v2787_v9 = vsel %vm2777_vm14, %v2784_v20, %v2786_v42  ;;  %v2780_v58 = vsel %vm2776_vm4, %v2760_v4, %v2763_v28  ;;  %v2782_v25 = vsel %vm2778_vm13, %v2766_v5, %v2781_v47  ;;  %v2790_v48 = vsel %vm2778_vm13, %v2772_v45, %v2789_v16 }
 0x320   : > { %v4553_v38 = vmin.u32 %v2706_v33, %v7425_v63  ;;  %v2791_v29 = vsel %vm2777_vm14, %v2788_v44, %v2790_v48  ;;  %v7432_v36 = vmul.u32.u64.low %v2792_v13, %v2787_v9  ;;  %v7433_v1 = vmul.u32.u64.high %v2792_v13, %v2787_v9, %v7432_v36 }
 0x321   : > { %v2858_v21 = vadd.s32 1, %v4560_v39  ;;  %v7436_v12 = vmul.u32.u64.low %v2792_v13, %v2791_v29  ;;  %v7437_v54 = vmul.u32.u64.high %v2792_v13, %v2791_v29, %v7436_v12  ;;  %v9126_v32 = vand.u32 2147483647, %v7396_v19 }
 0x322   : > { %v2708_v27 = vclz %v4553_v38  ;;  %v2506_v56 = vshrl.u32 %v2488_v0, %v2504_v26  ;;  %v2592_v59 = vadd.s32 %v7311_v17, %v7318_v2  ;;  %v2783_v28 = vsel %vm2777_vm14, %v2780_v58, %v2782_v25 }
 0x323   : > { %vm2859_vm3 = vcmp.gt.s32.totalorder %v2858_v21, 0  ;;  %v2505_v45 = vshll.u32 %v7305_v60, %v7387_v31  ;;  %v2510_v5 = vshll.u32 %v2509_v55, 23  ;;  %v2614_v33 = vshll.u32 %v2613_v53, 23 }
 0x324   : > { %v4554_v4 = vadd.s32 4294967294, %v2708_v27  ;;  %v2860_v47 = vsel %vm2859_vm3, %v2858_v21, 0  ;;  %v2610_v20 = vshrl.u32 %v2592_v59, %v2608_v62  ;;  %v2802_v29 = vadd.s32 1, %v7433_v1 }
 0x325   : > { %v2862_v42 = vand.u32 31, %v2860_v47  ;;  %v2799_v44 = vmul.u32 %v2792_v13, %v2783_v28  ;;  %vm2801_vm1 = vc.u32 %v7437_v54, %v7432_v36  ;;  %v2855_v17 = vand.u32 8388607, %v9126_v32 }
 0x326   : > { %vm4555_vm4 = vcmp.lt.s32.totalorder %v4554_v4, 0  ;;  %v7450_v2 = vor.u32 %v2506_v56, %v2505_v45  ;;  %v2609_v60 = vshll.u32 %v7360_v24, %v7411_v30  ;;  %v2803_v21 = vsel %vm2801_vm1, %v2802_v29, %v7433_v1 }
 0x327   : > { %v2863_v27 = vsub.s32 32, %v2862_v42  ;;  %v7455_v62 = vor.u32 4788187, %v2510_v5  ;;  %v2696_v31 = vadd.s32 %v7368_v11, %v7379_v22  ;;  %v7459_v13 = vsel %vm4555_vm4, 0, %v4554_v4 }
 0x328   : > { %v2804_v0 = vadd.s32 %v2803_v21, %v2799_v44  ;;  %v7461_v26 = vor.u32 %v2610_v20, %v2609_v60  ;;  %v7463_v10 = vor.u32 4788187, %v2614_v33  ;;  %v2856_v30 = vor.u32 8388608, %v2855_v17 }
 0x329   : > { %v2866_v55 = vshrl.u32 %v9182_v6, %v2863_v27  ;;  %v2869_v53 = vshrl.u32 %v9183_v7, %v2863_v27  ;;  %v2861_v1 = vshrl.u32 %v2860_v47, 5  ;;  %v2865_v9 = vshll.u32 %v9188_v43, %v2862_v42 }
 0x32a   : > { %v2805_v24 = vadd.s32 536870912, %v2804_v0  ;;  %v2716_v16 = vsub.s32 4294967266, %v7459_v13  ;;  %v2868_v11 = vshll.u32 %v9182_v6, %v2862_v42  ;;  %v2871_v22 = vshll.u32 %v9183_v7, %v2862_v42 }
 0x32b   : > { %v2872_v39 = vshrl.u32 %v9194_v57, %v2863_v27  ;;  %v2867_v58 = vor.u32 %v2866_v55, %v2865_v9  ;;  %v2874_v25 = vshll.u32 %v9194_v57, %v2862_v42  ;;  %v2875_v48 = vshrl.u32 %v9184_v49, %v2863_v27 }
 0x32c   : > { %v7472_v38 = vshrl.u32 %v2805_v24, 30  ;;  %v2870_v12 = vor.u32 %v2869_v53, %v2868_v11  ;;  %v2877_v59 = vshll.u32 %v9184_v49, %v2862_v42  ;;  %v2878_v28 = vshrl.u32 %v9186_v23, %v2863_v27 }
 0x32d   : > { %v2873_v56 = vor.u32 %v2872_v39, %v2871_v22  ;;  %v2876_v5 = vor.u32 %v2875_v48, %v2874_v25  ;;  %v2896_v4 = vshll.u32 %v2856_v30, 8  ;;  %v7481_v47 = vadd.f32 %v7022_v40, %v6110_v3  ;;  %v9259_v39 = vld [vmem:[#allocation35_spill] sm:$0xff] }
 0x32e   : > { %9258 = vst [vmem:[#allocation73_spill] sm:$0xff] %v7472_v38  ;;  %v2807_v45 = vshll.u32 %v7472_v38, 30  ;;  %v2712_v20 = vsub.s32 32, %v7459_v13  ;;  %v2717_v33 = vadd.s32 127, %v2716_v16  ;;  %v2879_v29 = vor.u32 %v2878_v28, %v2877_v59 }
 0x32f   : > { %v7486_v44 = vadd.f32 %v7090_v18, %v6122_v14  ;;  %v2864_v42 = vshrl.u32 %v9188_v43, %v2863_v27  ;;  %vm2880_vm13 = vcmp.lt.s32.totalorder %v2861_v1, 1  ;;  %vm2883_vm14 = vcmp.lt.s32.totalorder %v2861_v1, 4 }
 0x330   : > { %v7488_v17 = vsub.s32 %v2804_v0, %v2807_v45  ;;  %vm2882_vm3 = vcmp.lt.s32.totalorder %v2861_v1, 3  ;;  %v2885_v60 = vsel %vm2883_vm14, %v2873_v56, 2102212464  ;;  %v2888_v21 = vsel %vm2880_vm13, %v2867_v58, %v2870_v12 }
 0x331   : > { %v2889_v40 = vsel %vm2883_vm14, %v2876_v5, 920167782  ;;  %vm2881_vm4 = vcmp.lt.s32.totalorder %v2861_v1, 2  ;;  %v2892_v24 = vsel %vm2880_vm13, %v2870_v12, %v2873_v56  ;;  %vm9124_vm1 = vcmp.lt.s32.totalorder %v6848_v50, 0 }
 0x332   : > { %v2810_v55 = vsub.s32 0, %v7488_v17  ;;  %v2890_v53 = vsel %vm2882_vm3, %v2873_v56, %v2889_v40  ;;  %v2718_v18 = vshll.u32 %v2717_v33, 23  ;;  %v2893_v27 = vsel %vm2883_vm14, %v2879_v29, 1326507024 }
 0x333   : > { %v2891_v0 = vsel %vm2881_vm4, %v2888_v21, %v2890_v53  ;;  %v2955_v30 = vand.u32 2139095040, %v7481_v47  ;;  %v2884_v16 = vsel %vm2880_vm13, %v2864_v42, %v2867_v58  ;;  %v2886_v11 = vsel %vm2882_vm3, %v2870_v12, %v2885_v60 }
 0x334   : > { %v4557_v9 = vmin.u32 %v2810_v55, %v7488_v17  ;;  %v2894_v22 = vsel %vm2882_vm3, %v2876_v5, %v2893_v27  ;;  %vm9121_vm2 = vcmp.lt.s32.totalorder %v9259_v39, 0  ;;  %vm9122_vm15 = vcmp.lt.s32.totalorder %v6979_v37, 0 }
 0x335   : > { %v2895_v25 = vsel %vm2881_vm4, %v2892_v24, %v2894_v22  ;;  %v7505_v48 = vmul.u32.u64.low %v2896_v4, %v2891_v0  ;;  %v7506_v56 = vmul.u32.u64.high %v2896_v4, %v2891_v0, %v7505_v48  ;;  %v2956_v59 = vshrl.u32 %v2955_v30, 23 }
 0x336   : > { %vm9120_vm14 = vcmp.lt.s32.totalorder %v7061_v51, 0  ;;  %v2514_v28 = vcvt.s32.f32 %v7450_v2  ;;  %v2714_v58 = vshrl.u32 %v2696_v31, %v2712_v20  ;;  %v2512_v5 = vand.u32 2147483647, %v7455_v62  ;;  %v3405_v51 = vld [vmem:[#allocation4 + $0xa8] sm:$0xff] }
 0x337   : > { %v7511_v45 = vmul.u32.u64.low %v2896_v4, %v2895_v25  ;;  %v7512_v12 = vmul.u32.u64.high %v2896_v4, %v2895_v25, %v7511_v45  ;;  %v2616_v33 = vand.u32 2147483647, %v7463_v10  ;;  %v2887_v29 = vsel %vm2881_vm4, %v2884_v16, %v2886_v11 }
 0x338   : > { %v4564_v42 = vadd.s32 4294967169, %v2956_v59  ;;  %v2618_v60 = vcvt.s32.f32 %v7461_v26  ;;  %v2713_v21 = vshll.u32 %v7425_v63, %v7459_v13  ;;  %v2719_v40 = vor.u32 4788187, %v2718_v18 }
 0x339   : > { %v9123_v55 = vand.u32 2147483647, %v7481_v47  ;;  %v2812_v2 = vclz %v4557_v9  ;;  %v2906_v31 = vadd.s32 1, %v7506_v56  ;;  %v3059_v53 = vand.u32 2139095040, %v7486_v44 }
 0x33a   : > { %v2962_v20 = vadd.s32 1, %v4564_v42  ;;  %v2412_v62 = vxor.u32 2147483648, %v7403_v8  ;;  %v2715_v10 = vor.u32 %v2714_v58, %v2713_v21  ;;  %v2903_v1 = vmul.u32 %v2896_v4, %v2887_v29 }
 0x33b   : > { %vm2905_vm13 = vc.u32 %v7512_v12, %v7505_v48  ;;  %v7526_v26 = vmul.f32 %v2514_v28, %v2512_v5  ;;  %v7528_v24 = vmul.f32 %v2618_v60, %v2616_v33  ;;  %v9260_v13 = vxor.u32 2147483648, %v7218_v52 }
 0x33c   : > { %v2907_v63 = vsel %vm2905_vm13, %v2906_v31, %v7506_v56  ;;  %vm2963_vm3 = vcmp.gt.s32.totalorder %v2962_v20, 0  ;;  %v2720_v0 = vand.u32 2147483647, %v2719_v40  ;;  %v2959_v4 = vand.u32 8388607, %v9123_v55 }
 0x33d   : > { %v7536_v18 = vsel %vm9124_vm1, %v9260_v13, %v7218_v52  ;;  %v2908_v27 = vadd.s32 %v2907_v63, %v2903_v1  ;;  %v4558_v30 = vadd.s32 4294967294, %v2812_v2  ;;  %v2964_v9 = vsel %vm2963_vm3, %v2962_v20, 0 }
 0x33e   : > { %v9125_v16 = vand.u32 2147483647, %v7486_v44  ;;  %v3060_v11 = vshrl.u32 %v3059_v53, 23  ;;  %v9261_v22 = vxor.u32 2147483648, %v7339_v61  ;;  %v9262_v52 = vxor.u32 2147483648, %v7384_v46 }
 0x33f   : > { %v2722_v59 = vcvt.s32.f32 %v2715_v10  ;;  %v2909_v28 = vadd.s32 536870912, %v2908_v27  ;;  %v7558_v58 = vsel %vm9120_vm14, %v2412_v62, %v7403_v8  ;;  %v2516_v45 = vxor.u32 2147483648, %v7526_v26 }
 0x340   : > { %v7546_v25 = vsel %vm9121_vm2, %v9261_v22, %v7339_v61  ;;  %v7553_v56 = vsel %vm9122_vm15, %v9262_v52, %v7384_v46  ;;  %9263 = vst [vmem:[#allocation35_spill] sm:$0xff] %v7558_v58  ;;  %v2620_v5 = vxor.u32 2147483648, %v7528_v24  ;;  %v2966_v61 = vand.u32 31, %v2964_v9 }
 0x341   : > { %v7562_v33 = vmul.f32 %v2722_v59, %v2720_v0  ;;  %v7564_v29 = vshrl.u32 %v2909_v28, 30  ;;  %v2960_v42 = vor.u32 8388608, %v2959_v4  ;;  %v7568_v46 = vadd.f32 %v7155_v15, %v6110_v3 }
 0x342   : > { %vm4559_vm4 = vcmp.lt.s32.totalorder %v4558_v30, 0  ;;  %v2967_v60 = vsub.s32 32, %v2966_v61  ;;  %v4568_v21 = vadd.s32 4294967169, %v3060_v11  ;;  %v7572_v8 = vand.u32 8388607, %v9125_v16 }
 0x343   : > { %9264 = vst [vmem:[#allocation74_spill] sm:$0xff] %v7564_v29  ;;  %v2911_v40 = vshll.u32 %v7564_v29, 30  ;;  %v2965_v2 = vshrl.u32 %v2964_v9, 5  ;;  %v2969_v31 = vshll.u32 %v9188_v43, %v2966_v61  ;;  %v2972_v20 = vshll.u32 %v9182_v6, %v2966_v61 }
 0x344   : > { %v2970_v53 = vshrl.u32 %v9182_v6, %v2967_v60  ;;  %v2973_v62 = vshrl.u32 %v9183_v7, %v2967_v60  ;;  %v2975_v3 = vshll.u32 %v9183_v7, %v2966_v61  ;;  %v2976_v15 = vshrl.u32 %v9194_v57, %v2967_v60 }
 0x345   : > { %v7581_v10 = vsub.s32 %v2908_v27, %v2911_v40  ;;  %v2978_v1 = vshll.u32 %v9194_v57, %v2966_v61  ;;  %v2979_v63 = vshrl.u32 %v9184_v49, %v2967_v60  ;;  %v2981_v13 = vshll.u32 %v9184_v49, %v2966_v61 }
 0x346   : > { %v2971_v0 = vor.u32 %v2970_v53, %v2969_v31  ;;  %v2974_v4 = vor.u32 %v2973_v62, %v2972_v20  ;;  %v2977_v9 = vor.u32 %v2976_v15, %v2975_v3  ;;  %v2982_v11 = vshrl.u32 %v9186_v23, %v2967_v60 }
 0x347   : > { %vm9150_vm13 = vcmp.lt.s32.totalorder %v7116_v35, 0  ;;  %vm9127_vm3 = vcmp.lt.s32.totalorder %v7196_v34, 0  ;;  %v7590_v22 = vsel %vm4559_vm4, 0, %v4558_v30  ;;  %v2914_v27 = vsub.s32 0, %v7581_v10 }
 0x348   : > { %v2980_v52 = vor.u32 %v2979_v63, %v2978_v1  ;;  %v3000_v59 = vshll.u32 %v2960_v42, 8  ;;  %v2983_v28 = vor.u32 %v2982_v11, %v2981_v13  ;;  %vm2984_vm14 = vcmp.lt.s32.totalorder %v2965_v2, 1 }
 0x349   : > { %vm2987_vm2 = vcmp.lt.s32.totalorder %v2965_v2, 4  ;;  %v3066_v61 = vadd.s32 1, %v4568_v21  ;;  %v2968_v40 = vshrl.u32 %v9188_v43, %v2967_v60  ;;  %v2992_v20 = vsel %vm2984_vm14, %v2971_v0, %v2974_v4 }
 0x34a   : > { %v2989_v31 = vsel %vm2987_vm2, %v2977_v9, 2102212464  ;;  %v3064_v53 = vor.u32 8388608, %v7572_v8  ;;  %vm2986_vm15 = vcmp.lt.s32.totalorder %v2965_v2, 3  ;;  %v2993_v62 = vsel %vm2987_vm2, %v2980_v52, 920167782 }
 0x34b   : > { %v2996_v3 = vsel %vm2984_vm14, %v2974_v4, %v2977_v9  ;;  %v2997_v15 = vsel %vm2987_vm2, %v2983_v28, 1326507024  ;;  %v4561_v30 = vmin.u32 %v2914_v27, %v7581_v10  ;;  %vm2985_vm4 = vcmp.lt.s32.totalorder %v2965_v2, 2 }
 0x34c   : > { %v2988_v55 = vsel %vm2984_vm14, %v2968_v40, %v2971_v0  ;;  %v2994_v1 = vsel %vm2986_vm15, %v2977_v9, %v2993_v62  ;;  %v2990_v42 = vsel %vm2986_vm15, %v2974_v4, %v2989_v31  ;;  %v2998_v13 = vsel %vm2986_vm15, %v2980_v52, %v2997_v15 }
 0x34d   : > { %v2995_v63 = vsel %vm2985_vm4, %v2992_v20, %v2994_v1  ;;  %vm3067_vm1 = vcmp.gt.s32.totalorder %v3066_v61, 0  ;;  %v2999_v21 = vsel %vm2985_vm4, %v2996_v3, %v2998_v13  ;;  %v3163_v8 = vand.u32 2139095040, %v7568_v46 }
 0x34e   : > { %v7596_v11 = vmul.u32.u64.low %v3000_v59, %v2995_v63  ;;  %v7597_v60 = vmul.u32.u64.high %v3000_v59, %v2995_v63, %v7596_v11  ;;  %v2816_v16 = vsub.s32 32, %v7590_v22  ;;  %v3068_v27 = vsel %vm3067_vm1, %v3066_v61, 0 }
 0x34f   : > { %v7602_v32 = vmul.u32.u64.low %v3000_v59, %v2999_v21  ;;  %v7603_v28 = vmul.u32.u64.high %v3000_v59, %v2999_v21, %v7602_v32  ;;  %v2820_v2 = vsub.s32 4294967266, %v7590_v22  ;;  %v2916_v0 = vclz %v4561_v30 }
 0x350   : > { %v2991_v4 = vsel %vm2985_vm4, %v2988_v55, %v2990_v42  ;;  %v3070_v9 = vand.u32 31, %v3068_v27  ;;  %v7611_v52 = vsel %vm9150_vm13, %v2516_v45, %v7526_v26  ;;  %v7618_v40 = vsel %vm9127_vm3, %v2620_v5, %v7528_v24 }
 0x351   : > { %9265 = vst [vmem:[#allocation75_spill] sm:$0xff] %v7611_v52  ;;  %9266 = vst [vmem:[#allocation76_spill] sm:$0xff] %v7618_v40  ;;  %v2800_v55 = vadd.s32 %v7432_v36, %v7437_v54  ;;  %v2817_v61 = vshll.u32 %v7488_v17, %v7590_v22  ;;  %v3010_v31 = vadd.s32 1, %v7597_v60  ;;  %v9128_v26 = vand.u32 2147483647, %v7568_v46 }
 0x352   : > { %v3164_v45 = vshrl.u32 %v3163_v8, 23  ;;  %v3007_v20 = vmul.u32 %v3000_v59, %v2991_v4  ;;  %vm3009_vm15 = vc.u32 %v7603_v28, %v7596_v11  ;;  %v3071_v62 = vsub.s32 32, %v3070_v9 }
 0x353   : > { %v7629_v24 = vshll.u32 %v3064_v53, 8  ;;  %v2818_v5 = vshrl.u32 %v2800_v55, %v2816_v16  ;;  %v2821_v3 = vadd.s32 127, %v2820_v2  ;;  %v4562_v15 = vadd.s32 4294967294, %v2916_v0 }
 0x354   : > { %v3011_v36 = vsel %vm3009_vm15, %v3010_v31, %v7597_v60  ;;  %v3073_v17 = vshll.u32 %v9188_v43, %v3070_v9  ;;  %v3074_v22 = vshrl.u32 %v9182_v6, %v3071_v62  ;;  %v3077_v30 = vshrl.u32 %v9183_v7, %v3071_v62 }
 0x355   : > { %v3012_v54 = vadd.s32 %v3011_v36, %v3007_v20  ;;  %v3076_v59 = vshll.u32 %v9182_v6, %v3070_v9  ;;  %v3079_v1 = vshll.u32 %v9183_v7, %v3070_v9  ;;  %v3080_v42 = vshrl.u32 %v9194_v57, %v3071_v62 }
 0x356   : > { %v4572_v53 = vadd.s32 4294967169, %v3164_v45  ;;  %v3069_v16 = vshrl.u32 %v3068_v27, 5  ;;  %v3075_v13 = vor.u32 %v3074_v22, %v3073_v17  ;;  %v7640_v21 = vand.u32 8388607, %v9128_v26 }
 0x357   : > { %v3013_v63 = vadd.s32 536870912, %v3012_v54  ;;  %v3078_v60 = vor.u32 %v3077_v30, %v3076_v59  ;;  %v3081_v8 = vor.u32 %v3080_v42, %v3079_v1  ;;  %v3082_v2 = vshll.u32 %v9194_v57, %v3070_v9 }
 0x358   : > { %v3083_v0 = vshrl.u32 %v9184_v49, %v3071_v62  ;;  %vm9145_vm2 = vcmp.lt.s32.totalorder %v7275_v41, 0  ;;  %v2822_v4 = vshll.u32 %v2821_v3, 23  ;;  %v3085_v31 = vshll.u32 %v9184_v49, %v3070_v9 }
 0x359   : > { %v7645_v55 = vshrl.u32 %v3013_v63, 30  ;;  %v3086_v27 = vshrl.u32 %v9186_v23, %v3071_v62  ;;  %vm4563_vm1 = vcmp.lt.s32.totalorder %v4562_v15, 0  ;;  %v3072_v45 = vshrl.u32 %v9188_v43, %v3071_v62 }
 0x35a   : > { %v3084_v20 = vor.u32 %v3083_v0, %v3082_v2  ;;  %v3170_v36 = vadd.s32 1, %v4572_v53  ;;  %vm3088_vm14 = vcmp.lt.s32.totalorder %v3069_v16, 1  ;;  %vm3091_vm4 = vcmp.lt.s32.totalorder %v3069_v16, 4 }
 0x35b   : > { %9267 = vst [vmem:[#allocation77_spill] sm:$0xff] %v7645_v55  ;;  %v3015_v17 = vshll.u32 %v7645_v55, 30  ;;  %v3087_v22 = vor.u32 %v3086_v27, %v3085_v31  ;;  %vm3090_vm15 = vcmp.lt.s32.totalorder %v3069_v16, 3  ;;  %v3093_v30 = vsel %vm3091_vm4, %v3081_v8, 2102212464 }
 0x35c   : > { %v3096_v59 = vsel %vm3088_vm14, %v3075_v13, %v3078_v60  ;;  %v3097_v3 = vsel %vm3091_vm4, %v3084_v20, 920167782  ;;  %vm3089_vm3 = vcmp.lt.s32.totalorder %v3069_v16, 2  ;;  %v3100_v42 = vsel %vm3088_vm14, %v3078_v60, %v3081_v8 }
 0x35d   : > { %v7651_v1 = vsub.s32 %v3012_v54, %v3015_v17  ;;  %v3098_v9 = vsel %vm3090_vm15, %v3081_v8, %v3097_v3  ;;  %v3092_v63 = vsel %vm3088_vm14, %v3072_v45, %v3075_v13  ;;  %v3094_v26 = vsel %vm3090_vm15, %v3078_v60, %v3093_v30  ;;  %v3372_v13 = vld [vmem:[%s8995_s3 + $0x20] sm:$0xff]  ;;  %v3373_v60 = vld [vmem:[%s8995_s3 + $0x28] sm:$0xff] }
 0x35e   : > { %v3099_v62 = vsel %vm3089_vm3, %v3096_v59, %v3098_v9  ;;  %v3101_v2 = vsel %vm3091_vm4, %v3087_v22, 1326507024  ;;  %v7660_v32 = vor.u32 %v2818_v5, %v2817_v61  ;;  %v7663_v54 = vsel %vm4563_vm1, 0, %v4562_v15  ;;  %v9270_v59 = vld [vmem:[#allocation66_spill] sm:$0xff] }
 0x35f   : > { %v3018_v53 = vsub.s32 0, %v7651_v1  ;;  %v3102_v0 = vsel %vm3090_vm15, %v3084_v20, %v3101_v2  ;;  %v7656_v31 = vmul.u32.u64.low %v7629_v24, %v3099_v62  ;;  %v7657_v27 = vmul.u32.u64.high %v7629_v24, %v3099_v62, %v7656_v31 }
 0x360   : > { %v3103_v8 = vsel %vm3089_vm3, %v3100_v42, %v3102_v0  ;;  %vm3171_vm14 = vcmp.gt.s32.totalorder %v3170_v36, 0  ;;  %v9268_v15 = vxor.u32 2147483648, %v7562_v33  ;;  %v3095_v22 = vsel %vm3089_vm3, %v3092_v63, %v3094_v26 }
 0x361   : > { %v4565_v45 = vmin.u32 %v3018_v53, %v7651_v1  ;;  %v7674_v20 = vmul.u32.u64.low %v7629_v24, %v3103_v8  ;;  %v7675_v61 = vmul.u32.u64.high %v7629_v24, %v3103_v8, %v7674_v20  ;;  %v3172_v5 = vsel %vm3171_vm14, %v3170_v36, 0 }
 0x362   : > { %v7682_v17 = vsel %vm9145_vm2, %v9268_v15, %v7562_v33  ;;  %v3174_v30 = vand.u32 31, %v3172_v5  ;;  %v7687_v3 = vadd.f32 %v9270_v59, %v6122_v14  ;;  %v7689_v9 = vor.u32 4788187, %v2822_v4 }
 0x363   : > { %9269 = vst [vmem:[#allocation78_spill] sm:$0xff] %v7682_v17  ;;  %v2904_v42 = vadd.s32 %v7505_v48, %v7512_v12  ;;  %v3114_v36 = vadd.s32 1, %v7657_v27  ;;  %v5064_v62 = vpack.c.bf16 %v3373_v60, %v3372_v13  ;;  %v2924_v33 = vsub.s32 4294967266, %v7663_v54 }
 0x364   : > { %v3168_v16 = vor.u32 8388608, %v7640_v21  ;;  %v3175_v26 = vsub.s32 32, %v3174_v30  ;;  %v2920_v63 = vsub.s32 32, %v7663_v54  ;;  %v3020_v53 = vclz %v4565_v45 }
 0x365   : > { %v3111_v14 = vmul.u32 %v7629_v24, %v3095_v22  ;;  %vm3113_vm3 = vc.u32 %v7675_v61, %v7656_v31  ;;  %5065 = vmatpush3.bf16.msra.mxu0 %v5064_v62  ;;  %v3177_v12 = vshll.u32 %v9188_v43, %v3174_v30  ;;  %v9271_v8 = vmov 0.0|0.0  }
 0x366   : > { %v3115_v48 = vsel %vm3113_vm3, %v3114_v36, %v7657_v27  ;;  %v3178_v4 = vshrl.u32 %v9182_v6, %v3175_v26  ;;  %v3181_v0 = vshrl.u32 %v9183_v7, %v3175_v26  ;;  %5066 = vmatprep.subr.bf16.mxu0 %v9271_v8  ;;  %v3180_v13 = vshll.u32 %v9182_v6, %v3174_v30 }
 0x367   : > { %v3116_v21 = vadd.s32 %v3115_v48, %v3111_v14  ;;  %v3184_v60 = vshrl.u32 %v9194_v57, %v3175_v26  ;;  %v3187_v24 = vshrl.u32 %v9184_v49, %v3175_v26  ;;  %v7709_v45 = vadd.s32 127, %v2924_v33 }
 0x368   : > { %v3173_v20 = vshrl.u32 %v3172_v5, 5  ;;  %v3183_v27 = vshll.u32 %v9183_v7, %v3174_v30  ;;  %v3186_v15 = vshll.u32 %v9194_v57, %v3174_v30  ;;  %v4566_v22 = vadd.s32 4294967294, %v3020_v53  ;;  %v3385_v5 = vld [vmem:[#allocation4 + $0x8] sm:$0xff] }
 0x369   : > { %v3117_v59 = vadd.s32 536870912, %v3116_v21  ;;  %v3179_v36 = vor.u32 %v3178_v4, %v3177_v12  ;;  %v3182_v62 = vor.u32 %v3181_v0, %v3180_v13  ;;  %v3189_v14 = vshll.u32 %v9184_v49, %v3174_v30 }
 0x36a   : > { %v3185_v2 = vor.u32 %v3184_v60, %v3183_v27  ;;  %v3188_v55 = vor.u32 %v3187_v24, %v3186_v15  ;;  %v3190_v48 = vshrl.u32 %v9186_v23, %v3175_v26  ;;  %v2921_v38 = vshll.u32 %v7581_v10, %v7663_v54  ;;  %v3401_v27 = vld [vmem:[#allocation4 + $0x88] sm:$0xff] }
 0x36b   : > { %v2922_v33 = vshrl.u32 %v2904_v42, %v2920_v63  ;;  %v7717_v29 = vshrl.u32 %v3117_v59, 30  ;;  %v2926_v40 = vshll.u32 %v7709_v45, 23  ;;  %v7721_v34 = vshll.u32 %v3168_v16, 8  ;;  %v3400_v45 = vld [vmem:[#allocation4 + $0x80] sm:$0xff] }
 0x36c   : > { %v3191_v53 = vor.u32 %v3190_v48, %v3189_v14  ;;  %v3267_v12 = vand.u32 2139095040, %v7687_v3  ;;  %v3176_v30 = vshrl.u32 %v9188_v43, %v3175_v26  ;;  %vm3192_vm1 = vcmp.lt.s32.totalorder %v3173_v20, 1  ;;  %v3384_v48 = vld [vmem:[#allocation4] sm:$0xff] }
 0x36d   : > { %9272 = vst [vmem:[#allocation66_spill] sm:$0xff] %v7717_v29  ;;  %v3119_v4 = vshll.u32 %v7717_v29, 30  ;;  %vm3195_vm4 = vcmp.lt.s32.totalorder %v3173_v20, 4  ;;  %vm4567_vm15 = vcmp.lt.s32.totalorder %v4566_v22, 0  ;;  %v3200_v54 = vsel %vm3192_vm1, %v3179_v36, %v3182_v62  ;;  %v3402_v29 = vld [vmem:[#allocation4 + $0x90] sm:$0xff] }
 0x36e   : > { %v3197_v10 = vsel %vm3195_vm4, %v3185_v2, 2102212464  ;;  %v3201_v42 = vsel %vm3195_vm4, %v3188_v55, 920167782  ;;  %vm3193_vm14 = vcmp.lt.s32.totalorder %v3173_v20, 2  ;;  %vm3194_vm3 = vcmp.lt.s32.totalorder %v3173_v20, 3 }
 0x36f   : > { %v7726_v63 = vsub.s32 %v3116_v21, %v3119_v4  ;;  %v3204_v0 = vsel %vm3192_vm1, %v3182_v62, %v3185_v2  ;;  %v3196_v13 = vsel %vm3192_vm1, %v3176_v30, %v3179_v36  ;;  %v3202_v16 = vsel %vm3194_vm3, %v3185_v2, %v3201_v42  ;;  %v3374_v36 = vld [vmem:[%s8995_s3 + $0x30] sm:$0xff] }
 0x370   : > { %v3205_v60 = vsel %vm3195_vm4, %v3191_v53, 1326507024  ;;  %v3268_v24 = vshrl.u32 %v3267_v12, 23  ;;  %v3198_v26 = vsel %vm3194_vm3, %v3182_v62, %v3197_v10  ;;  %v3203_v59 = vsel %vm3193_vm14, %v3200_v54, %v3202_v16  ;;  %v3375_v62 = vld [vmem:[%s8995_s3 + $0x38] sm:$0xff] }
 0x371   : > { %v3122_v15 = vsub.s32 0, %v7726_v63  ;;  %v3206_v14 = vsel %vm3194_vm3, %v3188_v55, %v3205_v60  ;;  %v7732_v4 = vmul.u32.u64.low %v7721_v34, %v3203_v59  ;;  %v7733_v17 = vmul.u32.u64.high %v7721_v34, %v3203_v59, %v7732_v4  ;;  %v3403_v55 = vld [vmem:[#allocation4 + $0x98] sm:$0xff]  ;;  %v3386_v60 = vld [vmem:[#allocation4 + $0x10] sm:$0xff] }
 0x372   : > { %v3207_v21 = vsel %vm3193_vm14, %v3204_v0, %v3206_v14  ;;  %v4576_v2 = vadd.s32 4294967169, %v3268_v24  ;;  %v7743_v53 = vsel %vm4567_vm15, 0, %v4566_v22  ;;  %v3199_v54 = vsel %vm3193_vm14, %v3196_v13, %v3198_v26  ;;  %v3387_v24 = vld [vmem:[#allocation4 + $0x18] sm:$0xff]  ;;  %v3404_v22 = vld [vmem:[#allocation4 + $0xa0] sm:$0xff]  ;;  %v3389_v26 = vld [vmem:[#allocation4 + $0x28] sm:$0xff] }
 0x373   : > { %v4569_v12 = vmin.u32 %v3122_v15, %v7726_v63  ;;  %v7747_v30 = vmul.u32.u64.low %v7721_v34, %v3207_v21  ;;  %v7748_v10 = vmul.u32.u64.high %v7721_v34, %v3207_v21, %v7747_v30  ;;  %v5025_v0 = vpack.c.bf16 %v3401_v27, %v3400_v45 }
 0x374   : > { %v3274_v42 = vadd.s32 1, %v4576_v2  ;;  %v5027_v16 = vpack.c.bf16 %v3385_v5, %v3384_v48  ;;  %v7751_v59 = vor.u32 %v2922_v33, %v2921_v38  ;;  %v5067_v41 = vpack.c.bf16 %v3375_v62, %v3374_v36 }
 0x375   : > { %v3124_v14 = vclz %v4569_v12  ;;  %v5029_v58 = vpack.c.bf16 %v3403_v55, %v3402_v29  ;;  %v7753_v52 = vor.u32 4788187, %v2926_v40  ;;  %v3028_v15 = vsub.s32 4294967266, %v7743_v53  ;;  %5026 = vmatprep.subr.bf16.mxu1 %v5025_v0  ;;  %v3376_v29 = vld [vmem:[%s8995_s3 + $0x40] sm:$0xff]  ;;  %v3377_v40 = vld [vmem:[%s8995_s3 + $0x48] sm:$0xff]  ;;  %v3406_v55 = vld [vmem:[#allocation4 + $0xb0] sm:$0xff] }
 0x376   : > { %v3218_v21 = vadd.s32 1, %v7733_v17  ;;  %vm3275_vm1 = vcmp.gt.s32.totalorder %v3274_v42, 0  ;;  %v3215_v5 = vmul.u32 %v7721_v34, %v3199_v54  ;;  %vm3217_vm4 = vc.u32 %v7748_v10, %v7732_v4  ;;  %5028 = vmatpush3.bf16.msra.mxu1 %v5027_v16  ;;  %5068 = vmatpush3.bf16.msra.mxu0 %v5067_v41  ;;  %v3388_v41 = vld [vmem:[#allocation4 + $0x20] sm:$0xff]  ;;  %v3407_v12 = vld [vmem:[#allocation4 + $0xb8] sm:$0xff] }
 0x377   : > { %v4570_v20 = vadd.s32 4294967294, %v3124_v14  ;;  %v5031_v38 = vpack.c.bf16 %v3387_v24, %v3386_v60  ;;  %v9273_v13 = vand.u32 2147483647, %v7687_v3  ;;  %v3276_v34 = vsel %vm3275_vm1, %v3274_v42, 0  ;;  %5030 = vmatprep.subr.bf16.mxu1 %v5029_v58  ;;  %5069 = vmatprep.subr.bf16.mxu0 %v9271_v8  ;;  %v3390_v24 = vld [vmem:[#allocation4 + $0x30] sm:$0xff]  ;;  %v3391_v14 = vld [vmem:[#allocation4 + $0x38] sm:$0xff] }
 0x378   : > { %v3219_v33 = vsel %vm3217_vm4, %v3218_v21, %v7733_v17  ;;  %v5033_v27 = vpack.c.bf16 %v3405_v51, %v3404_v22  ;;  %v3008_v2 = vadd.s32 %v7596_v11, %v7603_v28  ;;  %v3278_v62 = vand.u32 31, %v3276_v34 }
 0x379   : > { %v3271_v45 = vand.u32 8388607, %v9273_v13  ;;  %v3220_v36 = vadd.s32 %v3219_v33, %v3215_v5  ;;  %vm4571_vm15 = vcmp.lt.s32.totalorder %v4570_v20, 0  ;;  %v5070_v58 = vpack.c.bf16 %v3377_v40, %v3376_v29 }
 0x37a   : > { %v3024_v51 = vsub.s32 32, %v7743_v53  ;;  %v7776_v54 = vadd.s32 127, %v3028_v15  ;;  %5032 = vmatpush3.bf16.msra.mxu1 %v5031_v38  ;;  %v5035_v0 = vpack.c.bf16 %v3389_v26, %v3388_v41  ;;  %v7778_v60 = vshrl.u32 %v3276_v34, 5 }
 0x37b   : > { %v3221_v42 = vadd.s32 536870912, %v3220_v36  ;;  %v3272_v16 = vor.u32 8388608, %v3271_v45  ;;  %v3279_v11 = vsub.s32 32, %v3278_v62  ;;  %5034 = vmatprep.subr.bf16.mxu1 %v5033_v27  ;;  %5071 = vmatpush3.bf16.msra.mxu0 %v5070_v58  ;;  %v5037_v28 = vpack.c.bf16 %v3407_v12, %v3406_v55 }
 0x37c   : > { %v7780_v22 = vsel %vm4571_vm15, 0, %v4570_v20  ;;  %v3281_v5 = vshll.u32 %v9188_v43, %v3278_v62  ;;  %v3284_v15 = vshll.u32 %v9182_v6, %v3278_v62  ;;  %5072 = vmatprep.subr.bf16.mxu0 %v9271_v8  ;;  %v3287_v40 = vshll.u32 %v9183_v7, %v3278_v62 }
 0x37d   : > { %v7782_v21 = vshrl.u32 %v3221_v42, 30  ;;  %v3282_v38 = vshrl.u32 %v9182_v6, %v3279_v11  ;;  %v3285_v29 = vshrl.u32 %v9183_v7, %v3279_v11  ;;  %v3288_v33 = vshrl.u32 %v9194_v57, %v3279_v11 }
 0x37e   : > { %v3290_v20 = vshll.u32 %v9194_v57, %v3278_v62  ;;  %v3291_v45 = vshrl.u32 %v9184_v49, %v3279_v11  ;;  %5036 = vmatpush3.bf16.msra.mxu1 %v5035_v0  ;;  %v5039_v34 = vpack.c.bf16 %v3391_v14, %v3390_v24  ;;  %v3112_v27 = vadd.s32 %v7656_v31, %v7675_v61 }
 0x37f   : > { %9274 = vst [vmem:[#allocation79_spill] sm:$0xff] %v7782_v21  ;;  %v3223_v13 = vshll.u32 %v7782_v21, 30  ;;  %v3283_v41 = vor.u32 %v3282_v38, %v3281_v5  ;;  %v3286_v26 = vor.u32 %v3285_v29, %v3284_v15  ;;  %v3289_v55 = vor.u32 %v3288_v33, %v3287_v40  ;;  %5038 = vmatprep.subr.bf16.mxu1 %v5037_v28  ;;  %v3392_v15 = vld [vmem:[#allocation4 + $0x40] sm:$0xff]  ;;  %v3393_v38 = vld [vmem:[#allocation4 + $0x48] sm:$0xff]  ;;  %v3410_v29 = vld [vmem:[#allocation4 + $0xd0] sm:$0xff] }
 0x380   : > { %v3026_v12 = vshrl.u32 %v3008_v2, %v3024_v51  ;;  %v3030_v58 = vshll.u32 %v7776_v54, 23  ;;  %v3292_v30 = vor.u32 %v3291_v45, %v3290_v20  ;;  %v3132_v17 = vsub.s32 4294967266, %v7780_v22  ;;  %v3408_v54 = vld [vmem:[#allocation4 + $0xc0] sm:$0xff]  ;;  %v3378_v20 = vld [vmem:[%s8995_s3 + $0x50] sm:$0xff]  ;;  %v3379_v45 = vld [vmem:[%s8995_s3 + $0x58] sm:$0xff] }
 0x381   : > { %v7797_v42 = vsub.s32 %v3220_v36, %v3223_v13  ;;  %v3293_v48 = vshll.u32 %v9184_v49, %v3278_v62  ;;  %v3294_v0 = vshrl.u32 %v9186_v23, %v3279_v11  ;;  %v7802_v24 = vshll.u32 %v3272_v16, 8  ;;  %v3409_v16 = vld [vmem:[#allocation4 + $0xc8] sm:$0xff] }
 0x382   : > { %vm3296_vm14 = vcmp.lt.s32.totalorder %v7778_v60, 1  ;;  %vm3298_vm3 = vcmp.lt.s32.totalorder %v7778_v60, 3  ;;  %vm3299_vm1 = vcmp.lt.s32.totalorder %v7778_v60, 4  ;;  %5040 = vmatpush3.bf16.msra.mxu1 %v5039_v34  ;;  %v3280_v23 = vshrl.u32 %v9188_v43, %v3279_v11  ;;  %v3411_v34 = vld [vmem:[#allocation4 + $0xd8] sm:$0xff] }
 0x383   : > { %v3226_v31 = vsub.s32 0, %v7797_v42  ;;  %v3295_v61 = vor.u32 %v3294_v0, %v3293_v48  ;;  %v3301_v2 = vsel %vm3299_vm1, %v3289_v55, 2102212464  ;;  %v3304_v36 = vsel %vm3296_vm14, %v3283_v41, %v3286_v26 }
 0x384   : > { %v3305_v51 = vsel %vm3299_vm1, %v3292_v30, 920167782  ;;  %vm3297_vm4 = vcmp.lt.s32.totalorder %v7778_v60, 2  ;;  %v3128_v28 = vsub.s32 32, %v7780_v22  ;;  %v3308_v14 = vsel %vm3296_vm14, %v3286_v26, %v3289_v55 }
 0x385   : > { %v4573_v49 = vmin.u32 %v3226_v31, %v7797_v42  ;;  %v3306_v62 = vsel %vm3298_vm3, %v3289_v55, %v3305_v51  ;;  %v3309_v5 = vsel %vm3299_vm1, %v3295_v61, 1326507024  ;;  %v3300_v40 = vsel %vm3296_vm14, %v3280_v23, %v3283_v41  ;;  %v3394_v31 = vld [vmem:[#allocation4 + $0x50] sm:$0xff]  ;;  %v3395_v51 = vld [vmem:[#allocation4 + $0x58] sm:$0xff]  ;;  %v3381_v23 = vld [vmem:[%s8995_s3 + $0x68] sm:$0xff] }
 0x386   : > { %v3307_v48 = vsel %vm3297_vm4, %v3304_v36, %v3306_v62  ;;  %v3302_v33 = vsel %vm3298_vm3, %v3286_v26, %v3301_v2  ;;  %v3310_v13 = vsel %vm3298_vm3, %v3292_v30, %v3309_v5  ;;  %v5041_v26 = vpack.c.bf16 %v3409_v16, %v3408_v54 }
 0x387   : > { %v3228_v11 = vclz %v4573_v49  ;;  %v3311_v55 = vsel %vm3297_vm4, %v3308_v14, %v3310_v13  ;;  %v7835_v41 = vmul.u32.u64.low %v7802_v24, %v3307_v48  ;;  %v7836_v0 = vmul.u32.u64.high %v7802_v24, %v3307_v48, %v7835_v41  ;;  %v3380_v49 = vld [vmem:[%s8995_s3 + $0x60] sm:$0xff] }
 0x388   : > { %v3025_v30 = vshll.u32 %v7651_v1, %v7743_v53  ;;  %v3133_v61 = vadd.s32 127, %v3132_v17  ;;  %v7842_v2 = vmul.u32.u64.low %v7802_v24, %v3311_v55  ;;  %v7843_v36 = vmul.u32.u64.high %v7802_v24, %v3311_v55, %v7842_v2  ;;  %5042 = vmatprep.subr.bf16.mxu1 %v5041_v26  ;;  %v3412_v1 = vld [vmem:[#allocation4 + $0xe0] sm:$0xff]  ;;  %v3413_v53 = vld [vmem:[#allocation4 + $0xe8] sm:$0xff] }
 0x389   : > { %v4574_v62 = vadd.s32 4294967294, %v3228_v11  ;;  %v5073_v54 = vpack.c.bf16 %v3379_v45, %v3378_v20  ;;  %v5043_v16 = vpack.c.bf16 %v3393_v38, %v3392_v15  ;;  %v5045_v48 = vpack.c.bf16 %v3411_v34, %v3410_v29  ;;  %v3397_v29 = vld [vmem:[#allocation4 + $0x68] sm:$0xff] }
 0x38a   : > { %v7851_v17 = vor.u32 %v3026_v12, %v3025_v30  ;;  %v7853_v14 = vor.u32 4788187, %v3030_v58  ;;  %v3130_v5 = vshrl.u32 %v3112_v27, %v3128_v28  ;;  %v3303_v13 = vsel %vm3297_vm4, %v3300_v40, %v3302_v33  ;;  %v3396_v12 = vld [vmem:[#allocation4 + $0x60] sm:$0xff]  ;;  %v3382_v40 = vld [vmem:[%s8995_s3 + $0x70] sm:$0xff] }
 0x38b   : > { %v9275_v55 = vand.u32 2147483647, %v7689_v9  ;;  %v9276_v2 = vcvt.s32.f32 %v7660_v32  ;;  %v3322_v11 = vadd.s32 1, %v7836_v0  ;;  %5074 = vmatpush3.bf16.msra.mxu0 %v5073_v54  ;;  %5044 = vmatpush3.bf16.msra.mxu1 %v5043_v16  ;;  %v5047_v15 = vpack.c.bf16 %v3395_v51, %v3394_v31  ;;  %v9279_v33 = vld [vmem:[#allocation21_spill] sm:$0xff] }
 0x38c   : > { %v5076_v38 = vpack.c.bf16 %v3381_v23, %v3380_v49  ;;  %v9277_v58 = vand.u32 2147483647, %v7753_v52  ;;  %v9278_v27 = vcvt.s32.f32 %v7751_v59  ;;  %v3129_v9 = vshll.u32 %v7726_v63, %v7780_v22  ;;  %5046 = vmatprep.subr.bf16.mxu1 %v5045_v48  ;;  %5075 = vmatprep.subr.bf16.mxu0 %v9271_v8  ;;  %v3383_v52 = vld [vmem:[%s8995_s3 + $0x78] sm:$0xff]  ;;  %v3414_v63 = vld [vmem:[#allocation4 + $0xf0] sm:$0xff]  ;;  %v9280_v48 = vld [vmem:[#allocation27_spill] sm:$0xff] }
 0x38d   : > { %v7861_v21 = vmul.f32 %v9276_v2, %v9275_v55  ;;  %v3134_v60 = vshll.u32 %v3133_v61, 23  ;;  %v5049_v32 = vpack.c.bf16 %v3413_v53, %v3412_v1  ;;  %vm4575_vm15 = vcmp.lt.s32.totalorder %v4574_v62, 0  ;;  %v3415_v22 = vld [vmem:[#allocation4 + $0xf8] sm:$0xff]  ;;  %v3398_v54 = vld [vmem:[#allocation4 + $0x70] sm:$0xff] }
 0x38e   : > { %v7868_v28 = vmul.f32 %v9278_v27, %v9277_v58  ;;  %v3319_v59 = vmul.u32 %v7802_v24, %v3303_v13  ;;  %vm3321_vm14 = vc.u32 %v7843_v36, %v7835_v41  ;;  %v768_v20 = vand.u32 2147483647, %v9279_v33  ;;  %v3399_v16 = vld [vmem:[#allocation4 + $0x78] sm:$0xff]  ;;  %v9281_v1 = vld [vmem:[#allocation28_spill] sm:$0xff] }
 0x38f   : > { %v3032_v45 = vand.u32 2147483647, %v7853_v14  ;;  %v3034_v34 = vcvt.s32.f32 %v7851_v17  ;;  %v7885_v26 = vor.u32 %v3130_v5, %v3129_v9  ;;  %v3323_v31 = vsel %vm3321_vm14, %v3322_v11, %v7836_v0  ;;  %5048 = vmatpush3.bf16.msra.mxu1 %v5047_v15  ;;  %5077 = vmatpush3.bf16.msra.mxu0 %v5076_v38 }
 0x390   : > { %v3324_v30 = vadd.s32 %v3323_v31, %v3319_v59  ;;  %v5051_v61 = vpack.c.bf16 %v3397_v29, %v3396_v12  ;;  %v5079_v24 = vpack.c.bf16 %v3383_v52, %v3382_v40  ;;  %v775_v51 = vand.u32 8388607, %v768_v20  ;;  %5050 = vmatprep.subr.bf16.mxu1 %v5049_v32  ;;  %5078 = vmatprep.subr.bf16.mxu0 %v9271_v8  ;;  %v9282_v32 = vld [vmem:[#allocation26_spill] sm:$0xff]  ;;  %v9284_v40 = vld [vmem:[#allocation32_spill] sm:$0xff]  ;;  %v9285_v59 = vld [vmem:[#allocation37_spill] sm:$0xff] }
 0x391   : > { %v7891_v49 = vsel %vm4575_vm15, 0, %v4574_v62  ;;  %v5053_v23 = vpack.c.bf16 %v3415_v22, %v3414_v63  ;;  %v785_v0 = vshll.u32 %v9188_v43, %v9280_v48  ;;  %v786_v53 = vshrl.u32 %v9182_v6, %v9281_v1  ;;  %v9283_v29 = vld [vmem:[#allocation38_spill] sm:$0xff] }
 0x392   : > { %v7898_v5 = vor.u32 4788187, %v3134_v60  ;;  %v3325_v13 = vadd.s32 536870912, %v3324_v30  ;;  %v788_v55 = vshll.u32 %v9182_v6, %v9280_v48  ;;  %v789_v62 = vshrl.u32 %v9183_v7, %v9281_v1 }
 0x393   : > { %v776_v2 = vor.u32 8388608, %v775_v51  ;;  %v787_v11 = vor.u32 %v786_v53, %v785_v0  ;;  %v791_v15 = vshll.u32 %v9183_v7, %v9280_v48  ;;  %v792_v38 = vshrl.u32 %v9194_v57, %v9281_v1  ;;  %5052 = vmatpush3.bf16.msra.mxu1 %v5051_v61  ;;  %5080 = vmatpush3.bf16.msra.mxu0 %v5079_v24 }
 0x394   : > { %v3236_v12 = vsub.s32 4294967266, %v7891_v49  ;;  %v7909_v58 = vshrl.u32 %v3325_v13, 30  ;;  %v5055_v27 = vpack.c.bf16 %v3399_v16, %v3398_v54  ;;  %v790_v9 = vor.u32 %v789_v62, %v788_v55  ;;  %5054 = vmatprep.subr.bf16.mxu1 %v5053_v23  ;;  %5105 = vmatprep.subr.bf16.mxu0 %v9271_v8  ;;  %v9286_v55 = vld [vmem:[#allocation70_spill] sm:$0xff] }
 0x395   : > { %v784_v6 = vshrl.u32 %v9188_v43, %v9281_v1  ;;  %v793_v60 = vor.u32 %v792_v38, %v791_v15  ;;  %vm800_vm3 = vcmp.lt.s32.totalorder %v9282_v32, 1  ;;  %vm802_vm1 = vcmp.lt.s32.totalorder %v9282_v32, 3  ;;  %v9299_v38 = vld [vmem:[#allocation44_spill] sm:$0xff] }
 0x396   : > { %v3327_v7 = vshll.u32 %v7909_v58, 30  ;;  %vm801_vm4 = vcmp.lt.s32.totalorder %v9282_v32, 2  ;;  %v808_v57 = vsel %vm800_vm3, %v787_v11, %v790_v9  ;;  %v814_v52 = vsel %vm802_vm1, %v9284_v40, %v9283_v29 }
 0x397   : > { %v805_v43 = vsel %vm803_vm9, %v793_v60, 2102212464  ;;  %v810_v63 = vsel %vm802_vm1, %v793_v60, %v9285_v59  ;;  %v812_v22 = vsel %vm800_vm3, %v790_v9, %v793_v60  ;;  %v816_v31 = vshll.u32 %v776_v2, 8  ;;  %5056 = vmatpush3.bf16.msra.mxu1 %v5055_v27  ;;  %v9292_v60 = vld [vmem:[#allocation39_spill] sm:$0xff] }
 0x398   : > { %v3237_v61 = vadd.s32 127, %v3236_v12  ;;  %v7931_v24 = vsub.s32 %v3324_v30, %v3327_v7  ;;  %v811_v51 = vsel %vm801_vm4, %v808_v57, %v810_v63  ;;  %v815_v23 = vsel %vm801_vm4, %v812_v22, %v814_v52  ;;  %5081 = vmatprep.subr.bf16.mxu1 %v9271_v8  ;;  %v9291_v12 = vld [vmem:[#allocation20_spill] sm:$0xff]  ;;  %v5559_v52 = vld [vmem:[%s6067_s27] sm:$0xff] }
 0x399   : > { %v804_v54 = vsel %vm800_vm3, %v784_v6, %v787_v11  ;;  %v806_v16 = vsel %vm802_vm1, %v790_v9, %v805_v43  ;;  %v7941_v48 = vmul.u32.u64.low %v816_v31, %v815_v23  ;;  %v7942_v0 = vmul.u32.u64.high %v816_v31, %v815_v23, %v7941_v48  ;;  %v9287_v11 = vld [vmem:[#allocation17_spill] sm:$0xff] }
 0x39a   : > { %v3232_v30 = vsub.s32 32, %v7891_v49  ;;  %v3330_v1 = vsub.s32 0, %v7931_v24  ;;  %v7947_v53 = vmul.u32.u64.low %v816_v31, %v811_v51  ;;  %v7948_v13 = vmul.u32.u64.high %v816_v31, %v811_v51, %v7947_v53  ;;  %v5560_v48 = vld [vmem:[%s6067_s27 + $0x8] sm:$0xff] }
 0x39b   : > { %vm9148_vm9 = vcmp.lt.s32.totalorder %v9286_v55, 0  ;;  %v3136_v62 = vand.u32 2147483647, %v7898_v5  ;;  %v3216_v2 = vadd.s32 %v7732_v4, %v7748_v10  ;;  %v9288_v15 = vand.u32 2147483647, %v9287_v11 }
 0x39c   : > { %v750_v27 = vsub.s32 4, %v9291_v12  ;;  %v4577_v9 = vmin.u32 %v3330_v1, %v7931_v24  ;;  %v807_v6 = vsel %vm801_vm4, %v804_v54, %v806_v16  ;;  %vm9149_vm14 = vcmp.lt.s32.totalorder %v7396_v19, 0 }
 0x39d   : > { %vm7957_vm15 = vcmp.le.f32.partialorder %v9288_v15, 0.7853982  ;;  %vm9146_vm3 = vcmp.lt.s32.totalorder %v7481_v47, 0  ;;  %v3035_v4 = vmul.f32 %v3034_v34, %v3032_v45  ;;  %v3138_v10 = vcvt.s32.f32 %v7885_v26 }
 0x39e   : > { %v752_v5 = vsel %vm7957_vm15, %v9287_v11, %v9292_v60  ;;  %v3238_v7 = vshll.u32 %v3237_v61, 23  ;;  %vm825_vm1 = vc.u32 %v7942_v0, %v7947_v53  ;;  %vm5833_vm4 = vmmov 0   ;;  %v9294_v61 = vld [vmem:[#allocation25_spill] sm:$0xff] }
 0x39f   : > { %v9293_v32 = vmov 0.0   ;;  %v3234_v57 = vshrl.u32 %v3216_v2, %v3232_v30  ;;  %v3332_v29 = vclz %v4577_v9  ;;  %v826_v40 = vadd.s32 1, %v7948_v13  ;;  %v9295_v30 = vld [vmem:[#allocation19_spill] sm:$0xff] }
 0x3a0   : > { %4812 = vmatprep.mubr.msk.f32.mxu0 %vm5833_vm4, %v9293_v32  ;;  %5403 = vcosq.f32 %v752_v5  ;;  %v2828_v17 = vxor.u32 2147483648, %v7861_v21  ;;  %v823_v14 = vmul.u32 %v816_v31, %v807_v6  ;;  %v751_v45 = vsel %vm666_vm12, %v750_v27, %v9291_v12 }
 0x3a1   : > { %4813 = vmatmul.mubr.msk.f32.vlgmr.msra.gmra.mrb[26].mxu0 %vm463_vm0, %v5559_v52  ;;  %5405 = vsinq.f32 %v752_v5  ;;  %v3139_v34 = vmul.f32 %v3138_v10, %v3136_v62  ;;  %v3233_v26 = vshll.u32 %v7797_v42, %v7891_v49  ;;  %v4578_v43 = vadd.s32 4294967294, %v3332_v29 }
 0x3a2   : > { %4815 = vmatprep.mubr.msk.f32.mxu0 %vm5833_vm4, %v9293_v32  ;;  %v827_v59 = vsel %vm825_vm1, %v826_v40, %v7948_v13  ;;  %v2932_v63 = vxor.u32 2147483648, %v7868_v28  ;;  %v3239_v22 = vor.u32 4788187, %v3238_v7  ;;  %v1062_v51 = vsub.s32 4, %v9294_v61  ;;  %v5569_v13 = vld [vmem:[%s6067_s27 + $0x50] sm:$0xff] }
 0x3a3   : > { %v828_v31 = vadd.s32 %v827_v59, %v823_v14  ;;  %v3036_v23 = vxor.u32 2147483648, %v3035_v4  ;;  %v3235_v54 = vor.u32 %v3234_v57, %v3233_v26  ;;  %vm4579_vm12 = vcmp.lt.s32.totalorder %v4578_v43, 0  ;;  %v5561_v57 = vld [vmem:[%s6067_s27 + $0x10] sm:$0xff] }
 0x3a4   : > { %v753_v16 = vsel %vm7957_vm15, 0, %v751_v45  ;;  %vm9147_vm2 = vcmp.lt.s32.totalorder %v7486_v44, 0  ;;  %v3335_v42 = vsel %vm4579_vm12, 0, %v4578_v43  ;;  %v9296_v1 = vand.u32 2147483647, %v9295_v30 }
 0x3a5   : > { %4816 = vmatmul.mubr.msk.f32.gmra.mrb[28].mxu0 %vm463_vm0, %v5560_v48  ;;  %v829_v49 = vadd.s32 536870912, %v828_v31  ;;  %v8013_v62 = vsel %vm9148_vm9, %v2828_v17, %v7861_v21  ;;  %v3140_v2 = vxor.u32 2147483648, %v3139_v34  ;;  %v3340_v15 = vsub.s32 4294967266, %v3335_v42 }
 0x3a6   : > { %vm8004_vm1 = vcmp.le.f32.partialorder %v9296_v1, 0.7853982  ;;  %4818 = vmatprep.mubr.msk.f32.mxu0 %vm5833_vm4, %v9293_v32  ;;  %v3240_v27 = vand.u32 2147483647, %v3239_v22  ;;  %v757_v6 = vadd.s32 3, %v753_v16  ;;  %v1063_v60 = vsel %vm978_vm10, %v1062_v51, %v9294_v61  ;;  %v9305_v51 = vld [vmem:[#allocation43_spill] sm:$0xff] }
 0x3a7   : > { %v1064_v12 = vsel %vm8004_vm1, %v9295_v30, %v9299_v38  ;;  %v830_v9 = vshrl.u32 %v829_v49, 30  ;;  %v8025_v5 = vsel %vm9149_vm14, %v2932_v63, %v7868_v28  ;;  %v8029_v21 = vsel %vm9146_vm3, %v3036_v23, %v3035_v4  ;;  %v9300_v63 = vld [vmem:[#allocation18_spill] sm:$0xff] }
 0x3a8   : > { %v3242_v10 = vcvt.s32.f32 %v3235_v54  ;;  %v3336_v7 = vsub.s32 32, %v3335_v42  ;;  %v3341_v29 = vadd.s32 127, %v3340_v15  ;;  %5407 = vcosq.f32 %v1064_v12  ;;  %v5562_v54 = vld [vmem:[%s6067_s27 + $0x18] sm:$0xff] }
 0x3a9   : > { %4819 = vmatmul.mubr.msk.f32.gmra.mrb[30].mxu0 %vm463_vm0, %v5561_v57  ;;  %v831_v40 = vshll.u32 %v830_v9, 30  ;;  %v854_v52 = vsub.s32 4, %v830_v9  ;;  %v8037_v28 = vsel %vm9147_vm2, %v3140_v2, %v3139_v34  ;;  %v3320_v4 = vadd.s32 %v7835_v41, %v7843_v36  ;;  %v9304_v41 = vld [vmem:[#allocation23_spill] sm:$0xff]  ;;  %v9308_v57 = vld [vmem:[#allocation24_spill] sm:$0xff] }
 0x3aa   : > { %4821 = vmatprep.mubr.msk.f32.mxu0 %vm5833_vm4, %v9293_v32  ;;  %v5404_v17 = vpop.eup %5403  ;;  %v1065_v14 = vsel %vm8004_vm1, 0, %v1063_v60  ;;  %5409 = vsinq.f32 %v1064_v12  ;;  %v8043_v26 = vmul.f32 %v3242_v10, %v3240_v27  ;;  %v758_v59 = vand.u32 3, %v757_v6 }
 0x3ab   : > { %v5406_v45 = vpop.eup %5405  ;;  %v8045_v43 = vsub.s32 %v828_v31, %v831_v40  ;;  %v9301_v22 = vand.u32 2147483647, %v9300_v63  ;;  %v3338_v34 = vshrl.u32 %v3320_v4, %v3336_v7  ;;  %vm770_vm15 = vcmp.lt.s32.totalorder %v9279_v33, 0 }
 0x3ac   : > { %v958_v36 = vsub.s32 4, %v9304_v41  ;;  %v3342_v31 = vshll.u32 %v3341_v29, 23  ;;  %v855_v48 = vsel %vm770_vm15, %v854_v52, %v830_v9  ;;  %v1069_v49 = vadd.s32 3, %v1065_v14 }
 0x3ad   : > { %vm8049_vm10 = vcmp.le.f32.partialorder %v9301_v22, 0.7853982  ;;  %4822 = vmatmul.mubr.msk.f32.gmra.mrb[32].mxu0 %vm463_vm0, %v5562_v54  ;;  %v834_v16 = vsub.s32 0, %v8045_v43  ;;  %v3337_v1 = vshll.u32 %v7931_v24, %v3335_v42  ;;  %vm8069_vm12 = vcmp.le.f32.partialorder %v768_v20, 0.7853982  ;;  %v5563_v24 = vld [vmem:[%s6067_s27 + $0x20] sm:$0xff] }
 0x3ae   : > { %v960_v23 = vsel %vm8049_vm10, %v9300_v63, %v9305_v51  ;;  %4824 = vmatprep.mubr.msk.f32.mxu0 %vm5833_vm4, %v9293_v32  ;;  %v761_v2 = vxor.u32 2147483648, %v5406_v45  ;;  %v764_v15 = vxor.u32 2147483648, %v5404_v17  ;;  %v3244_v38 = vxor.u32 2147483648, %v8043_v26  ;;  %v9313_v51 = vld [vmem:[#allocation33_spill] sm:$0xff]  ;;  %v5564_v54 = vld [vmem:[%s6067_s27 + $0x28] sm:$0xff] }
 0x3af   : > { %v4481_v12 = vmin.u32 %v834_v16, %v8045_v43  ;;  %vm760_vm1 = vcmp.eq.s32.totalorder %v758_v59, 0  ;;  %5411 = vcosq.f32 %v960_v23  ;;  %v3339_v27 = vor.u32 %v3338_v34, %v3337_v1  ;;  %v9312_v34 = vld [vmem:[#allocation49_spill] sm:$0xff] }
 0x3b0   : > { %v857_v9 = vsel %vm8069_vm12, 0, %v855_v48  ;;  %vm763_vm3 = vcmp.eq.s32.totalorder %v758_v59, 2  ;;  %5413 = vsinq.f32 %v960_v23  ;;  %v3343_v20 = vor.u32 4788187, %v3342_v31 }
 0x3b1   : > { %4825 = vmatmul.mubr.msk.f32.gmra.mrb[34].mxu0 %vm463_vm0, %v5563_v24  ;;  %v836_v42 = vclz %v4481_v12  ;;  %v8079_v6 = vand.u32 3, %v1069_v49  ;;  %v959_v60 = vsel %vm874_vm8, %v958_v36, %v9304_v41  ;;  %vm756_vm2 = vweird.f32 %v9287_v11  ;;  %v5565_v12 = vld [vmem:[%s6067_s27 + $0x30] sm:$0xff]  ;;  %v5567_v11 = vld [vmem:[%s6067_s27 + $0x40] sm:$0xff] }
 0x3b2   : > { %4827 = vmatprep.mubr.msk.f32.mxu0 %vm5833_vm4, %v9293_v32  ;;  %v762_v10 = vsel %vm760_vm1, %v5404_v17, %v761_v2  ;;  %v765_v7 = vsel %vm763_vm3, %v764_v15, %v5406_v45  ;;  %v9309_v29 = vand.u32 2147483647, %v9308_v57  ;;  %v5408_v52 = vpop.eup %5407  ;;  %v824_v4 = vadd.s32 %v7947_v53, %v7942_v0 }
 0x3b3   : > { %v4482_v14 = vadd.s32 4294967294, %v836_v42  ;;  %v861_v22 = vadd.s32 3, %v857_v9  ;;  %v3346_v17 = vcvt.s32.f32 %v3339_v27  ;;  %vm759_vm8 = vcmp.lt.s32.totalorder %v758_v59, 2  ;;  %v9314_v42 = vld [vmem:[#allocation22_spill] sm:$0xff] }
 0x3b4   : > { %vm8089_vm9 = vcmp.le.f32.partialorder %v9309_v29, 0.7853982  ;;  %v5410_v36 = vpop.eup %5409  ;;  %v961_v45 = vsel %vm8049_vm10, 0, %v959_v60  ;;  %v1270_v23 = vsub.s32 4, %v9313_v51  ;;  %v3344_v31 = vand.u32 2147483647, %v3343_v20 }
 0x3b5   : > { %v1272_v41 = vsel %vm8089_vm9, %v9308_v57, %v9312_v34  ;;  %4828 = vmatmul.mubr.msk.f32.gmra.mrb[36].mxu0 %vm463_vm0, %v5564_v54  ;;  %vm4483_vm3 = vcmp.lt.s32.totalorder %v4482_v14, 0  ;;  %v766_v0 = vsel %vm759_vm8, %v762_v10, %v765_v7  ;;  %vm1072_vm1 = vcmp.eq.s32.totalorder %v8079_v6, 0  ;;  %v5566_v54 = vld [vmem:[%s6067_s27 + $0x38] sm:$0xff] }
 0x3b6   : > { %4830 = vmatprep.mubr.msk.f32.mxu0 %vm5833_vm4, %v9293_v32  ;;  %v839_v53 = vsel %vm4483_vm3, 0, %v4482_v14  ;;  %vm1075_vm14 = vcmp.eq.s32.totalorder %v8079_v6, 2  ;;  %v1076_v59 = vxor.u32 2147483648, %v5408_v52  ;;  %5415 = vcosq.f32 %v1272_v41  ;;  %v9318_v14 = vld [vmem:[#allocation30_spill] sm:$0xff] }
 0x3b7   : > { %v840_v61 = vsub.s32 32, %v839_v53  ;;  %v844_v16 = vsub.s32 4294967266, %v839_v53  ;;  %v8108_v48 = vand.u32 3, %v861_v22  ;;  %vm1071_vm10 = vcmp.lt.s32.totalorder %v8079_v6, 2 }
 0x3b8   : > { %v1073_v49 = vxor.u32 2147483648, %v5410_v36  ;;  %v8113_v1 = vsel %vm756_vm2, nan, %v766_v0  ;;  %v965_v2 = vadd.s32 3, %v961_v45  ;;  %v1271_v15 = vsel %vm1186_vm7, %v1270_v23, %v9313_v51 }
 0x3b9   : > { %5417 = vsinq.f32 %v1272_v41  ;;  %4831 = vmatmul.mubr.msk.f32.gmra.mrb[38].mxu0 %vm463_vm0, %v5565_v12  ;;  %v5412_v27 = vpop.eup %5411  ;;  %v841_v9 = vshll.u32 %v8045_v43, %v839_v53  ;;  %v842_v24 = vshrl.u32 %v824_v4, %v840_v61  ;;  %v845_v20 = vadd.s32 127, %v844_v16  ;;  %v9319_v4 = vld [vmem:[#allocation48_spill] sm:$0xff]  ;;  %v9320_v53 = vld [vmem:[#allocation34_spill] sm:$0xff] }
 0x3ba   : > { %v9315_v60 = vand.u32 2147483647, %v9314_v42  ;;  %4833 = vmatprep.mubr.msk.f32.mxu0 %vm5833_vm4, %v9293_v32  ;;  %v5414_v10 = vpop.eup %5413  ;;  %v8129_v7 = vmul.f32 %v3346_v17, %v3344_v31  ;;  %v1077_v29 = vsel %vm1075_vm14, %v1076_v59, %v5410_v36  ;;  %v1166_v43 = vsub.s32 4, %v9318_v14  ;;  %v9324_v16 = vld [vmem:[#allocation42_spill] sm:$0xff] }
 0x3bb   : > { %v843_v34 = vor.u32 %v842_v24, %v841_v9  ;;  %v846_v41 = vshll.u32 %v845_v20, 23  ;;  %v1074_v45 = vsel %vm1072_vm1, %v5408_v52, %v1073_v49  ;;  %v1273_v51 = vsel %vm8089_vm9, 0, %v1271_v15  ;;  %v9326_v24 = vld [vmem:[#allocation41_spill] sm:$0xff] }
 0x3bc   : > { %vm8123_vm8 = vcmp.le.f32.partialorder %v9315_v60, 0.7853982  ;;  %vm1068_vm7 = vweird.f32 %v9295_v30  ;;  %v966_v17 = vand.u32 3, %v965_v2  ;;  %v972_v23 = vxor.u32 2147483648, %v5412_v27  ;;  %v9325_v2 = vld [vmem:[#allocation55_spill] sm:$0xff] }
 0x3bd   : > { %v1168_v22 = vsel %vm8123_vm8, %v9314_v42, %v9319_v4  ;;  %v1167_v36 = vsel %vm1082_vm6, %v1166_v43, %v9318_v14  ;;  %4834 = vmatmul.mubr.msk.f32.gmra.mrb[40].mxu0 %vm463_vm0, %v5566_v54  ;;  %v847_v31 = vor.u32 4788187, %v846_v41  ;;  %v969_v0 = vxor.u32 2147483648, %v5414_v10  ;;  %v9327_v4 = vld [vmem:[#allocation29_spill] sm:$0xff] }
 0x3be   : > { %5419 = vcosq.f32 %v1168_v22  ;;  %v9321_v52 = vand.u32 2147483647, %v9320_v53  ;;  %4836 = vmatprep.mubr.msk.f32.mxu0 %vm5833_vm4, %v9293_v32  ;;  %v850_v59 = vcvt.s32.f32 %v843_v34  ;;  %v1277_v61 = vadd.s32 3, %v1273_v51 }
 0x3bf   : > { %5421 = vsinq.f32 %v1168_v22  ;;  %v1478_v49 = vsub.s32 4, %v9324_v16  ;;  %v848_v12 = vand.u32 2147483647, %v847_v31  ;;  %v1169_v9 = vsel %vm8123_vm8, 0, %v1167_v36 }
 0x3c0   : > { %vm8150_vm2 = vcmp.le.f32.partialorder %v9321_v52, 0.7853982  ;;  %v1374_v20 = vsub.s32 4, %v9326_v24  ;;  %v5416_v60 = vpop.eup %5415  ;;  %v1078_v14 = vsel %vm1071_vm10, %v1074_v45, %v1077_v29  ;;  %vm964_vm6 = vweird.f32 %v9300_v63  ;;  %v9331_v45 = vld [vmem:[#allocation53_spill] sm:$0xff] }
 0x3c1   : > { %v1480_v15 = vsel %vm8150_vm2, %v9320_v53, %v9325_v2  ;;  %v1479_v43 = vsel %vm1394_vm5, %v1478_v49, %v9324_v16  ;;  %v9328_v22 = vand.u32 2147483647, %v9327_v4  ;;  %4837 = vmatmul.mubr.msk.f32.gmra.mrb[42].mxu0 %vm463_vm0, %v5567_v11  ;;  %v851_v41 = vmul.f32 %v850_v59, %v848_v12  ;;  %v5568_v12 = vld [vmem:[%s6067_s27 + $0x48] sm:$0xff] }
 0x3c2   : > { %5423 = vcosq.f32 %v1480_v15  ;;  %v1481_v6 = vsel %vm8150_vm2, 0, %v1479_v43  ;;  %v1375_v29 = vsel %vm1290_vm11, %v1374_v20, %v9326_v24  ;;  %4839 = vmatprep.mubr.msk.f32.mxu0 %vm5833_vm4, %v9293_v32  ;;  %vm968_vm5 = vcmp.eq.s32.totalorder %v966_v17, 0  ;;  %v9332_v43 = vld [vmem:[#allocation40_spill] sm:$0xff] }
 0x3c3   : > { %5425 = vsinq.f32 %v1480_v15  ;;  %vm8172_vm9 = vcmp.le.f32.partialorder %v9328_v22, 0.7853982  ;;  %v5418_v36 = vpop.eup %5417  ;;  %vm971_vm14 = vcmp.eq.s32.totalorder %v966_v17, 2  ;;  %v1278_v54 = vand.u32 3, %v1277_v61 }
 0x3c4   : > { %v1376_v51 = vsel %vm8172_vm9, %v9327_v4, %v9331_v45  ;;  %v1173_v31 = vadd.s32 3, %v1169_v9  ;;  %v852_v52 = vxor.u32 2147483648, %v851_v41  ;;  %v970_v40 = vsel %vm968_vm5, %v5412_v27, %v969_v0 }
 0x3c5   : > { %v973_v59 = vsel %vm971_vm14, %v972_v23, %v5414_v10  ;;  %v1284_v16 = vxor.u32 2147483648, %v5416_v60  ;;  %v1281_v49 = vxor.u32 2147483648, %v5418_v36  ;;  %v1485_v2 = vadd.s32 3, %v1481_v6  ;;  %4840 = vmatmul.mubr.msk.f32.gmra.mrb[44].mxu0 %vm463_vm0, %v5568_v12  ;;  %v9336_v6 = vld [vmem:[#allocation50_spill] sm:$0xff] }
 0x3c6   : > { %v1377_v15 = vsel %vm8172_vm9, 0, %v1375_v29  ;;  %5427 = vcosq.f32 %v1376_v51  ;;  %v853_v24 = vsel %vm770_vm15, %v852_v52, %v851_v41  ;;  %v8197_v61 = vsel %vm1068_vm7, nan, %v1078_v14  ;;  %4842 = vmatprep.mubr.msk.f32.mxu0 %vm5833_vm4, %v9293_v32 }
 0x3c7   : > { %vm967_vm11 = vcmp.lt.s32.totalorder %v966_v17, 2  ;;  %5429 = vsinq.f32 %v1376_v51  ;;  %v856_v10 = vsel %vm8069_vm12, %v9279_v33, %v853_v24  ;;  %vm1283_vm3 = vcmp.eq.s32.totalorder %v1278_v54, 2  ;;  %v9343_v24 = vld [vmem:[#allocation46_spill] sm:$0xff] }
 0x3c8   : > { %v5420_v27 = vpop.eup %5419  ;;  %v974_v23 = vsel %vm967_vm11, %v970_v40, %v973_v59  ;;  %v8204_v0 = vand.u32 3, %v1173_v31  ;;  %5431 = vcosq.f32 %v856_v10  ;;  %vm1280_vm15 = vcmp.eq.s32.totalorder %v1278_v54, 0  ;;  %v9339_v59 = vld [vmem:[#allocation36_spill] sm:$0xff] }
 0x3c9   : > { %v5422_v9 = vpop.eup %5421  ;;  %v1285_v30 = vsel %vm1283_vm3, %v1284_v16, %v5418_v36  ;;  %v1381_v20 = vadd.s32 3, %v1377_v15  ;;  %5433 = vsinq.f32 %v856_v10  ;;  %v1282_v17 = vsel %vm1280_vm15, %v5416_v60, %v1281_v49  ;;  %4843 = vmatmul.mubr.msk.f32.gmra.mrb[46].mxu0 %vm463_vm0, %v5569_v13  ;;  %v9337_v60 = vld [vmem:[#allocation58_spill] sm:$0xff] }
 0x3ca   : > { %v8206_v14 = vand.u32 3, %v1485_v2  ;;  %v9333_v22 = vand.u32 2147483647, %v9332_v43  ;;  %v8218_v41 = vsel %vm964_vm6, nan, %v974_v23  ;;  %vm1279_vm12 = vcmp.lt.s32.totalorder %v1278_v54, 2  ;;  %4845 = vmatprep.mubr.msk.f32.mxu0 %vm5833_vm4, %v9293_v32  ;;  %v5570_v2 = vld [vmem:[%s6067_s27 + $0x58] sm:$0xff] }
 0x3cb   : > { %v1686_v29 = vsub.s32 4, %v9336_v6  ;;  %vm1175_vm10 = vcmp.lt.s32.totalorder %v8204_v0, 2  ;;  %vm1176_vm8 = vcmp.eq.s32.totalorder %v8204_v0, 0  ;;  %v1177_v63 = vxor.u32 2147483648, %v5422_v9 }
 0x3cc   : > { %vm8210_vm1 = vcmp.le.f32.partialorder %v9333_v22, 0.7853982  ;;  %v5424_v11 = vpop.eup %5423  ;;  %v1180_v36 = vxor.u32 2147483648, %v5420_v27  ;;  %vm867_vm7 = vcmp.eq.s32.totalorder %v8108_v48, 2  ;;  %v1286_v54 = vsel %vm1279_vm12, %v1282_v17, %v1285_v30  ;;  %v9344_v22 = vld [vmem:[#allocation56_spill] sm:$0xff] }
 0x3cd   : > { %v1688_v45 = vsel %vm8210_vm1, %v9332_v43, %v9337_v60  ;;  %v5426_v51 = vpop.eup %5425  ;;  %vm1179_vm2 = vcmp.eq.s32.totalorder %v8204_v0, 2  ;;  %v8231_v31 = vand.u32 3, %v1381_v20  ;;  %vm9338_vm6 = vcmp.lt.s32.totalorder %v9332_v43, 0  ;;  %4846 = vmatmul.mubr.msk.f32.gmra.mrb[48].mxu0 %vm463_vm0, %v5570_v2  ;;  %v9346_v60 = vld [vmem:[#allocation31_spill] sm:$0xff] }
 0x3ce   : > { %v1687_v52 = vsel %vm9338_vm6, %v1686_v29, %v9336_v6  ;;  %vm864_vm9 = vcmp.eq.s32.totalorder %v8108_v48, 0  ;;  %vm1276_vm5 = vweird.f32 %v9308_v57  ;;  %vm1487_vm14 = vcmp.lt.s32.totalorder %v8206_v14, 2  ;;  %4848 = vmatprep.mubr.msk.f32.mxu0 %vm5833_vm4, %v9293_v32 }
 0x3cf   : > { %vm1488_vm11 = vcmp.eq.s32.totalorder %v8206_v14, 0  ;;  %v1689_v40 = vsel %vm8210_vm1, 0, %v1687_v52  ;;  %5435 = vcosq.f32 %v1688_v45  ;;  %v9340_v16 = vand.u32 2147483647, %v9339_v59 }
 0x3d0   : > { %vm863_vm15 = vcmp.lt.s32.totalorder %v8108_v48, 2  ;;  %v1489_v15 = vxor.u32 2147483648, %v5426_v51  ;;  %v1492_v12 = vxor.u32 2147483648, %v5424_v11  ;;  %5437 = vsinq.f32 %v1688_v45  ;;  %v5428_v23 = vpop.eup %5427  ;;  %v9354_v48 = vld [vmem:[#allocation52_spill] sm:$0xff] }
 0x3d1   : > { %vm8244_vm3 = vcmp.le.f32.partialorder %v9340_v16, 0.7853982  ;;  %v1582_v10 = vsub.s32 4, %v9343_v24  ;;  %vm860_vm1 = vweird.f32 %v9279_v33  ;;  %v1178_v30 = vsel %vm1176_vm8, %v5420_v27, %v1177_v63  ;;  %v5430_v13 = vpop.eup %5429  ;;  %v5571_v63 = vld [vmem:[%s6067_s27 + $0x60] sm:$0xff]  ;;  %s4141_s27 = ssub.s32 (%p9435_p5), 25, %s6060_s22 }
 0x3d2   : > { %v1181_v20 = vsel %vm1179_vm2, %v1180_v36, %v5422_v9  ;;  %v1693_v17 = vadd.s32 3, %v1689_v40  ;;  %v1584_v34 = vsel %vm8244_vm3, %v9339_v59, %v9344_v22  ;;  %vm1484_vm6 = vweird.f32 %v9320_v53  ;;  %4849 = vmatmul.mubr.msk.f32.gmra.mrb[50].mxu0 %vm463_vm0, %v5571_v63  ;;  %v5432_v36 = vpop.eup %5431  ;;  %p4142_p8 = scmp.lt.s32.totalorder (%p9435_p5), %s4141_s27, 13 }
 0x3d3   : > { %vm1491_vm13 = vcmp.eq.s32.totalorder %v8206_v14, 2  ;;  %vm1384_vm12 = vcmp.eq.s32.totalorder %v8231_v31, 0  ;;  %v1388_v6 = vxor.u32 2147483648, %v5428_v23  ;;  %vm9345_vm8 = vcmp.lt.s32.totalorder %v9339_v59, 0  ;;  %4954 = vmatprep.mubr.msk.f32.mxu0 %vm5833_vm4, %v9293_v32  ;;  %v5434_v49 = vpop.eup %5433 }
 0x3d4   : > { %v1583_v27 = vsel %vm9345_vm8, %v1582_v10, %v9343_v24  ;;  %v1385_v29 = vxor.u32 2147483648, %v5430_v13  ;;  %5439 = vcosq.f32 %v1584_v34  ;;  %v1894_v45 = vsub.s32 4, %v9346_v60  ;;  %v9347_v10 = vld [vmem:[#allocation47_spill] sm:$0xff] }
 0x3d5   : > { %v1585_v9 = vsel %vm8244_vm3, 0, %v1583_v27  ;;  %v1182_v52 = vsel %vm1175_vm10, %v1178_v30, %v1181_v20  ;;  %v1490_v40 = vsel %vm1488_vm11, %v5424_v11, %v1489_v15  ;;  %v1493_v16 = vsel %vm1491_vm13, %v1492_v12, %v5426_v51  ;;  %v9352_v12 = vld [vmem:[#allocation64_spill] sm:$0xff] }
 0x3d6   : > { %vm1380_vm2 = vweird.f32 %v9327_v4  ;;  %vm1387_vm8 = vcmp.eq.s32.totalorder %v8231_v31, 2  ;;  %v868_v2 = vxor.u32 2147483648, %v5432_v36  ;;  %v8283_v24 = vand.u32 3, %v1693_v17 }
 0x3d7   : > { %5441 = vsinq.f32 %v1584_v34  ;;  %v9348_v22 = vand.u32 2147483647, %v9347_v10  ;;  %v865_v11 = vxor.u32 2147483648, %v5434_v49  ;;  %v1589_v51 = vadd.s32 3, %v1585_v9 }
 0x3d8   : > { %vm9351_vm13 = vcmp.lt.s32.totalorder %v9347_v10, 0  ;;  %v869_v20 = vsel %vm867_vm7, %v868_v2, %v5434_v49  ;;  %v1386_v17 = vsel %vm1384_vm12, %v5428_v23, %v1385_v29  ;;  %v1389_v34 = vsel %vm1387_vm8, %v1388_v6, %v5430_v13 }
 0x3d9   : > { %vm8287_vm0 = vcmp.le.f32.partialorder %v9348_v22, 0.7853982  ;;  %v1895_v15 = vsel %vm9351_vm13, %v1894_v45, %v9346_v60  ;;  %v866_v9 = vsel %vm864_vm9, %v5432_v36, %v865_v11  ;;  %v1287_v60 = vsel %vm1276_vm5, nan, %v1286_v54  ;;  %v5436_v63 = vpop.eup %5435  ;;  %v9355_v36 = vld [vmem:[#allocation45_spill] sm:$0xff]  ;;  %v9360_v22 = vld [vmem:[#allocation63_spill] sm:$0xff] }
 0x3da   : > { %v1896_v30 = vsel %vm8287_vm0, %v9347_v10, %v9352_v12  ;;  %v1897_v27 = vsel %vm8287_vm0, 0, %v1895_v15  ;;  %v1494_v45 = vsel %vm1487_vm14, %v1490_v40, %v1493_v16  ;;  %v870_v49 = vsel %vm863_vm15, %v866_v9, %v869_v20  ;;  %v5438_v6 = vpop.eup %5437  ;;  %v9371_v11 = vld [vmem:[#allocation61_spill] sm:$0xff] }
 0x3db   : > { %5443 = vcosq.f32 %v1896_v30  ;;  %vm9353_vm10 = vweird.f32 %v9314_v42  ;;  %vm1383_vm7 = vcmp.lt.s32.totalorder %v8231_v31, 2  ;;  %v1901_v13 = vadd.s32 3, %v1897_v27 }
 0x3dc   : > { %v1183_v23 = vsel %vm9353_vm10, nan, %v1182_v52  ;;  %v871_v29 = vsel %vm860_vm1, nan, %v870_v49  ;;  %v1390_v57 = vsel %vm1383_vm7, %v1386_v17, %v1389_v34  ;;  %v8317_v54 = vand.u32 3, %v1589_v51 }
 0x3dd   : > { %5445 = vsinq.f32 %v1896_v30  ;;  %3480 = vmatprep.mubr.f32.mxu1 %v871_v29  ;;  %v1495_v14 = vsel %vm1484_vm6, nan, %v1494_v45  ;;  %vm1695_vm9 = vcmp.lt.s32.totalorder %v8283_v24, 2  ;;  %vm1696_vm5 = vcmp.eq.s32.totalorder %v8283_v24, 0  ;;  %v9364_v30 = vld [vmem:[#allocation57_spill] sm:$0xff] }
 0x3de   : > { %v1790_v42 = vsub.s32 4, %v9354_v48  ;;  %3481 = vmatmul.mubr.f32.vlgmr.msra.gmra.mrb[0].mxu1 %v8113_v1  ;;  %v1697_v31 = vxor.u32 2147483648, %v5438_v6  ;;  %vm1699_vm14 = vcmp.eq.s32.totalorder %v8283_v24, 2  ;;  %v1700_v33 = vxor.u32 2147483648, %v5436_v63  ;;  %v5440_v53 = vpop.eup %5439 }
 0x3df   : > { %v9356_v52 = vand.u32 2147483647, %v9355_v36  ;;  %3485 = vmatprep.mubr.f32.mxu1 %v8197_v61  ;;  %v1391_v16 = vsel %vm1380_vm2, nan, %v1390_v57  ;;  %vm1692_vm3 = vweird.f32 %v9332_v43  ;;  %v1902_v2 = vand.u32 3, %v1901_v13 }
 0x3e0   : > { %vm9359_vm15 = vcmp.lt.s32.totalorder %v9355_v36, 0  ;;  %vm1592_vm12 = vcmp.eq.s32.totalorder %v8317_v54, 0  ;;  %v9361_v4 = vand.u32 2147483647, %v6848_v50  ;;  %vm1591_vm6 = vcmp.lt.s32.totalorder %v8317_v54, 2 }
 0x3e1   : > { %vm8328_vm11 = vcmp.le.f32.partialorder %v9356_v52, 0.7853982  ;;  %v1791_v1 = vsel %vm9359_vm15, %v1790_v42, %v9354_v48  ;;  %v5442_v51 = vpop.eup %5441  ;;  %v1596_v15 = vxor.u32 2147483648, %v5440_v53  ;;  %v2102_v20 = vsub.s32 4, %v9364_v30 }
 0x3e2   : > { %v1792_v0 = vsel %vm8328_vm11, %v9355_v36, %v9360_v22  ;;  %v1793_v61 = vsel %vm8328_vm11, 0, %v1791_v1  ;;  %vm8348_vm1 = vcmp.le.f32.partialorder %v9361_v4, 0.7853982  ;;  %3486 = vmatmul.mubr.f32.gmra.mrb[2].mxu1 %v8218_v41  ;;  %v1698_v17 = vsel %vm1696_vm5, %v5436_v63, %v1697_v31  ;;  %v9367_v31 = vld [vmem:[#allocation51_spill] sm:$0xff] }
 0x3e3   : > { %5447 = vcosq.f32 %v1792_v0  ;;  %v1797_v12 = vadd.s32 3, %v1793_v61  ;;  %v1701_v34 = vsel %vm1699_vm14, %v1700_v33, %v5438_v6  ;;  %v1593_v27 = vxor.u32 2147483648, %v5442_v51  ;;  %3490 = vmatprep.mubr.f32.mxu1 %v1287_v60  ;;  %v9370_v1 = vld [vmem:[#allocation67_spill] sm:$0xff] }
 0x3e4   : > { %5449 = vsinq.f32 %v1792_v0  ;;  %v2104_v9 = vsel %vm8348_vm1, %v6848_v50, %v7536_v18  ;;  %vm1595_vm2 = vcmp.eq.s32.totalorder %v8317_v54, 2  ;;  %vm1900_vm8 = vweird.f32 %v9347_v10  ;;  %v9366_v18 = vld [vmem:[#allocation54_spill] sm:$0xff] }
 0x3e5   : > { %vm1903_vm0 = vcmp.lt.s32.totalorder %v1902_v2, 2  ;;  %vm9365_vm13 = vcmp.lt.s32.totalorder %v6848_v50, 0  ;;  %5451 = vcosq.f32 %v2104_v9  ;;  %v5444_v45 = vpop.eup %5443  ;;  %vm1588_vm10 = vweird.f32 %v9339_v59 }
 0x3e6   : > { %v2103_v41 = vsel %vm9365_vm13, %v2102_v20, %v9364_v30  ;;  %vm1907_vm7 = vcmp.eq.s32.totalorder %v1902_v2, 2  ;;  %5453 = vsinq.f32 %v2104_v9  ;;  %v1998_v60 = vsub.s32 4, %v9366_v18  ;;  %3491 = vmatmul.mubr.f32.gmra.mrb[4].mxu1 %v1183_v23 }
 0x3e7   : > { %v2105_v63 = vsel %vm8348_vm1, 0, %v2103_v41  ;;  %v1702_v49 = vsel %vm1695_vm9, %v1698_v17, %v1701_v34  ;;  %v1597_v13 = vsel %vm1595_vm2, %v1596_v15, %v5442_v51  ;;  %v1908_v6 = vxor.u32 2147483648, %v5444_v45  ;;  %v5446_v57 = vpop.eup %5445  ;;  %3495 = vmatprep.mubr.f32.mxu1 %v1495_v14 }
 0x3e8   : > { %v1798_v29 = vand.u32 3, %v1797_v12  ;;  %v1594_v48 = vsel %vm1592_vm12, %v5440_v53, %v1593_v27  ;;  %v2109_v42 = vadd.s32 3, %v2105_v63  ;;  %v9368_v33 = vand.u32 2147483647, %v9367_v31 }
 0x3e9   : > { %vm9369_vm14 = vcmp.lt.s32.totalorder %v9367_v31, 0  ;;  %v1905_v40 = vxor.u32 2147483648, %v5446_v57  ;;  %v1909_v24 = vsel %vm1907_vm7, %v1908_v6, %v5446_v57  ;;  %v1703_v23 = vsel %vm1692_vm3, nan, %v1702_v49  ;;  %v9379_v57 = vld [vmem:[#allocation60_spill] sm:$0xff] }
 0x3ea   : > { %vm1913_vm5 = vcmp.le.f32.partialorder %v9368_v33, 0.7853982  ;;  %v1999_v52 = vsel %vm9369_vm14, %v1998_v60, %v9366_v18  ;;  %vm1904_vm9 = vcmp.eq.s32.totalorder %v1902_v2, 0  ;;  %vm1796_vm11 = vweird.f32 %v9355_v36  ;;  %3496 = vmatmul.mubr.f32.gmra.mrb[6].mxu1 %v1391_v16 }
 0x3eb   : > { %v2000_v22 = vsel %vm1913_vm5, %v9367_v31, %v9370_v1  ;;  %v2001_v0 = vsel %vm1913_vm5, 0, %v1999_v52  ;;  %v1906_v61 = vsel %vm1904_vm9, %v5444_v45, %v1905_v40  ;;  %v2110_v4 = vand.u32 3, %v2109_v42  ;;  %3500 = vmatprep.mubr.f32.mxu1 %v1703_v23 }
 0x3ec   : > { %5455 = vcosq.f32 %v2000_v22  ;;  %v2005_v53 = vadd.s32 3, %v2001_v0  ;;  %v2310_v14 = vsub.s32 4, %v9371_v11  ;;  %v1598_v15 = vsel %vm1591_vm6, %v1594_v48, %v1597_v13 }
 0x3ed   : > { %5457 = vsinq.f32 %v2000_v22  ;;  %v5448_v51 = vpop.eup %5447  ;;  %v1910_v12 = vsel %vm1903_vm0, %v1906_v61, %v1909_v24  ;;  %vm1799_vm15 = vcmp.lt.s32.totalorder %v1798_v29, 2  ;;  %vm1800_vm12 = vcmp.eq.s32.totalorder %v1798_v29, 0 }
 0x3ee   : > { %vm2108_vm3 = vweird.f32 %v6848_v50  ;;  %v5450_v43 = vpop.eup %5449  ;;  %vm1803_vm1 = vcmp.eq.s32.totalorder %v1798_v29, 2  ;;  %v1804_v30 = vxor.u32 2147483648, %v5448_v51  ;;  %v9372_v20 = vand.u32 2147483647, %v6979_v37 }
 0x3ef   : > { %vm9375_vm13 = vcmp.lt.s32.totalorder %v6979_v37, 0  ;;  %v1911_v16 = vsel %vm1900_vm8, nan, %v1910_v12  ;;  %v1801_v2 = vxor.u32 2147483648, %v5450_v43  ;;  %v2006_v34 = vand.u32 3, %v2005_v53  ;;  %v5452_v9 = vpop.eup %5451  ;;  %v9385_v12 = vld [vmem:[#allocation75_spill] sm:$0xff] }
 0x3f0   : > { %vm8394_vm2 = vcmp.le.f32.partialorder %v9372_v20, 0.7853982  ;;  %v2311_v54 = vsel %vm9375_vm13, %v2310_v14, %v9371_v11  ;;  %v1599_v41 = vsel %vm1588_vm10, nan, %v1598_v15  ;;  %v1805_v45 = vsel %vm1803_vm1, %v1804_v30, %v5450_v43  ;;  %v5454_v63 = vpop.eup %5453  ;;  %v9387_v20 = vld [vmem:[#allocation59_spill] sm:$0xff] }
 0x3f1   : > { %v2312_v27 = vsel %vm8394_vm2, %v6979_v37, %v7553_v56  ;;  %vm2111_vm6 = vcmp.lt.s32.totalorder %v2110_v4, 2  ;;  %vm2112_vm0 = vcmp.eq.s32.totalorder %v2110_v4, 0  ;;  %3501 = vmatmul.mubr.f32.gmra.mrb[8].mxu1 %v1599_v41  ;;  %v1802_v18 = vsel %vm1800_vm12, %v5448_v51, %v1801_v2 }
 0x3f2   : > { %v2116_v10 = vxor.u32 2147483648, %v5452_v9  ;;  %v2313_v60 = vsel %vm8394_vm2, 0, %v2311_v54  ;;  %5459 = vcosq.f32 %v2312_v27  ;;  %3505 = vmatprep.mubr.f32.mxu1 %v1911_v16  ;;  %v1806_v49 = vsel %vm1799_vm15, %v1802_v18, %v1805_v45 }
 0x3f3   : > { %v2113_v56 = vxor.u32 2147483648, %v5454_v63  ;;  %vm2115_vm8 = vcmp.eq.s32.totalorder %v2110_v4, 2  ;;  %vm2004_vm7 = vweird.f32 %v9367_v31  ;;  %5461 = vsinq.f32 %v2312_v27  ;;  %v9384_v4 = vld [vmem:[#allocation69_spill] sm:$0xff] }
 0x3f4   : > { %vm3162_vm10 = vcmp.lt.s32.totalorder %v7568_v46, 0  ;;  %v2117_v59 = vsel %vm2115_vm8, %v2116_v10, %v5454_v63  ;;  %vm2007_vm5 = vcmp.lt.s32.totalorder %v2006_v34, 2  ;;  %v9376_v13 = vand.u32 2147483647, %v9259_v39  ;;  %v9391_v63 = vld [vmem:[#allocation65_spill] sm:$0xff]  ;;  %v9392_v10 = vld [vmem:[#allocation35_spill] sm:$0xff] }
 0x3f5   : > { %v2206_v48 = vsub.s32 4, %v9379_v57  ;;  %v1807_v29 = vsel %vm1796_vm11, nan, %v1806_v49  ;;  %v2114_v42 = vsel %vm2112_vm0, %v5452_v9, %v2113_v56  ;;  %v2317_v33 = vadd.s32 3, %v2313_v60 }
 0x3f6   : > { %vm8417_vm14 = vcmp.le.f32.partialorder %v9376_v13, 0.7853982  ;;  %v5456_v40 = vpop.eup %5455  ;;  %3506 = vmatmul.mubr.f32.gmra.mrb[10].mxu1 %v1807_v29  ;;  %v2118_v24 = vsel %vm2111_vm6, %v2114_v42, %v2117_v59  ;;  %vm2008_vm9 = vcmp.eq.s32.totalorder %v2006_v34, 0  ;;  %vm2011_vm15 = vcmp.eq.s32.totalorder %v2006_v34, 2 }
 0x3f7   : > { %v2208_v52 = vsel %vm8417_vm14, %v9259_v39, %v7546_v25  ;;  %v9380_v1 = vand.u32 2147483647, %v7116_v35  ;;  %v5458_v36 = vpop.eup %5457  ;;  %v2119_v0 = vsel %vm2108_vm3, nan, %v2118_v24  ;;  %v2012_v23 = vxor.u32 2147483648, %v5456_v40  ;;  %v9398_v24 = vld [vmem:[#allocation72_spill] sm:$0xff] }
 0x3f8   : > { %vm9383_vm11 = vcmp.lt.s32.totalorder %v9259_v39, 0  ;;  %5463 = vcosq.f32 %v2208_v52  ;;  %3510 = vmatprep.mubr.f32.mxu1 %v2119_v0  ;;  %v2009_v53 = vxor.u32 2147483648, %v5458_v36  ;;  %v2518_v11 = vsub.s32 4, %v9384_v4 }
 0x3f9   : > { %vm8432_vm12 = vcmp.le.f32.partialorder %v9380_v1, 0.7853982  ;;  %v2207_v25 = vsel %vm9383_vm11, %v2206_v48, %v9379_v57  ;;  %5465 = vsinq.f32 %v2208_v52  ;;  %v2013_v14 = vsel %vm2011_vm15, %v2012_v23, %v5458_v36  ;;  %v9399_v23 = vld [vmem:[#allocation78_spill] sm:$0xff] }
 0x3fa   : > { %v2209_v61 = vsel %vm8417_vm14, 0, %v2207_v25  ;;  %v2318_v51 = vand.u32 3, %v2317_v33  ;;  %v2520_v50 = vsel %vm8432_vm12, %v7116_v35, %v9385_v12  ;;  %v2010_v43 = vsel %vm2008_vm9, %v5456_v40, %v2009_v53  ;;  %v9394_v33 = vld [vmem:[#allocation68_spill] sm:$0xff] }
 0x3fb   : > { %v2213_v15 = vadd.s32 3, %v2209_v61  ;;  %vm9386_vm3 = vcmp.lt.s32.totalorder %v7116_v35, 0  ;;  %5467 = vcosq.f32 %v2520_v50  ;;  %v9388_v17 = vand.u32 2147483647, %v9387_v20 }
 0x3fc   : > { %v2519_v30 = vsel %vm9386_vm3, %v2518_v11, %v9384_v4  ;;  %v2014_v16 = vsel %vm2007_vm5, %v2010_v43, %v2013_v14  ;;  %5469 = vsinq.f32 %v2520_v50  ;;  %v5460_v9 = vpop.eup %5459  ;;  %v2414_v18 = vsub.s32 4, %v9391_v63 }
 0x3fd   : > { %vm8454_vm1 = vcmp.le.f32.partialorder %v9388_v17, 0.7853982  ;;  %v2214_v2 = vand.u32 3, %v2213_v15  ;;  %v2521_v27 = vsel %vm8432_vm12, 0, %v2519_v30  ;;  %v2015_v41 = vsel %vm2004_vm7, nan, %v2014_v16  ;;  %v5462_v49 = vpop.eup %5461  ;;  %v9401_v17 = vld [vmem:[#allocation62_spill] sm:$0xff] }
 0x3fe   : > { %v2525_v45 = vadd.s32 3, %v2521_v27  ;;  %v2416_v60 = vsel %vm8454_vm1, %v9387_v20, %v9392_v10  ;;  %v8473_v34 = vsel %vm3162_vm10, %v3244_v38, %v8043_v26  ;;  %v3348_v56 = vxor.u32 2147483648, %v8129_v7  ;;  %3511 = vmatmul.mubr.f32.gmra.mrb[12].mxu1 %v2015_v41  ;;  %v9405_v41 = vld [vmem:[#allocation71_spill] sm:$0xff] }
 0x3ff   : > { %vm2316_vm2 = vweird.f32 %v6979_v37  ;;  %v2324_v31 = vxor.u32 2147483648, %v5460_v9  ;;  %v2321_v59 = vxor.u32 2147483648, %v5462_v49  ;;  %vm2323_vm13 = vcmp.eq.s32.totalorder %v2318_v51, 2 }
 0x400   : > { %vm2212_vm6 = vweird.f32 %v9259_v39  ;;  %vm9393_vm0 = vcmp.lt.s32.totalorder %v9387_v20, 0  ;;  %5471 = vcosq.f32 %v2416_v60  ;;  %vm2320_vm8 = vcmp.eq.s32.totalorder %v2318_v51, 0 }
 0x401   : > { %v2415_v13 = vsel %vm9393_vm0, %v2414_v18, %v9391_v63  ;;  %v2325_v6 = vsel %vm2323_vm13, %v2324_v31, %v5462_v49  ;;  %5473 = vsinq.f32 %v2416_v60  ;;  %vm2319_vm7 = vcmp.lt.s32.totalorder %v2318_v51, 2  ;;  %v9406_v63 = vld [vmem:[#allocation76_spill] sm:$0xff] }
 0x402   : > { %v2417_v26 = vsel %vm8454_vm1, 0, %v2415_v13  ;;  %v2322_v38 = vsel %vm2320_vm8, %v5460_v9, %v2321_v59  ;;  %vm2215_vm5 = vcmp.lt.s32.totalorder %v2214_v2, 2  ;;  %v2526_v57 = vand.u32 3, %v2525_v45  ;;  %v5464_v48 = vpop.eup %5463 }
 0x403   : > { %v2326_v29 = vsel %vm2319_vm7, %v2322_v38, %v2325_v6  ;;  %vm2524_vm14 = vweird.f32 %v7116_v35  ;;  %v2421_v42 = vadd.s32 3, %v2417_v26  ;;  %v9395_v52 = vand.u32 2147483647, %v9394_v33  ;;  %v5466_v22 = vpop.eup %5465 }
 0x404   : > { %v2726_v1 = vsub.s32 4, %v9398_v24  ;;  %v2327_v36 = vsel %vm2316_vm2, nan, %v2326_v29  ;;  %vm2216_vm15 = vcmp.eq.s32.totalorder %v2214_v2, 0  ;;  %v2220_v0 = vxor.u32 2147483648, %v5464_v48 }
 0x405   : > { %vm8486_vm9 = vcmp.le.f32.partialorder %v9395_v52, 0.7853982  ;;  %3515 = vmatprep.mubr.f32.mxu1 %v2327_v36  ;;  %v2217_v53 = vxor.u32 2147483648, %v5466_v22  ;;  %vm2219_vm12 = vcmp.eq.s32.totalorder %v2214_v2, 2  ;;  %vm9400_vm11 = vcmp.lt.s32.totalorder %v9394_v33, 0  ;;  %v5468_v4 = vpop.eup %5467  ;;  %v9411_v52 = vld [vmem:[#allocation74_spill] sm:$0xff] }
 0x406   : > { %v2728_v25 = vsel %vm8486_vm9, %v9394_v33, %v9399_v23  ;;  %v2727_v61 = vsel %vm9400_vm11, %v2726_v1, %v9398_v24  ;;  %v2221_v11 = vsel %vm2219_vm12, %v2220_v0, %v5466_v22  ;;  %vm2528_vm3 = vcmp.eq.s32.totalorder %v2526_v57, 0  ;;  %v5470_v14 = vpop.eup %5469 }
 0x407   : > { %5475 = vcosq.f32 %v2728_v25  ;;  %v2729_v37 = vsel %vm8486_vm9, 0, %v2727_v61  ;;  %v2218_v51 = vsel %vm2216_vm15, %v5464_v48, %v2217_v53  ;;  %vm2531_vm1 = vcmp.eq.s32.totalorder %v2526_v57, 2 }
 0x408   : > { %5477 = vsinq.f32 %v2728_v25  ;;  %v2532_v15 = vxor.u32 2147483648, %v5468_v4  ;;  %v2422_v12 = vand.u32 3, %v2421_v42  ;;  %v2222_v50 = vsel %vm2215_vm5, %v2218_v51, %v2221_v11 }
 0x409   : > { %v2529_v43 = vxor.u32 2147483648, %v5470_v14  ;;  %v2733_v30 = vadd.s32 3, %v2729_v37  ;;  %v9402_v54 = vand.u32 2147483647, %v9401_v17  ;;  %v2223_v27 = vsel %vm2212_vm6, nan, %v2222_v50 }
 0x40a   : > { %v2533_v9 = vsel %vm2531_vm1, %v2532_v15, %v5470_v14  ;;  %v2622_v45 = vsub.s32 4, %v9405_v41  ;;  %v5472_v18 = vpop.eup %5471  ;;  %3516 = vmatmul.mubr.f32.gmra.mrb[14].mxu1 %v2223_v27  ;;  %vm2527_vm13 = vcmp.lt.s32.totalorder %v2526_v57, 2  ;;  %vm9407_vm6 = vcmp.lt.s32.totalorder %v9401_v17, 0 }
 0x40b   : > { %vm8505_vm2 = vcmp.le.f32.partialorder %v9402_v54, 0.7853982  ;;  %v2530_v10 = vsel %vm2528_vm3, %v5468_v4, %v2529_v43  ;;  %v2734_v60 = vand.u32 3, %v2733_v30  ;;  %v5474_v49 = vpop.eup %5473  ;;  %v2428_v59 = vxor.u32 2147483648, %v5472_v18 }
 0x40c   : > { %v2624_v2 = vsel %vm8505_vm2, %v9401_v17, %v9406_v63  ;;  %v2534_v31 = vsel %vm2527_vm13, %v2530_v10, %v2533_v9  ;;  %v2623_v39 = vsel %vm9407_vm6, %v2622_v45, %v9405_v41  ;;  %vm2423_vm0 = vcmp.lt.s32.totalorder %v2422_v12, 2 }
 0x40d   : > { %5479 = vcosq.f32 %v2624_v2  ;;  %v2535_v13 = vsel %vm2524_vm14, nan, %v2534_v31  ;;  %v2425_v6 = vxor.u32 2147483648, %v5474_v49  ;;  %vm2427_vm8 = vcmp.eq.s32.totalorder %v2422_v12, 2 }
 0x40e   : > { %5481 = vsinq.f32 %v2624_v2  ;;  %3520 = vmatprep.mubr.f32.mxu1 %v2535_v13  ;;  %vm2424_vm7 = vcmp.eq.s32.totalorder %v2422_v12, 0  ;;  %v2429_v26 = vsel %vm2427_vm8, %v2428_v59, %v5474_v49  ;;  %v2625_v38 = vsel %vm8505_vm2, 0, %v2623_v39 }
 0x40f   : > { %v9408_v57 = vand.u32 2147483647, %v7396_v19  ;;  %v2426_v29 = vsel %vm2424_vm7, %v5472_v18, %v2425_v6  ;;  %v2629_v42 = vadd.s32 3, %v2625_v38  ;;  %v2934_v35 = vsub.s32 4, %v9411_v52 }
 0x410   : > { %vm2420_vm14 = vweird.f32 %v9387_v20  ;;  %v2430_v1 = vsel %vm2423_vm0, %v2426_v29, %v2429_v26  ;;  %vm2735_vm9 = vcmp.lt.s32.totalorder %v2734_v60, 2  ;;  %vm2739_vm15 = vcmp.eq.s32.totalorder %v2734_v60, 2  ;;  %v9413_v20 = vld [vmem:[#allocation73_spill] sm:$0xff] }
 0x411   : > { %vm8526_vm5 = vcmp.le.f32.partialorder %v9408_v57, 0.7853982  ;;  %v5476_v24 = vpop.eup %5475  ;;  %v2431_v36 = vsel %vm2420_vm14, nan, %v2430_v1  ;;  %vm9412_vm12 = vcmp.lt.s32.totalorder %v7396_v19, 0  ;;  %vm3266_vm11 = vcmp.lt.s32.totalorder %v7687_v3, 0 }
 0x412   : > { %v2936_v40 = vsel %vm8526_vm5, %v7396_v19, %v8025_v5  ;;  %v5478_v22 = vpop.eup %5477  ;;  %v2740_v0 = vxor.u32 2147483648, %v5476_v24  ;;  %v2935_v23 = vsel %vm9412_vm12, %v2934_v35, %v9411_v52  ;;  %3521 = vmatmul.mubr.f32.gmra.mrb[16].mxu1 %v2431_v36  ;;  %v2830_v53 = vsub.s32 4, %v9413_v20 }
 0x413   : > { %5483 = vcosq.f32 %v2936_v40  ;;  %v2737_v25 = vxor.u32 2147483648, %v5478_v22  ;;  %v2937_v5 = vsel %vm8526_vm5, 0, %v2935_v23  ;;  %vm2736_vm3 = vcmp.eq.s32.totalorder %v2734_v60, 0 }
 0x414   : > { %5485 = vsinq.f32 %v2936_v40  ;;  %v2741_v61 = vsel %vm2739_vm15, %v2740_v0, %v5478_v22  ;;  %v2630_v4 = vand.u32 3, %v2629_v42  ;;  %v9414_v11 = vand.u32 2147483647, %v9286_v55 }
 0x415   : > { %v2738_v14 = vsel %vm2736_vm3, %v5476_v24, %v2737_v25  ;;  %v2941_v51 = vadd.s32 3, %v2937_v5  ;;  %vm9417_vm2 = vcmp.lt.s32.totalorder %v9286_v55, 0  ;;  %vm2732_vm13 = vweird.f32 %v9394_v33 }
 0x416   : > { %vm8545_vm1 = vcmp.le.f32.partialorder %v9414_v11, 0.7853982  ;;  %v2831_v15 = vsel %vm9417_vm2, %v2830_v53, %v9413_v20  ;;  %v2742_v43 = vsel %vm2735_vm9, %v2738_v14, %v2741_v61  ;;  %vm2628_vm6 = vweird.f32 %v9401_v17 }
 0x417   : > { %v2832_v12 = vsel %vm8545_vm1, %v9286_v55, %v8013_v62  ;;  %v5480_v50 = vpop.eup %5479  ;;  %v2833_v30 = vsel %vm8545_vm1, 0, %v2831_v15  ;;  %v2743_v16 = vsel %vm2732_vm13, nan, %v2742_v43  ;;  %vm2635_vm0 = vcmp.eq.s32.totalorder %v2630_v4, 2  ;;  %v9418_v62 = vld [vmem:[#allocation66_spill] sm:$0xff] }
 0x418   : > { %5487 = vcosq.f32 %v2832_v12  ;;  %v5482_v54 = vpop.eup %5481  ;;  %v2636_v27 = vxor.u32 2147483648, %v5480_v50  ;;  %3525 = vmatprep.mubr.f32.mxu1 %v2743_v16  ;;  %v2837_v41 = vadd.s32 3, %v2833_v30  ;;  %v3142_v45 = vsub.s32 4, %v9418_v62 }
 0x419   : > { %5489 = vsinq.f32 %v2832_v12  ;;  %v2633_v9 = vxor.u32 2147483648, %v5482_v54  ;;  %vm2632_vm8 = vcmp.eq.s32.totalorder %v2630_v4, 0  ;;  %v2942_v63 = vand.u32 3, %v2941_v51 }
 0x41a   : > { %v2637_v33 = vsel %vm2635_vm0, %v2636_v27, %v5482_v54  ;;  %v9419_v2 = vand.u32 2147483647, %v7486_v44  ;;  %vm2631_vm5 = vcmp.lt.s32.totalorder %v2630_v4, 2  ;;  %vm9422_vm14 = vcmp.lt.s32.totalorder %v7486_v44, 0 }
 0x41b   : > { %v2634_v10 = vsel %vm2632_vm8, %v5480_v50, %v2633_v9  ;;  %v3143_v60 = vsel %vm9422_vm14, %v3142_v45, %v9418_v62  ;;  %v2838_v39 = vand.u32 3, %v2837_v41  ;;  %v3349_v6 = vsel %vm3266_vm11, %v3348_v56, %v8129_v7  ;;  %v9426_v7 = vld [vmem:[#allocation77_spill] sm:$0xff] }
 0x41c   : > { %vm8564_vm7 = vcmp.le.f32.partialorder %v9419_v2, 0.7853982  ;;  %v2638_v59 = vsel %vm2631_vm5, %v2634_v10, %v2637_v33  ;;  %vm2940_vm9 = vweird.f32 %v7396_v19  ;;  %vm2947_vm15 = vcmp.eq.s32.totalorder %v2942_v63, 2  ;;  %v3710_v2 = vld [vmem:[#allocation7 + $0x8] sm:$0xff] }
 0x41d   : > { %v3144_v49 = vsel %vm8564_vm7, %v7486_v44, %v8037_v28  ;;  %v5484_v31 = vpop.eup %5483  ;;  %v3145_v13 = vsel %vm8564_vm7, 0, %v3143_v60  ;;  %v2639_v26 = vsel %vm2628_vm6, nan, %v2638_v59  ;;  %v9423_v48 = vand.u32 2147483647, %v7481_v47 }
 0x41e   : > { %5491 = vcosq.f32 %v3144_v49  ;;  %v2948_v38 = vxor.u32 2147483648, %v5484_v31  ;;  %v5486_v28 = vpop.eup %5485  ;;  %3526 = vmatmul.mubr.f32.gmra.mrb[18].mxu1 %v2639_v26  ;;  %v3149_v57 = vadd.s32 3, %v3145_v13  ;;  %v3038_v56 = vsub.s32 4, %v9426_v7 }
 0x41f   : > { %5493 = vsinq.f32 %v3144_v49  ;;  %vm8587_vm12 = vcmp.le.f32.partialorder %v9423_v48, 0.7853982  ;;  %v2945_v42 = vxor.u32 2147483648, %v5486_v28  ;;  %vm2943_vm3 = vcmp.lt.s32.totalorder %v2942_v63, 2 }
 0x420   : > { %v2949_v52 = vsel %vm2947_vm15, %v2948_v38, %v5486_v28  ;;  %v3040_v17 = vsel %vm8587_vm12, %v7481_v47, %v8029_v21  ;;  %vm2944_vm1 = vcmp.eq.s32.totalorder %v2942_v63, 0  ;;  %vm2840_vm2 = vcmp.eq.s32.totalorder %v2838_v39, 0  ;;  %v3709_v63 = vld [vmem:[#allocation7] sm:$0xff] }
 0x421   : > { %5495 = vcosq.f32 %v3040_v17  ;;  %v2946_v40 = vsel %vm2944_vm1, %v5484_v31, %v2945_v42  ;;  %vm9427_vm13 = vcmp.lt.s32.totalorder %v7481_v47, 0  ;;  %v3350_v1 = vsub.s32 4, %v7909_v58 }
 0x422   : > { %v5488_v35 = vpop.eup %5487  ;;  %v3039_v24 = vsel %vm9427_vm13, %v3038_v56, %v9426_v7  ;;  %5497 = vsinq.f32 %v3040_v17  ;;  %v2950_v36 = vsel %vm2943_vm3, %v2946_v40, %v2949_v52  ;;  %vm2843_vm6 = vcmp.eq.s32.totalorder %v2838_v39, 2  ;;  %v3714_v17 = vld [vmem:[#allocation7 + $0x28] sm:$0xff] }
 0x423   : > { %v5490_v22 = vpop.eup %5489  ;;  %v2844_v0 = vxor.u32 2147483648, %v5488_v35  ;;  %v3150_v23 = vand.u32 3, %v3149_v57  ;;  %v2951_v21 = vsel %vm2940_vm9, nan, %v2950_v36  ;;  %v3041_v5 = vsel %vm8587_vm12, 0, %v3039_v24  ;;  %v3715_v36 = vld [vmem:[#allocation7 + $0x30] sm:$0xff] }
 0x424   : > { %v2841_v25 = vxor.u32 2147483648, %v5490_v22  ;;  %v9428_v20 = vand.u32 2147483647, %v7687_v3  ;;  %3530 = vmatprep.mubr.f32.mxu1 %v2951_v21  ;;  %v3045_v4 = vadd.s32 3, %v3041_v5  ;;  %v3351_v11 = vsel %vm3266_vm11, %v3350_v1, %v7909_v58  ;;  %v9431_v58 = vld [vmem:[#allocation79_spill] sm:$0xff] }
 0x425   : > { %v2845_v61 = vsel %vm2843_vm6, %v2844_v0, %v5490_v22  ;;  %vm2839_vm8 = vcmp.lt.s32.totalorder %v2838_v39, 2  ;;  %vm2836_vm7 = vweird.f32 %v9286_v55  ;;  %v3246_v30 = vsub.s32 4, %v9431_v58  ;;  %v3712_v39 = vld [vmem:[#allocation7 + $0x18] sm:$0xff] }
 0x426   : > { %vm8606_vm0 = vcmp.le.f32.partialorder %v9428_v20, 0.7853982  ;;  %v2842_v37 = vsel %vm2840_vm2, %v5488_v35, %v2841_v25  ;;  %v3046_v12 = vand.u32 3, %v3045_v4  ;;  %vm3155_vm11 = vcmp.eq.s32.totalorder %v3150_v23, 2  ;;  %v3716_v0 = vld [vmem:[#allocation7 + $0x38] sm:$0xff]  ;;  %v3717_v4 = vld [vmem:[#allocation7 + $0x40] sm:$0xff] }
 0x427   : > { %v3352_v19 = vsel %vm8606_vm0, %v7687_v3, %v3349_v6  ;;  %v3353_v14 = vsel %vm8606_vm0, 0, %v3351_v11  ;;  %v2846_v15 = vsel %vm2839_vm8, %v2842_v37, %v2845_v61  ;;  %v9432_v27 = vand.u32 2147483647, %v7568_v46 }
 0x428   : > { %5499 = vcosq.f32 %v3352_v19  ;;  %v5492_v51 = vpop.eup %5491  ;;  %v2847_v50 = vsel %vm2836_vm7, nan, %v2846_v15  ;;  %v3357_v16 = vadd.s32 3, %v3353_v14  ;;  %v3247_v55 = vsel %vm3162_vm10, %v3246_v30, %v9431_v58  ;;  %v3720_v15 = vld [vmem:[#allocation7 + $0x58] sm:$0xff]  ;;  %v3723_v58 = vld [vmem:[#allocation7 + $0x70] sm:$0xff] }
 0x429   : > { %5501 = vsinq.f32 %v3352_v19  ;;  %v3156_v43 = vxor.u32 2147483648, %v5492_v51  ;;  %v5494_v54 = vpop.eup %5493  ;;  %3531 = vmatmul.mubr.f32.gmra.mrb[20].mxu1 %v2847_v50  ;;  %vm8623_vm5 = vcmp.le.f32.partialorder %v9432_v27, 0.7853982  ;;  %vm3148_vm14 = vweird.f32 %v7486_v44  ;;  %v3713_v44 = vld [vmem:[#allocation7 + $0x20] sm:$0xff]  ;;  %v3724_v30 = vld [vmem:[#allocation7 + $0x78] sm:$0xff] }
 0x42a   : > { %v3153_v41 = vxor.u32 2147483648, %v5494_v54  ;;  %v3248_v45 = vsel %vm8623_vm5, %v7568_v46, %v8473_v34  ;;  %vm3151_vm9 = vcmp.lt.s32.totalorder %v3150_v23, 2  ;;  %vm3152_vm15 = vcmp.eq.s32.totalorder %v3150_v23, 0  ;;  %v3711_v34 = vld [vmem:[#allocation7 + $0x10] sm:$0xff]  ;;  %v3721_v50 = vld [vmem:[#allocation7 + $0x60] sm:$0xff] }
 0x42b   : > { %v3157_v62 = vsel %vm3155_vm11, %v3156_v43, %v5494_v54  ;;  %v5496_v33 = vpop.eup %5495  ;;  %vm3048_vm12 = vcmp.eq.s32.totalorder %v3046_v12, 0  ;;  %vm3051_vm3 = vcmp.eq.s32.totalorder %v3046_v12, 2  ;;  %5503 = vcosq.f32 %v3248_v45  ;;  %v3722_v43 = vld [vmem:[#allocation7 + $0x68] sm:$0xff] }
 0x42c   : > { %v5498_v18 = vpop.eup %5497  ;;  %v3154_v10 = vsel %vm3152_vm15, %v5492_v51, %v3153_v41  ;;  %v3052_v60 = vxor.u32 2147483648, %v5496_v33  ;;  %v3249_v59 = vsel %vm8623_vm5, 0, %v3247_v55  ;;  %5505 = vsinq.f32 %v3248_v45  ;;  %v3719_v51 = vld [vmem:[#allocation7 + $0x50] sm:$0xff] }
 0x42d   : > { %v3158_v49 = vsel %vm3151_vm9, %v3154_v10, %v3157_v62  ;;  %v3049_v31 = vxor.u32 2147483648, %v5498_v18  ;;  %v3358_v26 = vand.u32 3, %v3357_v16  ;;  %v5082_v38 = vpack.c.bf16 %v3710_v2, %v3709_v63 }
 0x42e   : > { %v3159_v13 = vsel %vm3148_vm14, nan, %v3158_v49  ;;  %v3053_v6 = vsel %vm3051_vm3, %v3052_v60, %v5498_v18  ;;  %vm3047_vm10 = vcmp.lt.s32.totalorder %v3046_v12, 2  ;;  %vm3044_vm1 = vweird.f32 %v7481_v47  ;;  %v3875_v49 = vld [vmem:[%s9000_s8] sm:$0xff] }
 0x42f   : > { %3535 = vmatprep.mubr.f32.mxu1 %v3159_v13  ;;  %v3050_v28 = vsel %vm3048_vm12, %v5496_v33, %v3049_v31  ;;  %v3253_v29 = vadd.s32 3, %v3249_v59  ;;  %5083 = vmatpush3.bf16.msra.mxu1 %v5082_v38  ;;  %v5085_v42 = vpack.c.bf16 %v3712_v39, %v3711_v34  ;;  %vm3363_vm2 = vcmp.eq.s32.totalorder %v3358_v26, 2  ;;  %v3876_v31 = vld [vmem:[%s9000_s8 + $0x8] sm:$0xff]  ;;  %v3877_v59 = vld [vmem:[%s9000_s8 + $0x10] sm:$0xff]  ;;  %v3878_v13 = vld [vmem:[%s9000_s8 + $0x18] sm:$0xff] }
 0x430   : > { %v3054_v48 = vsel %vm3047_vm10, %v3050_v28, %v3053_v6  ;;  %5084 = vmatprep.subr.bf16.mxu1 %v9271_v8  ;;  %vm3360_vm13 = vcmp.eq.s32.totalorder %v3358_v26, 0  ;;  %vm3359_vm6 = vcmp.lt.s32.totalorder %v3358_v26, 2  ;;  %v5088_v47 = vpack.c.bf16 %v3714_v17, %v3713_v44  ;;  %v3879_v38 = vld [vmem:[%s9000_s8 + $0x20] sm:$0xff]  ;;  %v3880_v28 = vld [vmem:[%s9000_s8 + $0x28] sm:$0xff] }
 0x431   : > { %v3055_v7 = vsel %vm3044_vm1, nan, %v3054_v48  ;;  %v3254_v1 = vand.u32 3, %v3253_v29  ;;  %vm3356_vm0 = vweird.f32 %v7687_v3  ;;  %v5091_v53 = vpack.c.bf16 %v3716_v0, %v3715_v36  ;;  %v3718_v3 = vld [vmem:[#allocation7 + $0x48] sm:$0xff]  ;;  %v3883_v17 = vld [vmem:[%s9000_s8 + $0x40] sm:$0xff] }
 0x432   : > { %v5500_v57 = vpop.eup %5499  ;;  %3536 = vmatmul.mubr.f32.gmra.mrb[22].mxu1 %v3055_v7  ;;  %vm3252_vm5 = vweird.f32 %v7568_v46  ;;  %v5094_v14 = vpack.c.bf16 %v3718_v3, %v3717_v4  ;;  %v5097_v12 = vpack.c.bf16 %v3720_v15, %v3719_v51  ;;  %v5100_v46 = vpack.c.bf16 %v3722_v43, %v3721_v50 }
 0x433   : > { %v5502_v52 = vpop.eup %5501  ;;  %v3364_v56 = vxor.u32 2147483648, %v5500_v57  ;;  %5086 = vmatpush3.bf16.msra.mxu1 %v5085_v42  ;;  %vm3259_vm8 = vcmp.eq.s32.totalorder %v3254_v1, 2  ;;  %vm3256_vm7 = vcmp.eq.s32.totalorder %v3254_v1, 0  ;;  %vm3255_vm11 = vcmp.lt.s32.totalorder %v3254_v1, 2  ;;  %v3881_v42 = vld [vmem:[%s9000_s8 + $0x30] sm:$0xff] }
 0x434   : > { %v3361_v35 = vxor.u32 2147483648, %v5502_v52  ;;  %5087 = vmatprep.subr.bf16.mxu1 %v9271_v8  ;;  %v5103_v54 = vpack.c.bf16 %v3724_v30, %v3723_v58  ;;  %v5106_v39 = vpack.c.bf16 %v3876_v31, %v3875_v49  ;;  %v8679_v6 = vpack.c.bf16 %v3878_v13, %v3877_v59 }
 0x435   : > { %v3365_v40 = vsel %vm3363_vm2, %v3364_v56, %v5502_v52  ;;  %v5504_v23 = vpop.eup %5503  ;;  %v8691_v48 = vpack.c.bf16 %v3880_v28, %v3879_v38  ;;  %v3882_v52 = vld [vmem:[%s9000_s8 + $0x38] sm:$0xff] }
 0x436   : > { %v3362_v24 = vsel %vm3360_vm13, %v5500_v57, %v3361_v35  ;;  %v5506_v25 = vpop.eup %5505  ;;  %v3260_v5 = vxor.u32 2147483648, %v5504_v23  ;;  %5107 = vmatpush3.bf16.msra.mxu0 %v5106_v39  ;;  %v8703_v56 = vpack.c.bf16 %v3882_v52, %v3881_v42  ;;  %v3884_v35 = vld [vmem:[%s9000_s8 + $0x48] sm:$0xff] }
 0x437   : > { %v3366_v22 = vsel %vm3359_vm6, %v3362_v24, %v3365_v40  ;;  %v3257_v20 = vxor.u32 2147483648, %v5506_v25  ;;  %5089 = vmatpush3.bf16.msra.mxu1 %v5088_v47  ;;  %5108 = vmatprep.subr.bf16.mxu0 %v9271_v8  ;;  %v8715_v24 = vpack.c.bf16 %v3884_v35, %v3883_v17  ;;  %v3885_v47 = vld [vmem:[%s9000_s8 + $0x50] sm:$0xff] }
 0x438   : > { %v3367_v21 = vsel %vm3356_vm0, nan, %v3366_v22  ;;  %v3261_v61 = vsel %vm3259_vm8, %v3260_v5, %v5506_v25  ;;  %5090 = vmatprep.subr.bf16.mxu1 %v9271_v8  ;;  %v3886_v22 = vld [vmem:[%s9000_s8 + $0x58] sm:$0xff]  ;;  %v3888_v25 = vld [vmem:[%s9000_s8 + $0x68] sm:$0xff] }
 0x439   : > { %3540 = vmatprep.mubr.f32.mxu1 %v3367_v21  ;;  %v3258_v11 = vsel %vm3256_vm7, %v5504_v23, %v3257_v20  ;;  %v8727_v0 = vpack.c.bf16 %v3886_v22, %v3885_v47  ;;  %v3887_v21 = vld [vmem:[%s9000_s8 + $0x60] sm:$0xff] }
 0x43a   : > { %v3262_v19 = vsel %vm3255_vm11, %v3258_v11, %v3261_v61  ;;  %5110 = vmatpush3.bf16.msra.mxu0 %v8679_v6  ;;  %v8739_v20 = vpack.c.bf16 %v3888_v25, %v3887_v21 }
 0x43b   : > { %v3263_v37 = vsel %vm3252_vm5, nan, %v3262_v19  ;;  %5092 = vmatpush3.bf16.msra.mxu1 %v5091_v53  ;;  %5111 = vmatprep.subr.bf16.mxu0 %v9271_v8  ;;  %v8746_v19 = vld [vmem:[#allocation6] ss:$0 sm:$0xff] }
 0x43c   : > { %3541 = vmatmul.mubr.f32.gmra.mrb[24].mxu1 %v3263_v37  ;;  %5093 = vmatprep.subr.bf16.mxu1 %v9271_v8 }
 0x43d   : > { %4883 = vmatprep.mubr.msk.f32.mxu1 %vm5833_vm4, %v9293_v32 }
 0x43e   : > { %5113 = vmatpush3.bf16.msra.mxu0 %v8691_v48 }
 0x43f   : > { %5095 = vmatpush3.bf16.msra.mxu1 %v5094_v14  ;;  %5114 = vmatprep.subr.bf16.mxu0 %v9271_v8 }
 0x440   : > { %5096 = vmatprep.subr.bf16.mxu1 %v9271_v8 }
 0x442   : > { %5116 = vmatpush3.bf16.msra.mxu0 %v8703_v56 }
 0x443   : > { %5098 = vmatpush3.bf16.msra.mxu1 %v5097_v12  ;;  %5117 = vmatprep.subr.bf16.mxu0 %v9271_v8 }
 0x444   : > { %5099 = vmatprep.subr.bf16.mxu1 %v9271_v8 }
 0x446   : > { %5119 = vmatpush3.bf16.msra.mxu0 %v8715_v24 }
 0x447   : > { %5101 = vmatpush3.bf16.msra.mxu1 %v5100_v46  ;;  %5120 = vmatprep.subr.bf16.mxu0 %v9271_v8 }
 0x448   : > { %5102 = vmatprep.subr.bf16.mxu1 %v9271_v8 }
 0x44a   : > { %5122 = vmatpush3.bf16.msra.mxu0 %v8727_v0 }
 0x44b   : > { %5104 = vmatpush3.bf16.msra.mxu1 %v5103_v54  ;;  %5123 = vmatprep.subr.bf16.mxu0 %v9271_v8 }
 0x44c   : > { %5129 = vmatprep.subr.bf16.mxu1 %v9271_v8 }
 0x44e   : > { %5125 = vmatpush3.bf16.msra.mxu0 %v8739_v20 }
 0x44f   : > { %5126 = vmatprep.subr.bf16.mxu0 %v9271_v8 }
 0x474   : > { %v8653_v16 = vpop.f32.mrb[26].mxu0 }
 0x475   : > { %v4814_v27 = vpop.f32.mrb[27].mxu0 }
 0x478   : > { %v8655_v9 = vpop.f32.mrb[28].mxu0 }
 0x479   : > { %v4817_v41 = vpop.f32.mrb[29].mxu0 }
 0x47c   : > { %v8657_v62 = vpop.f32.mrb[30].mxu0 }
 0x47d   : > { %v4820_v55 = vpop.f32.mrb[31].mxu0 }
 0x480   : > { %v8659_v45 = vpop.f32.mrb[32].mxu0 }
 0x481   : > { %v4823_v33 = vpop.f32.mrb[33].mxu0 }
 0x484   : > { %v8661_v63 = vpop.f32.mrb[34].mxu0 }
 0x485   : > { %v4826_v2 = vpop.f32.mrb[35].mxu0 }
 0x488   : > { %v8663_v18 = vpop.f32.mrb[36].mxu0 }
 0x489   : > { %v4829_v10 = vpop.f32.mrb[37].mxu0 }
 0x48c   : > { %v8665_v60 = vpop.f32.mrb[38].mxu0 }
 0x48d   : > { %v4832_v34 = vpop.f32.mrb[39].mxu0 }
 0x490   : > { %v8681_v26 = vpop.f32.mrb[40].mxu0 }
 0x491   : > { %v4835_v57 = vpop.f32.mrb[41].mxu0 }
 0x494   : > { %v8693_v29 = vpop.f32.mrb[42].mxu0 }
 0x495   : > { %v4838_v7 = vpop.f32.mrb[43].mxu0 }
 0x498   : > { %v8705_v44 = vpop.f32.mrb[44].mxu0 }
 0x499   : > { %v4841_v40 = vpop.f32.mrb[45].mxu0 }
 0x49c   : > { %v8717_v1 = vpop.f32.mrb[46].mxu0 }
 0x49d   : > { %v4844_v36 = vpop.f32.mrb[47].mxu0 }
 0x4a0   : > { %v8729_v23 = vpop.f32.mrb[48].mxu0 }
 0x4a1   : > { %v4847_v5 = vpop.f32.mrb[49].mxu0 }
 0x4a5   : > { %v8741_v53 = vpop.f32.mrb[50].mxu0 }
 0x4a6   : > { %v4850_v61 = vpop.f32.mrb[51].mxu0 }
 0x4b1   : > { %v4654_v4 = vpop.f32.mrb[0].mxu1 }
 0x4b2   : > { %v4655_v3 = vpop.f32.mrb[1].mxu1 }
 0x4b3   : > { %v4656_v11 = vadd.f32 %v4655_v3, %v4654_v4 }
 0x4b5   : > { %v3613_v37 = vadd.f32 %v4656_v11, %v8653_v16  ;;  %v4657_v14 = vpop.f32.mrb[2].mxu1 }
 0x4b6   : > { %v4658_v51 = vpop.f32.mrb[3].mxu1 }
 0x4b7   : > { %v3683_v15 = vadd.f32 %v8746_v19, %v3613_v37  ;;  %v4659_v12 = vadd.f32 %v4658_v51, %v4657_v14 }
 0x4b9   : > { %v3696_v50 = vmax.f32 %v3683_v15, 0.0  ;;  %v3618_v43 = vadd.f32 %v4659_v12, %v8655_v9  ;;  %v4660_v46 = vpop.f32.mrb[4].mxu1 }
 0x4ba   : > { %v4661_v58 = vpop.f32.mrb[5].mxu1 }
 0x4bb   : > { %v3684_v30 = vadd.f32 %v8746_v19, %v3618_v43  ;;  %v4662_v54 = vadd.f32 %v4661_v58, %v4660_v46  ;;  %4884 = vmatmul.mubr.f32.vlgmr.msra.gmra.mrb[26].mxu1 %v3696_v50 }
 0x4bc   : > { %4886 = vmatprep.mubr.msk.f32.mxu1 %vm5833_vm4, %v9293_v32  ;;  %5137 = vmatpush3.bf16.msra.mxu1 %v5106_v39 }
 0x4bd   : > { %v3697_v27 = vmax.f32 %v3684_v30, 0.0  ;;  %v3623_v16 = vadd.f32 %v4662_v54, %v8657_v62  ;;  %v4663_v41 = vpop.f32.mrb[6].mxu1  ;;  %5130 = vmatprep.subr.bf16.mxu1 %v9271_v8 }
 0x4be   : > { %v4664_v55 = vpop.f32.mrb[7].mxu1 }
 0x4bf   : > { %v3685_v33 = vadd.f32 %v8746_v19, %v3623_v16  ;;  %v4665_v9 = vadd.f32 %v4664_v55, %v4663_v41  ;;  %4887 = vmatmul.mubr.f32.gmra.mrb[28].mxu1 %v3697_v27 }
 0x4c0   : > { %4889 = vmatprep.mubr.msk.f32.mxu1 %vm5833_vm4, %v9293_v32  ;;  %5138 = vmatpush3.bf16.msra.mxu1 %v8679_v6 }
 0x4c1   : > { %v3698_v2 = vmax.f32 %v3685_v33, 0.0  ;;  %v3628_v10 = vadd.f32 %v4665_v9, %v8659_v45  ;;  %5131 = vmatprep.subr.bf16.mxu1 %v9271_v8  ;;  %v3890_v33 = vld [vmem:[%s9000_s8 + $0x78] sm:$0xff] }
 0x4c3   : > { %v3686_v31 = vadd.f32 %v8746_v19, %v3628_v10  ;;  %4890 = vmatmul.mubr.f32.gmra.mrb[30].mxu1 %v3698_v2  ;;  %v8819_v2 = vld [vmem:[#allocation9] ss:$0 sm:$0xff] }
 0x4c4   : > { %v4666_v49 = vpop.f32.mrb[8].mxu1  ;;  %4892 = vmatprep.mubr.msk.f32.mxu1 %vm5833_vm4, %v9293_v32  ;;  %5139 = vmatpush3.bf16.msra.mxu1 %v8691_v48 }
 0x4c5   : > { %v4667_v62 = vpop.f32.mrb[9].mxu1  ;;  %v3699_v34 = vmax.f32 %v3686_v31, 0.0  ;;  %5132 = vmatprep.subr.bf16.mxu1 %v9271_v8 }
 0x4c6   : > { %v4668_v59 = vadd.f32 %v4667_v62, %v4666_v49 }
 0x4c7   : > { %4893 = vmatmul.mubr.f32.gmra.mrb[32].mxu1 %v3699_v34 }
 0x4c8   : > { %v3633_v39 = vadd.f32 %v4668_v59, %v8661_v63  ;;  %4895 = vmatprep.mubr.msk.f32.mxu1 %vm5833_vm4, %v9293_v32  ;;  %5140 = vmatpush3.bf16.msra.mxu1 %v8703_v56 }
 0x4c9   : > { %v4669_v13 = vpop.f32.mrb[10].mxu1  ;;  %5133 = vmatprep.subr.bf16.mxu1 %v9271_v8 }
 0x4ca   : > { %v4670_v45 = vpop.f32.mrb[11].mxu1  ;;  %v3687_v6 = vadd.f32 %v8746_v19, %v3633_v39 }
 0x4cb   : > { %v4671_v38 = vadd.f32 %v4670_v45, %v4669_v13 }
 0x4cc   : > { %v3700_v28 = vmax.f32 %v3687_v6, 0.0  ;;  %5141 = vmatpush3.bf16.msra.mxu1 %v8715_v24 }
 0x4cd   : > { %v3638_v57 = vadd.f32 %v4671_v38, %v8663_v18  ;;  %5134 = vmatprep.subr.bf16.mxu1 %v9271_v8 }
 0x4ce   : > { %4896 = vmatmul.mubr.f32.gmra.mrb[34].mxu1 %v3700_v28 }
 0x4cf   : > { %v3688_v63 = vadd.f32 %v8746_v19, %v3638_v57  ;;  %4898 = vmatprep.mubr.msk.f32.mxu1 %vm5833_vm4, %v9293_v32 }
 0x4d0   : > { %5142 = vmatpush3.bf16.msra.mxu1 %v8727_v0 }
 0x4d1   : > { %v4672_v48 = vpop.f32.mrb[12].mxu1  ;;  %v3701_v42 = vmax.f32 %v3688_v63, 0.0  ;;  %5135 = vmatprep.subr.bf16.mxu1 %v9271_v8 }
 0x4d2   : > { %v4673_v52 = vpop.f32.mrb[13].mxu1 }
 0x4d3   : > { %v4674_v7 = vadd.f32 %v4673_v52, %v4672_v48  ;;  %4899 = vmatmul.mubr.f32.gmra.mrb[36].mxu1 %v3701_v42 }
 0x4d4   : > { %4901 = vmatprep.mubr.msk.f32.mxu1 %vm5833_vm4, %v9293_v32  ;;  %5143 = vmatpush3.bf16.msra.mxu1 %v8739_v20 }
 0x4d5   : > { %v3643_v56 = vadd.f32 %v4674_v7, %v8665_v60  ;;  %5136 = vmatprep.subr.bf16.mxu1 %v9271_v8 }
 0x4d7   : > { %v3689_v18 = vadd.f32 %v8746_v19, %v3643_v56 }
 0x4d9   : > { %v3702_v17 = vmax.f32 %v3689_v18, 0.0 }
 0x4db   : > { %4902 = vmatmul.mubr.f32.gmra.mrb[38].mxu1 %v3702_v17 }
 0x4dc   : > { %4904 = vmatprep.mubr.msk.f32.mxu1 %vm5833_vm4, %v9293_v32 }
 0x4dd   : > { %v4675_v35 = vpop.f32.mrb[14].mxu1 }
 0x4de   : > { %v4676_v60 = vpop.f32.mrb[15].mxu1 }
 0x4df   : > { %v4677_v40 = vadd.f32 %v4676_v60, %v4675_v35 }
 0x4e1   : > { %v3648_v24 = vadd.f32 %v4677_v40, %v8681_v26 }
 0x4e3   : > { %v3690_v47 = vadd.f32 %v8746_v19, %v3648_v24 }
 0x4e5   : > { %v4678_v22 = vpop.f32.mrb[16].mxu1  ;;  %v3703_v36 = vmax.f32 %v3690_v47, 0.0 }
 0x4e6   : > { %v4679_v0 = vpop.f32.mrb[17].mxu1 }
 0x4e7   : > { %v4680_v21 = vadd.f32 %v4679_v0, %v4678_v22  ;;  %4905 = vmatmul.mubr.f32.gmra.mrb[40].mxu1 %v3703_v36 }
 0x4e8   : > { %4907 = vmatprep.mubr.msk.f32.mxu1 %vm5833_vm4, %v9293_v32 }
 0x4e9   : > { %v3653_v25 = vadd.f32 %v4680_v21, %v8693_v29 }
 0x4eb   : > { %v3691_v8 = vadd.f32 %v8746_v19, %v3653_v25 }
 0x4ed   : > { %v3704_v5 = vmax.f32 %v3691_v8, 0.0 }
 0x4ef   : > { %4908 = vmatmul.mubr.f32.gmra.mrb[42].mxu1 %v3704_v5 }
 0x4f0   : > { %4910 = vmatprep.mubr.msk.f32.mxu1 %vm5833_vm4, %v9293_v32 }
 0x4f1   : > { %v4681_v20 = vpop.f32.mrb[18].mxu1 }
 0x4f2   : > { %v4682_v61 = vpop.f32.mrb[19].mxu1 }
 0x4f3   : > { %v4683_v26 = vadd.f32 %v4682_v61, %v4681_v20 }
 0x4f5   : > { %v3658_v4 = vadd.f32 %v4683_v26, %v8705_v44 }
 0x4f7   : > { %v3692_v3 = vadd.f32 %v8746_v19, %v3658_v4 }
 0x4f9   : > { %v3705_v11 = vmax.f32 %v3692_v3, 0.0 }
 0x4fb   : > { %4911 = vmatmul.mubr.f32.gmra.mrb[44].mxu1 %v3705_v11 }
 0x4fc   : > { %v4684_v37 = vpop.f32.mrb[20].mxu1  ;;  %4913 = vmatprep.mubr.msk.f32.mxu1 %vm5833_vm4, %v9293_v32 }
 0x4fd   : > { %v4685_v29 = vpop.f32.mrb[21].mxu1 }
 0x4fe   : > { %v4686_v14 = vadd.f32 %v4685_v29, %v4684_v37 }
 0x500   : > { %v3663_v51 = vadd.f32 %v4686_v14, %v8717_v1 }
 0x502   : > { %v3693_v15 = vadd.f32 %v8746_v19, %v3663_v51 }
 0x504   : > { %v3706_v12 = vmax.f32 %v3693_v15, 0.0 }
 0x505   : > { %v4687_v50 = vpop.f32.mrb[22].mxu1 }
 0x506   : > { %v4688_v43 = vpop.f32.mrb[23].mxu1  ;;  %4914 = vmatmul.mubr.f32.gmra.mrb[46].mxu1 %v3706_v12 }
 0x507   : > { %v4689_v46 = vadd.f32 %v4688_v43, %v4687_v50  ;;  %4916 = vmatprep.mubr.msk.f32.mxu1 %vm5833_vm4, %v9293_v32 }
 0x509   : > { %v3668_v44 = vadd.f32 %v4689_v46, %v8729_v23  ;;  %v3889_v23 = vld [vmem:[%s9000_s8 + $0x70] sm:$0xff] }
 0x50a   : > { %v5127_v9 = vpack.c.bf16 %v3890_v33, %v3889_v23 }
 0x50b   : > { %v3694_v58 = vadd.f32 %v8746_v19, %v3668_v44 }
 0x50c   : > { %5128 = vmatpush3.bf16.msra.mxu0 %v5127_v9  ;;  %5144 = vmatpush3.bf16.msra.mxu1 %v5127_v9 }
 0x50d   : > { %v3707_v30 = vmax.f32 %v3694_v58, 0.0 }
 0x50f   : > { %4917 = vmatmul.mubr.f32.gmra.mrb[48].mxu1 %v3707_v30  ;;  %v4690_v54 = vpop.f32.mrb[24].mxu1  ;;  %v8859_v30 = vld [vmem:[%s9001_s9] ss:$0 sm:$0xff] }
 0x510   : > { %4919 = vmatprep.mubr.msk.f32.mxu1 %vm5833_vm4, %v9293_v32  ;;  %v4691_v1 = vpop.f32.mrb[25].mxu1 }
 0x511   : > { %v4692_v27 = vadd.f32 %v4691_v1, %v4690_v54 }
 0x513   : > { %v3673_v16 = vadd.f32 %v4692_v27, %v8741_v53 }
 0x515   : > { %v3695_v41 = vadd.f32 %v8746_v19, %v3673_v16 }
 0x517   : > { %v3708_v55 = vmax.f32 %v3695_v41, 0.0 }
 0x519   : > { %4920 = vmatmul.mubr.f32.gmra.mrb[50].mxu1 %v3708_v55 }
 0x51a   : > { %4975 = vmatprep.mubr.msk.f32.mxu1 %vm5833_vm4, %v9293_v32 }
 0x58e   : > { %v3798_v53 = vpop.f32.mrb[26].mxu1 }
 0x58f   : > { %v3799_v19 = vadd.f32 %v8819_v2, %v3798_v53  ;;  %v4885_v10 = vpop.f32.mrb[27].mxu1 }
 0x591   : > { %v3862_v49 = vmax.f32 %v3799_v19, 0.0 }
 0x592   : > { %v3803_v62 = vpop.f32.mrb[28].mxu1 }
 0x593   : > { %v3804_v31 = vadd.f32 %v8819_v2, %v3803_v62  ;;  %v4888_v59 = vpop.f32.mrb[29].mxu1  ;;  %4955 = vmatmul.mubr.f32.vlgmr.msra.gmra.mrb[52].mxu0 %v3862_v49 }
 0x594   : > { %4957 = vmatprep.mubr.msk.f32.mxu0 %vm5833_vm4, %v9293_v32 }
 0x595   : > { %v3863_v34 = vmax.f32 %v3804_v31, 0.0 }
 0x596   : > { %v3808_v39 = vpop.f32.mrb[30].mxu1 }
 0x597   : > { %v3809_v13 = vadd.f32 %v8819_v2, %v3808_v39  ;;  %v4891_v45 = vpop.f32.mrb[31].mxu1  ;;  %4958 = vmatmul.mubr.f32.gmra.mrb[54].mxu0 %v3863_v34 }
 0x598   : > { %4960 = vmatprep.mubr.msk.f32.mxu0 %vm5833_vm4, %v9293_v32 }
 0x599   : > { %v3864_v6 = vmax.f32 %v3809_v13, 0.0 }
 0x59a   : > { %v3813_v38 = vpop.f32.mrb[32].mxu1 }
 0x59b   : > { %v3814_v28 = vadd.f32 %v8819_v2, %v3813_v38  ;;  %v4894_v57 = vpop.f32.mrb[33].mxu1  ;;  %4961 = vmatmul.mubr.f32.gmra.mrb[56].mxu0 %v3864_v6 }
 0x59c   : > { %4963 = vmatprep.mubr.msk.f32.mxu0 %vm5833_vm4, %v9293_v32 }
 0x59d   : > { %v3865_v63 = vmax.f32 %v3814_v28, 0.0 }
 0x59f   : > { %4964 = vmatmul.mubr.f32.gmra.mrb[58].mxu0 %v3865_v63 }
 0x5a0   : > { %4966 = vmatprep.mubr.msk.f32.mxu0 %vm5833_vm4, %v9293_v32 }
 0x5a1   : > { %v3818_v48 = vpop.f32.mrb[34].mxu1 }
 0x5a2   : > { %v3819_v42 = vadd.f32 %v8819_v2, %v3818_v48  ;;  %v4897_v52 = vpop.f32.mrb[35].mxu1 }
 0x5a4   : > { %v3866_v7 = vmax.f32 %v3819_v42, 0.0 }
 0x5a6   : > { %v3823_v56 = vpop.f32.mrb[36].mxu1  ;;  %4967 = vmatmul.mubr.f32.gmra.mrb[60].mxu0 %v3866_v7 }
 0x5a7   : > { %v3824_v18 = vadd.f32 %v8819_v2, %v3823_v56  ;;  %v4900_v17 = vpop.f32.mrb[37].mxu1  ;;  %4969 = vmatprep.mubr.msk.f32.mxu0 %vm5833_vm4, %v9293_v32 }
 0x5a9   : > { %v3867_v35 = vmax.f32 %v3824_v18, 0.0 }
 0x5ab   : > { %4970 = vmatmul.mubr.f32.gmra.mrb[62].mxu0 %v3867_v35 }
 0x5ac   : > { %4972 = vmatprep.mubr.msk.f32.mxu0 %vm5833_vm4, %v9293_v32 }
 0x5ae   : > { %v3828_v60 = vpop.f32.mrb[38].mxu1 }
 0x5af   : > { %v3829_v40 = vadd.f32 %v8819_v2, %v3828_v60  ;;  %v4903_v24 = vpop.f32.mrb[39].mxu1 }
 0x5b1   : > { %v3868_v47 = vmax.f32 %v3829_v40, 0.0 }
 0x5b3   : > { %4973 = vmatmul.mubr.f32.gmra.mrb[64].mxu0 %v3868_v47 }
 0x5ba   : > { %v3833_v22 = vpop.f32.mrb[40].mxu1 }
 0x5bb   : > { %v3834_v36 = vadd.f32 %v8819_v2, %v3833_v22  ;;  %v4906_v0 = vpop.f32.mrb[41].mxu1 }
 0x5bd   : > { %v3869_v21 = vmax.f32 %v3834_v36, 0.0 }
 0x5bf   : > { %4976 = vmatmul.mubr.f32.vlgmr.msra.gmra.mrb[52].mxu1 %v3869_v21 }
 0x5c0   : > { %4978 = vmatprep.mubr.msk.f32.mxu1 %vm5833_vm4, %v9293_v32 }
 0x5c2   : > { %v3838_v25 = vpop.f32.mrb[42].mxu1 }
 0x5c3   : > { %v3839_v8 = vadd.f32 %v8819_v2, %v3838_v25  ;;  %v4909_v5 = vpop.f32.mrb[43].mxu1 }
 0x5c5   : > { %v3870_v20 = vmax.f32 %v3839_v8, 0.0 }
 0x5c7   : > { %4979 = vmatmul.mubr.f32.gmra.mrb[54].mxu1 %v3870_v20 }
 0x5c8   : > { %4981 = vmatprep.mubr.msk.f32.mxu1 %vm5833_vm4, %v9293_v32 }
 0x5ce   : > { %v3843_v61 = vpop.f32.mrb[44].mxu1 }
 0x5cf   : > { %v3844_v26 = vadd.f32 %v8819_v2, %v3843_v61  ;;  %v4912_v4 = vpop.f32.mrb[45].mxu1 }
 0x5d1   : > { %v3871_v3 = vmax.f32 %v3844_v26, 0.0 }
 0x5d3   : > { %4982 = vmatmul.mubr.f32.gmra.mrb[56].mxu1 %v3871_v3 }
 0x5d4   : > { %4984 = vmatprep.mubr.msk.f32.mxu1 %vm5833_vm4, %v9293_v32 }
 0x5d9   : > { %v3848_v11 = vpop.f32.mrb[46].mxu1 }
 0x5da   : > { %v3849_v37 = vadd.f32 %v8819_v2, %v3848_v11  ;;  %v4915_v29 = vpop.f32.mrb[47].mxu1 }
 0x5dc   : > { %v3872_v14 = vmax.f32 %v3849_v37, 0.0 }
 0x5de   : > { %4985 = vmatmul.mubr.f32.gmra.mrb[58].mxu1 %v3872_v14 }
 0x5df   : > { %4987 = vmatprep.mubr.msk.f32.mxu1 %vm5833_vm4, %v9293_v32 }
 0x5e2   : > { %v3853_v51 = vpop.f32.mrb[48].mxu1 }
 0x5e3   : > { %v3854_v15 = vadd.f32 %v8819_v2, %v3853_v51  ;;  %v4918_v12 = vpop.f32.mrb[49].mxu1 }
 0x5e5   : > { %v3873_v50 = vmax.f32 %v3854_v15, 0.0 }
 0x5e7   : > { %4988 = vmatmul.mubr.f32.gmra.mrb[60].mxu1 %v3873_v50 }
 0x5e8   : > { %4990 = vmatprep.mubr.msk.f32.mxu1 %vm5833_vm4, %v9293_v32  ;;  %vm4119_vm4 = vcmask 64512  }
 0x5ec   : > { %v3858_v43 = vpop.f32.mrb[50].mxu1 }
 0x5ed   : > { %v3859_v46 = vadd.f32 %v8819_v2, %v3858_v43  ;;  %v4921_v44 = vpop.f32.mrb[51].mxu1 }
 0x5ef   : > { %v3874_v58 = vmax.f32 %v3859_v46, 0.0 }
 0x5f1   : > { %4991 = vmatmul.mubr.f32.gmra.mrb[62].mxu1 %v3874_v58 }
 0x666   : > { %v3957_v54 = vpop.f32.mrb[52].mxu0 }
 0x667   : > { %v4028_v1 = vadd.f32 %v8859_v30, %v3957_v54  ;;  %v4956_v27 = vpop.f32.mrb[53].mxu0 }
 0x669   : > { %v4596_v16 = vmul.f32 -1.442695, %v4028_v1 }
 0x66a   : > { %v3962_v41 = vpop.f32.mrb[54].mxu0 }
 0x66b   : > { %5507 = vpow2.f32 %v4596_v16  ;;  %v4029_v32 = vadd.f32 %v8859_v30, %v3962_v41  ;;  %v4959_v55 = vpop.f32.mrb[55].mxu0 }
 0x66d   : > { %v4597_v23 = vmul.f32 -1.442695, %v4029_v32 }
 0x66e   : > { %v3967_v33 = vpop.f32.mrb[56].mxu0 }
 0x66f   : > { %5509 = vpow2.f32 %v4597_v23  ;;  %v4030_v9 = vadd.f32 %v8859_v30, %v3967_v33  ;;  %v4962_v2 = vpop.f32.mrb[57].mxu0 }
 0x671   : > { %v4598_v53 = vmul.f32 -1.442695, %v4030_v9 }
 0x672   : > { %v3972_v19 = vpop.f32.mrb[58].mxu0 }
 0x673   : > { %5511 = vpow2.f32 %v4598_v53  ;;  %v4031_v10 = vadd.f32 %v8859_v30, %v3972_v19  ;;  %v4965_v49 = vpop.f32.mrb[59].mxu0 }
 0x675   : > { %v5508_v62 = vpop.eup %5507  ;;  %v4599_v31 = vmul.f32 -1.442695, %v4031_v10 }
 0x676   : > { %v4080_v59 = vadd.f32 1.0, %v5508_v62 }
 0x677   : > { %5513 = vpow2.f32 %v4599_v31 }
 0x678   : > { %5515 = vrcp.f32 %v4080_v59 }
 0x679   : > { %v3977_v34 = vpop.f32.mrb[60].mxu0  ;;  %v5510_v45 = vpop.eup %5509 }
 0x67a   : > { %v4032_v39 = vadd.f32 %v8859_v30, %v3977_v34  ;;  %v4968_v13 = vpop.f32.mrb[61].mxu0  ;;  %v4081_v38 = vadd.f32 1.0, %v5510_v45 }
 0x67c   : > { %v4600_v6 = vmul.f32 -1.442695, %v4032_v39 }
 0x67d   : > { %v5512_v48 = vpop.eup %5511 }
 0x67e   : > { %v3982_v28 = vpop.f32.mrb[62].mxu0  ;;  %5517 = vpow2.f32 %v4600_v6  ;;  %v4082_v52 = vadd.f32 1.0, %v5512_v48 }
 0x67f   : > { %v4033_v57 = vadd.f32 %v8859_v30, %v3982_v28  ;;  %v4971_v63 = vpop.f32.mrb[63].mxu0  ;;  %5519 = vrcp.f32 %v4081_v38 }
 0x681   : > { %v4601_v42 = vmul.f32 -1.442695, %v4033_v57  ;;  %v5514_v7 = vpop.eup %5513 }
 0x682   : > { %v5516_v18 = vpop.eup %5515  ;;  %v4083_v17 = vadd.f32 1.0, %v5514_v7 }
 0x683   : > { %5521 = vpow2.f32 %v4601_v42  ;;  %4120 = vst.msk [vmem:[%s8869_s13] sm:$0xff] %vm4119_vm4, %v5516_v18 }
 0x684   : > { %5523 = vrcp.f32 %v4082_v52 }
 0x685   : > { %5525 = vrcp.f32 %v4083_v17 }
 0x686   : > { %v3987_v56 = vpop.f32.mrb[64].mxu0 }
 0x687   : > { %v4034_v35 = vadd.f32 %v8859_v30, %v3987_v56  ;;  %v4974_v60 = vpop.f32.mrb[65].mxu0 }
 0x688   : > { %v5518_v24 = vpop.eup %5517 }
 0x689   : > { %v4602_v40 = vmul.f32 -1.442695, %v4034_v35  ;;  %v5520_v47 = vpop.eup %5519  ;;  %v4084_v22 = vadd.f32 1.0, %v5518_v24 }
 0x68a   : > { %4121 = vst.msk [vmem:[%s8869_s13 + $0x8] sm:$0xff] %vm4119_vm4, %v5520_v47 }
 0x68b   : > { %5527 = vpow2.f32 %v4602_v40 }
 0x68c   : > { %5529 = vrcp.f32 %v4084_v22 }
 0x68d   : > { %v5522_v36 = vpop.eup %5521 }
 0x68e   : > { %v5524_v0 = vpop.eup %5523  ;;  %v4085_v21 = vadd.f32 1.0, %v5522_v36 }
 0x68f   : > { %4122 = vst.msk [vmem:[%s8869_s13 + $0x10] sm:$0xff] %vm4119_vm4, %v5524_v0  ;;  %v5526_v20 = vpop.eup %5525 }
 0x690   : > { %5531 = vrcp.f32 %v4085_v21  ;;  %4123 = vst.msk [vmem:[%s8869_s13 + $0x18] sm:$0xff] %vm4119_vm4, %v5526_v20 }
 0x692   : > { %v3992_v25 = vpop.f32.mrb[52].mxu1 }
 0x693   : > { %v4035_v8 = vadd.f32 %v8859_v30, %v3992_v25  ;;  %v4977_v5 = vpop.f32.mrb[53].mxu1 }
 0x695   : > { %v4603_v61 = vmul.f32 -1.442695, %v4035_v8  ;;  %v5528_v26 = vpop.eup %5527 }
 0x696   : > { %v4086_v4 = vadd.f32 1.0, %v5528_v26  ;;  %v5530_v3 = vpop.eup %5529 }
 0x697   : > { %5533 = vpow2.f32 %v4603_v61  ;;  %4124 = vst.msk [vmem:[%s8869_s13 + $0x20] sm:$0xff] %vm4119_vm4, %v5530_v3 }
 0x698   : > { %5535 = vrcp.f32 %v4086_v4 }
 0x69a   : > { %v3997_v11 = vpop.f32.mrb[54].mxu1  ;;  %v5532_v14 = vpop.eup %5531 }
 0x69b   : > { %v4036_v37 = vadd.f32 %v8859_v30, %v3997_v11  ;;  %v4980_v29 = vpop.f32.mrb[55].mxu1  ;;  %4125 = vst.msk [vmem:[%s8869_s13 + $0x28] sm:$0xff] %vm4119_vm4, %v5532_v14 }
 0x69d   : > { %v4604_v51 = vmul.f32 -1.442695, %v4036_v37 }
 0x69f   : > { %5537 = vpow2.f32 %v4604_v51 }
 0x6a1   : > { %v5534_v15 = vpop.eup %5533 }
 0x6a2   : > { %v4087_v12 = vadd.f32 1.0, %v5534_v15  ;;  %v5536_v50 = vpop.eup %5535 }
 0x6a3   : > { %4126 = vst.msk [vmem:[%s8869_s13 + $0x30] sm:$0xff] %vm4119_vm4, %v5536_v50 }
 0x6a4   : > { %5539 = vrcp.f32 %v4087_v12 }
 0x6a6   : > { %v4002_v43 = vpop.f32.mrb[56].mxu1 }
 0x6a7   : > { %v4037_v46 = vadd.f32 %v8859_v30, %v4002_v43  ;;  %v4983_v44 = vpop.f32.mrb[57].mxu1 }
 0x6a9   : > { %v4605_v58 = vmul.f32 -1.442695, %v4037_v46  ;;  %v5538_v54 = vpop.eup %5537 }
 0x6aa   : > { %v4088_v1 = vadd.f32 1.0, %v5538_v54 }
 0x6ab   : > { %5541 = vpow2.f32 %v4605_v58 }
 0x6ac   : > { %5543 = vrcp.f32 %v4088_v1 }
 0x6ae   : > { %v5540_v16 = vpop.eup %5539 }
 0x6af   : > { %4127 = vst.msk [vmem:[%s8869_s13 + $0x38] sm:$0xff] %vm4119_vm4, %v5540_v16 }
 0x6b1   : > { %v4007_v27 = vpop.f32.mrb[58].mxu1 }
 0x6b2   : > { %v4038_v41 = vadd.f32 %v8859_v30, %v4007_v27  ;;  %v4986_v32 = vpop.f32.mrb[59].mxu1 }
 0x6b4   : > { %v4606_v55 = vmul.f32 -1.442695, %v4038_v41 }
 0x6b5   : > { %v5542_v23 = vpop.eup %5541 }
 0x6b6   : > { %5545 = vpow2.f32 %v4606_v55  ;;  %v4089_v33 = vadd.f32 1.0, %v5542_v23  ;;  %v5544_v9 = vpop.eup %5543 }
 0x6b7   : > { %4128 = vst.msk [vmem:[%s8869_s13 + $0x40] sm:$0xff] %vm4119_vm4, %v5544_v9 }
 0x6b8   : > { %5547 = vrcp.f32 %v4089_v33 }
 0x6ba   : > { %v4012_v2 = vpop.f32.mrb[60].mxu1 }
 0x6bb   : > { %v4039_v53 = vadd.f32 %v8859_v30, %v4012_v2  ;;  %v4989_v19 = vpop.f32.mrb[61].mxu1 }
 0x6bd   : > { %v4607_v10 = vmul.f32 -1.442695, %v4039_v53 }
 0x6bf   : > { %5549 = vpow2.f32 %v4607_v10 }
 0x6c0   : > { %v5546_v49 = vpop.eup %5545 }
 0x6c1   : > { %v4090_v62 = vadd.f32 1.0, %v5546_v49 }
 0x6c2   : > { %v5548_v31 = vpop.eup %5547 }
 0x6c3   : > { %5551 = vrcp.f32 %v4090_v62  ;;  %4129 = vst.msk [vmem:[%s8869_s13 + $0x48] sm:$0xff] %vm4119_vm4, %v5548_v31 }
 0x6c4   : > { %v4017_v59 = vpop.f32.mrb[62].mxu1 }
 0x6c5   : > { %v4040_v34 = vadd.f32 %v8859_v30, %v4017_v59  ;;  %v4992_v39 = vpop.f32.mrb[63].mxu1 }
 0x6c7   : > { %v4608_v13 = vmul.f32 -1.442695, %v4040_v34 }
 0x6c9   : > { %v5550_v45 = vpop.eup %5549  ;;  %5553 = vpow2.f32 %v4608_v13 }
 0x6ca   : > { %v4091_v6 = vadd.f32 1.0, %v5550_v45 }
 0x6cc   : > { %5555 = vrcp.f32 %v4091_v6 }
 0x6cd   : > { %v5552_v38 = vpop.eup %5551 }
 0x6ce   : > { %4130 = vst.msk [vmem:[%s8869_s13 + $0x50] sm:$0xff] %vm4119_vm4, %v5552_v38 }
 0x6d3   : > { %v5554_v28 = vpop.eup %5553 }
 0x6d4   : > { %v4092_v57 = vadd.f32 1.0, %v5554_v28 }
 0x6d6   : > { %v5556_v63 = vpop.eup %5555  ;;  %5557 = vrcp.f32 %v4092_v57 }
 0x6d7   : > { %4131 = vst.msk [vmem:[%s8869_s13 + $0x58] sm:$0xff] %vm4119_vm4, %v5556_v63 }
 0x6db   : > { %4139 = sbr.rel (!%p9435_p5) target bundleno = 1823 (0x71f), region = 84 }
 0x6e0   : > { %v5558_v48 = vpop.eup %5557 }
 0x6e1   : > { %4132 = vst.msk [vmem:[%s8869_s13 + $0x60] sm:$0xff] %vm4119_vm4, %v5558_v48 }
 0x6e2   : > { %s9443_s27 = smov (!%p4142_p8, %s4141_s27), 13 }
 0x6e3   : > { %s4609_s14 = sshll.u32 %s9443_s27, 7 }
 0x6e4   : > { %p4612_p10 = scmp.eq.s32.totalorder %s4609_s14, 0 }
 0x6e5   : > { %5572 = sdivrem.u32 (!%p4612_p10), %s9443_s27, 13 }
 0x6e6   : > { %4150 = sbr.rel (%p4612_p10) target bundleno = 1823 (0x71f), region = 88 }
 0x6ee   : > { %s8916_s21 = spop.drf %5572 }
 0x6ef   : > { %p4613_p12 = scmp.le.s32.totalorder %s8916_s21, 0 }
 0x6f0   : > { %s9436_s16 = smov (!%p4613_p12), %s8910_s6  ;;  %s9437_s22 = smov (!%p4613_p12), %s8869_s13 }
 0x6f1   : > { %4359 = sbr.rel (%p4613_p12) target bundleno = 1794 (0x702), region = 165  ;;  %s8925_s17 = smov (!%p4613_p12), 0  }
 0x6f2   : > { %s8927_s12 = smov (!%p4613_p12), 0  }
 0x6f8 LB: >> { %v4238_v30 = vld [vmem:[%s5790_s22] sm:$0xff]  ;;  %v4240_v42 = vld [vmem:[%s5790_s22 + $0x8] sm:$0xff]  ;;  %v4242_v52 = vld [vmem:[%s5790_s22 + $0x10] sm:$0xff]  ;;  %s4264_s18 = sadd.s32 1, %s5794_s17  ;;  %s4232_s12 = sadd.s32 1, %s5798_s12   ;;  %s5798_s12 = sphi %s8927_s12, %s4232_s12   ;;  %s5794_s17 = sphi %s8925_s17, %s9438_s17   ;;  %s5790_s22 = sphi %s9437_s22, %s4269_s22   ;;  %s5786_s16 = sphi %s9436_s16, %s4270_s16  }
 0x6f9   : >> { %4239 = vst [vmem:[%s5786_s16] sm:$0xff] %v4238_v30  ;;  %4241 = vst [vmem:[%s5786_s16 + $0x8] sm:$0xff] %v4240_v42  ;;  %v4244_v7 = vld [vmem:[%s5790_s22 + $0x18] sm:$0xff]  ;;  %v4246_v56 = vld [vmem:[%s5790_s22 + $0x20] sm:$0xff]  ;;  %p4265_p6 = scmp.ge.s32.totalorder %s4264_s18, %s8916_s21  ;;  %p4231_p13 = scmp.ge.s32.totalorder %s4232_s12, %s8916_s21 }
 0x6fa   : >> { %4243 = vst [vmem:[%s5786_s16 + $0x10] sm:$0xff] %v4242_v52  ;;  %v4248_v18 = vld [vmem:[%s5790_s22 + $0x28] sm:$0xff]  ;;  %4245 = vst [vmem:[%s5786_s16 + $0x18] sm:$0xff] %v4244_v7  ;;  %v4250_v17 = vld [vmem:[%s5790_s22 + $0x30] sm:$0xff] }
 0x6fb   : >> { %4247 = vst [vmem:[%s5786_s16 + $0x20] sm:$0xff] %v4246_v56  ;;  %4249 = vst [vmem:[%s5786_s16 + $0x28] sm:$0xff] %v4248_v18  ;;  %v4252_v35 = vld [vmem:[%s5790_s22 + $0x38] sm:$0xff]  ;;  %v4254_v60 = vld [vmem:[%s5790_s22 + $0x40] sm:$0xff]  ;;  %s9445_s18 = smov (%p4265_p6, %s4264_s18), 0  ;;  %4234 = sbr.rel (!%p4231_p13) target bundleno = 1784 (0x6f8), region = 171 }
 0x6fc   : >> { %4251 = vst [vmem:[%s5786_s16 + $0x30] sm:$0xff] %v4250_v17  ;;  %4253 = vst [vmem:[%s5786_s16 + $0x38] sm:$0xff] %v4252_v35  ;;  %v4256_v40 = vld [vmem:[%s5790_s22 + $0x48] sm:$0xff]  ;;  %v4258_v24 = vld [vmem:[%s5790_s22 + $0x50] sm:$0xff]  ;;  %s4267_s23 = smul.u32 104, %s9445_s18  ;;  %s9438_s17 = smov %s9445_s18 }
 0x6fd   : >> { %4255 = vst [vmem:[%s5786_s16 + $0x40] sm:$0xff] %v4254_v60  ;;  %v4260_v47 = vld [vmem:[%s5790_s22 + $0x58] sm:$0xff]  ;;  %4257 = vst [vmem:[%s5786_s16 + $0x48] sm:$0xff] %v4256_v40  ;;  %v4262_v22 = vld [vmem:[%s5790_s22 + $0x60] sm:$0xff] }
 0x6fe   : >> { %4259 = vst [vmem:[%s5786_s16 + $0x50] sm:$0xff] %v4258_v24  ;;  %4261 = vst [vmem:[%s5786_s16 + $0x58] sm:$0xff] %v4260_v47  ;;  %s4269_s22 = scalar_lea.vmem %s8869_s13, %s4267_s23 [#allocation10]  }
 0x6ff   : >> { %4263 = vst [vmem:[%s5786_s16 + $0x60] sm:$0xff] %v4262_v22  ;;  %s4270_s16 = scalar_lea.vmem %s8910_s6, %s4267_s23  }
 0x702 PF: > { %5574 = sdivrem.u32 %s9443_s27, 13 }
 0x703   : > { %s4614_s26 = smul.u32 104, %s8916_s21 }
 0x705   : > { %s4275_s20 = scalar_lea.vmem %s8869_s13, %s4614_s26 [#allocation10]   ;;  %s4277_s28 = scalar_lea.vmem %s8910_s6, %s4614_s26  }
 0x70b   : > { %s5575_s24 = spop.drf %5574 }
 0x70c   : > { %p4616_p4 = scmp.le.s32.totalorder %s5575_s24, 0 }
 0x70d   : > { %s5800_s25 = smov (!%p4616_p4), %s4277_s28   ;;  %s5804_s19 = smov (!%p4616_p4), %s4275_s20  }
 0x70e   : > { %4373 = sbr.rel (%p4616_p4) target bundleno = 1823 (0x71f), region = 176  ;;  %s5808_s15 = smov (!%p4616_p4), 0  }
 0x70f   : > { %s5812_s29 = smov (!%p4616_p4), 0  }
 0x715 LB: >> { %v4287_v36 = vld [vmem:[%s5806_s19] sm:$0xff]  ;;  %s4289_s30 = sadd.s32 1, %s5810_s15  ;;  %s4281_s29 = sadd.s32 1, %s5814_s29   ;;  %s5814_s29 = sphi %s5812_s29, %s4281_s29   ;;  %s5810_s15 = sphi %s5808_s15, %s5809_s15   ;;  %s5806_s19 = sphi %s5804_s19, %s4294_s19   ;;  %s5802_s25 = sphi %s5800_s25, %s4295_s25  }
 0x716   : >> { %4288 = vst [vmem:[%s5802_s25] sm:$0xff] %v4287_v36  ;;  %p4290_p7 = scmp.ge.s32.totalorder %s4289_s30, %s5575_s24  ;;  %p4280_p11 = scmp.ge.s32.totalorder %s4281_s29, %s5575_s24 }
 0x718   : >> { %s9447_s30 = smov (%p4290_p7, %s4289_s30), 0  ;;  %4283 = sbr.rel (!%p4280_p11) target bundleno = 1813 (0x715), region = 182 }
 0x719   : >> { %s4617_s13 = sshll.u32 %s9447_s30, 3  ;;  %s5809_s15 = smov %s9447_s30  }
 0x71a   : >> { %s4294_s19 = scalar_lea.vmem %s4275_s20, %s4617_s13 [#allocation10]   ;;  %s4295_s25 = scalar_lea.vmem %s4277_s28, %s4617_s13  }
 0x71f PF: > { %s9439_s15 = sld [smem:[#allocation15_spill]]  ;;  %s9440_s13 = sld [smem:[#allocation14_spill]] }
 0x720   : > { %s9441_s14 = sld [smem:[#allocation16_spill]] }
 0x725   : > { %p20_p0 = scmp.ge.s32.totalorder %s9439_s15, 4  }
 0x727   :  { %22 = sbr.rel (!%p20_p0) target bundleno = 7 (0x7), region = 193 }
 0x72e   :  { %4311 = vsyncpa [#allocation3], 1 }
 0x72f   :  { %4313 = vsyncpa [#allocation3 + $0x1], 1 }
 0x730   :  { %4314 = vsyncpa [#allocation5], 1 }
 0x731   :  { %4315 = vsyncpa [#allocation8], 1 }

</bundles_post_ra>
